<compile_context>
chip_gen: v5e
topology: v5e:2x2
jax: 0.10.0
libtpu: 0.0.40
codegen_flags: <defaults>
</compile_context>

<pallas_src>
import math

import jax
import jax.numpy as jnp
from jax import lax
from jax.experimental import pallas as pl
from jax.experimental.pallas import tpu as pltpu

# ----------------------------- model sizes -----------------------------------
B, S, H, F, V, L = 2, 16, 128, 256, 50, 8   # batch, seq, hidden, ffn, vocab, labels
LANES = 128                                  # lane-dense output width
NEG = -1e9


def _layernorm(x, g, b, eps=1e-12):
    mu = jnp.mean(x, axis=-1, keepdims=True)
    xc = x - mu
    var = jnp.mean(xc * xc, axis=-1, keepdims=True)
    return xc * lax.rsqrt(var + eps) * g + b


# ============================ fused kernel ====================================
def fused_kernel(len_sref,                      # scalar prefetch: lengths (B,) i32
                 x_ref, tags_ref,               # per-batch activations
                 wenc_ref, w2_ref,              # packed bf16 weight slabs
                 vecs_ref, crfm_ref,            # packed f32 parameter slabs
                 logits_ref, misc_ref):         # lane-dense outputs
    b = pl.program_id(0)
    bf16, f32 = jnp.bfloat16, jnp.float32

    length = len_sref[b]
    seq_end = length - 1

    # ---- unpack the two small-parameter slabs (2 DMA streams instead of ~16) -
    g1   = vecs_ref[0:1, 0:H]
    be1  = vecs_ref[1:2, 0:H]
    g2   = vecs_ref[2:3, 0:H]
    be2  = vecs_ref[3:4, 0:H]
    b2   = vecs_ref[4:5, 0:H]
    bout = vecs_ref[5:6, 0:LANES]               # (1, 128), zero beyond L
    b1   = vecs_ref[6:7, :]                     # (1, F)
    start = vecs_ref[7:8, 0:L]                  # (1, L)
    end_r = vecs_ref[8:9, 0:L]                  # (1, L)
    trans  = crfm_ref[0:L, 0:L]                 # (L, L)  [prev, cur]
    transT = crfm_ref[L:2 * L, 0:L]             # (L, L)  [cur, prev]
    end_c  = crfm_ref[2 * L:3 * L, 0:1]         # (L, 1)

    # ---- iotas / constants, hoisted out of all (unrolled) loops --------------
    iota_rLL = lax.broadcasted_iota(jnp.int32, (L, L), 0)
    iota_cLL = lax.broadcasted_iota(jnp.int32, (L, L), 1)
    eye_f = (iota_rLL == iota_cLL).astype(f32)
    neg_eye = (1.0 - eye_f) * NEG               # frozen-timestep "identity" trans
    lane_idx = iota_cLL.astype(f32)
    sub_idx = iota_rLL.astype(f32)
    iota_lr = lax.broadcasted_iota(jnp.int32, (1, L), 1).astype(f32)
    iota_lc = lax.broadcasted_iota(jnp.int32, (L, 1), 0).astype(f32)
    iota_row_s = lax.broadcasted_iota(jnp.int32, (1, S), 1)
    iota_col_s = lax.broadcasted_iota(jnp.int32, (S, 1), 0)
    iota_SL = lax.broadcasted_iota(jnp.int32, (S, L), 1)
    iota_pos = lax.broadcasted_iota(jnp.int32, (1, LANES), 1)

    # masks derived from the prefetched length (contiguous-prefix attention
    # mask -- the same assumption the torchcrf path already relies on).
    mrow = (iota_row_s < length).astype(f32)    # (1, S) attention key mask
    mcol = (iota_col_s < length).astype(f32)    # (S, 1) CRF token mask

    # ---------------- encoder (synthetic 1-layer, 1-head transformer) --------
    # TODO(synk): pretrained AutoModel replaced by a synthetic encoder layer.
    x = x_ref[0]                                # (S, H) f32
    xb = x.astype(bf16)
    qkv = jnp.dot(xb, wenc_ref[:, 0:3 * H],     # fused QKV: one MXU push/pop
                  preferred_element_type=f32)   # (S, 3H)
    q, k, v = qkv[:, 0:H], qkv[:, H:2 * H], qkv[:, 2 * H:3 * H]
    scores = lax.dot_general(q.astype(bf16), k.astype(bf16),
                             (((1,), (1,)), ((), ())),
                             preferred_element_type=f32)        # (S, S)
    scores = scores * (1.0 / math.sqrt(H)) + (1.0 - mrow) * NEG
    smax = jnp.max(scores, axis=-1, keepdims=True)
    p = jnp.exp(scores - smax)
    p = p * pl.reciprocal(jnp.sum(p, axis=-1, keepdims=True), approx=True)
    attn = jnp.dot(p.astype(bf16), v.astype(bf16), preferred_element_type=f32)
    attn = jnp.dot(attn.astype(bf16), wenc_ref[:, 3 * H:4 * H],
                   preferred_element_type=f32)
    h1 = _layernorm(x + attn, g1, be1)
    ff = jnp.dot(h1.astype(bf16), wenc_ref[:, 4 * H:4 * H + F],
                 preferred_element_type=f32) + b1
    ff = jax.nn.gelu(ff, approximate=True)
    ff = jnp.dot(ff.astype(bf16), w2_ref[...], preferred_element_type=f32) + b2
    h2 = _layernorm(h1 + ff, g2, be2)

    # -------- token-classification head (dropout = identity), lane-dense -----
    logits_full = jnp.dot(h2.astype(bf16),
                          wenc_ref[:, 4 * H + F:4 * H + F + LANES],
                          preferred_element_type=f32) + bout    # (S, 128)
    logits_ref[0] = logits_full                 # unmasked 128-lane store

    logits_crf = logits_full[:, 0:L]            # (S, L) emissions
    # (L, S) emission view via one tiny identity matmul (replaces the old
    # second head matmul + its bias input stream).
    logits_T = lax.dot_general(eye_f, logits_crf, (((1,), (1,)), ((), ())),
                               preferred_element_type=f32)      # (L, S)

    # ---------------- CRF numerator (gold path), fully vectorized ------------
    tags_col = tags_ref[0]                      # (S, 1) int32
    oh = (iota_SL == tags_col).astype(f32)      # (S, L) one-hot(tags)
    e_sum = jnp.sum(jnp.sum(logits_crf * oh * mcol, axis=1, keepdims=True),
                    axis=0, keepdims=True)
    Pm = jnp.dot(oh, trans, preferred_element_type=f32)   # (S, L) trans[tags[t], :]
    tv = jnp.sum(Pm[:S - 1, :] * oh[1:, :], axis=1, keepdims=True)
    t_sum = jnp.sum(tv * mcol[1:, :], axis=0, keepdims=True)
    s_val = jnp.sum(start * oh[0:1, :], axis=1, keepdims=True)
    last_oh = jnp.sum(oh * (iota_col_s == seq_end).astype(f32),
                      axis=0, keepdims=True)               # (1, L)
    e_val = jnp.sum(end_r * last_oh, axis=1, keepdims=True)
    num = e_sum + t_sum + s_val + e_val                    # (1, 1)

    # ------- merged forward (log-sum-exp) + Viterbi recursion (unrolled) -----
    # Alternating row/column orientation removes per-step transposes; masked
    # timesteps are frozen exactly by swapping trans for a 0/-1e9 identity.
    e0 = logits_crf[0:1, :]
    alpha = start + e0                          # row orientation (1, L)
    vscore = start + e0
    history = []                                # backpointers stay in vregs
    for t in range(1, S):
        mt = t < length                         # prefix-mask: is step t valid?
        mt_f = jnp.where(mt, 1.0, 0.0)
        if t % 2 == 1:                          # row -> column step
            eff = jnp.where(mt, transT, neg_eye)              # (L,L) [cur, prev]
            e_t = logits_T[:, t:t + 1] * mt_f                 # (L, 1)
            sf = eff + alpha
            mf = jnp.max(sf, axis=1, keepdims=True)
            alpha = mf + jnp.log(jnp.sum(jnp.exp(sf - mf), axis=1,
                                         keepdims=True)) + e_t
            sv = eff + vscore
            bestv = jnp.max(sv, axis=1, keepdims=True)
            bp = jnp.min(jnp.where(sv == bestv, lane_idx, float(L)),
                         axis=1, keepdims=True)               # (L, 1)
            vscore = bestv + e_t
        else:                                   # column -> row step
            eff = jnp.where(mt, trans, neg_eye)               # (L,L) [prev, cur]
            e_t = logits_crf[t:t + 1, :] * mt_f               # (1, L)
            sf = eff + alpha
            mf = jnp.max(sf, axis=0, keepdims=True)
            alpha = mf + jnp.log(jnp.sum(jnp.exp(sf - mf), axis=0,
                                         keepdims=True)) + e_t
            sv = eff + vscore
            bestv = jnp.max(sv, axis=0, keepdims=True)
            bp = jnp.min(jnp.where(sv == bestv, sub_idx, float(L)),
                         axis=0, keepdims=True)               # (1, L)
            vscore = bestv + e_t
        history.append(bp)

    if (S - 1) % 2 == 1:                        # final state in column orientation
        fin = alpha + end_c
        fm = jnp.max(fin, axis=0, keepdims=True)
        norm = fm + jnp.log(jnp.sum(jnp.exp(fin - fm), axis=0, keepdims=True))
        fv = vscore + end_c
        vm = jnp.max(fv, axis=0, keepdims=True)
        best = jnp.min(jnp.where(fv == vm, iota_lc, float(L)),
                       axis=0, keepdims=True)                 # (1, 1)
    else:                                       # final state in row orientation
        fin = alpha + end_r
        fm = jnp.max(fin, axis=1, keepdims=True)
        norm = fm + jnp.log(jnp.sum(jnp.exp(fin - fm), axis=1, keepdims=True))
        fv = vscore + end_r
        vm = jnp.max(fv, axis=1, keepdims=True)
        best = jnp.min(jnp.where(fv == vm, iota_lr, float(L)),
                       axis=1, keepdims=True)

    llh = num - norm                            # (1, 1) per-batch log-likelihood

    # ---------- Viterbi backtracking (unrolled, backpointers in registers) ---
    pred = jnp.where(iota_pos == seq_end, jnp.broadcast_to(best, (1, LANES)),
                     jnp.zeros((1, LANES), f32))
    for pos in range(S - 2, -1, -1):
        valid = (pos + 1) <= seq_end
        bp = history[pos]                       # backpointer from step pos+1
        if (pos + 1) % 2 == 1:                  # column backpointer (L, 1)
            val = jnp.sum(jnp.where(iota_lc == best, bp, 0.0),
                          axis=0, keepdims=True)
        else:                                   # row backpointer (1, L)
            val = jnp.sum(jnp.where(iota_lr == best, bp, 0.0),
                          axis=1, keepdims=True)
        best = jnp.where(valid, val, best)
        pred = jnp.where(jnp.logical_and(valid, iota_pos == pos),
                         jnp.broadcast_to(best, (1, LANES)), pred)

    # predictions in lanes [0, S), log-likelihood in lane S -> one unmasked
    # lane-dense 128-wide store (no masked partial stores in the epilogue).
    misc_ref[0] = jnp.where(iota_pos == S, jnp.broadcast_to(llh, (1, LANES)),
                            pred)


def run_fused(kp, x, tags_col, lengths):
    pb = lambda shape: pl.BlockSpec(shape, lambda b, lens: (b, 0, 0))
    rep = lambda shape: pl.BlockSpec(shape, lambda b, lens: (0, 0))

    grid_spec = pltpu.PrefetchScalarGridSpec(
        num_scalar_prefetch=1,                   # lengths (B,) int32 -> SMEM
        grid=(B,),
        in_specs=[
            pb((1, S, H)),                       # x
            pb((1, S, 1)),                       # gold tags (column)
            rep((H, 4 * H + F + LANES)),         # wqkv | wo | w1 | w_out (bf16)
            rep((F, H)),                         # w2                    (bf16)
            rep((16, 2 * H)),                    # packed ln/bias/start/end slab
            rep((3 * L, LANES)),                 # packed trans | transT | end^T
        ],
        out_specs=[
            pb((1, S, LANES)),                   # lane-dense logits
            pb((1, 1, LANES)),                   # packed predictions + log-lik
        ],
    )
    logits_pad, misc = pl.pallas_call(
        fused_kernel,
        out_shape=(jax.ShapeDtypeStruct((B, S, LANES), jnp.float32),
                   jax.ShapeDtypeStruct((B, 1, LANES), jnp.float32)),
        grid_spec=grid_spec,
        compiler_params=pltpu.CompilerParams(dimension_semantics=("parallel",)),
    )(lengths, x, tags_col, kp['wenc'], kp['w2'], kp['vecs'], kp['crfm'])
    return logits_pad, misc


# ============================ full forward ====================================
def encoder_crf_forward(kp, input_ids, attention_mask, labels=None):
    # embeddings (gather = glue outside the kernel)
    x = kp['word_emb'][input_ids] + kp['pos_emb'][None, :, :]
    lengths = jnp.sum(attention_mask.astype(jnp.int32), axis=1).astype(jnp.int32)
    if labels is not None:
        tags = jnp.where(labels >= 0, labels, 0).astype(jnp.int32)
    else:
        tags = jnp.zeros((B, S), jnp.int32)
    tags_col = tags.reshape(B, S, 1)

    logits_pad, misc = run_fused(kp, x, tags_col, lengths)
    logits = logits_pad[:, :, :L]                # slice padded lanes back to L
    preds = misc[:, 0, :S].astype(jnp.int32)     # packed Viterbi predictions
    llh = misc[:, 0, S]                          # packed per-sequence log-lik
    # torchcrf default reduction='sum'; module returns loss = -crf(...)
    loss = -jnp.sum(llh) if labels is not None else None
    return {'logits': logits, 'loss': loss, 'predictions': preds,
            'pred_lengths': lengths}


# ============================ parameter init / packing ========================
def init_params(key):
    ks = jax.random.split(key, 20)
    n = lambda k, shape, s=0.02: s * jax.random.normal(k, shape, jnp.float32)
    return {
        'word_emb': n(ks[0], (V, H)),
        'pos_emb': n(ks[1], (S, H)),
        'wq': n(ks[2], (H, H)), 'wk': n(ks[3], (H, H)),
        'wv': n(ks[4], (H, H)), 'wo': n(ks[5], (H, H)),
        'w1': n(ks[6], (H, F)), 'b1': jnp.zeros((1, F), jnp.float32),
        'w2': n(ks[7], (F, H)), 'b2': jnp.zeros((1, H), jnp.float32),
        'g1': jnp.ones((1, H), jnp.float32), 'be1': jnp.zeros((1, H), jnp.float32),
        'g2': jnp.ones((1, H), jnp.float32), 'be2': jnp.zeros((1, H), jnp.float32),
        # nn.Linear(H, L) stored pre-transposed as (H, L)
        'w_out': n(ks[8], (H, L)), 'b_out': jnp.zeros((1, L), jnp.float32),
        # CRF params (torchcrf inits uniform(-0.1, 0.1))
        'trans': jax.random.uniform(ks[9], (L, L), jnp.float32, -0.1, 0.1),
        'start_t': jax.random.uniform(ks[10], (1, L), jnp.float32, -0.1, 0.1),
        'end_t': jax.random.uniform(ks[11], (1, L), jnp.float32, -0.1, 0.1),
    }


def pack_params(p):
    """One-time bf16 cast + slab packing so the per-call wrapper does no work."""
    bf = lambda a: a.astype(jnp.bfloat16)
    wout_pad = jnp.zeros((H, LANES), jnp.float32).at[:, :L].set(p['w_out'])
    # all H-leading weights in one bf16 slab: [ wq|wk|wv | wo | w1 | w_out_pad ]
    wenc = jnp.concatenate(
        [p['wq'], p['wk'], p['wv'], p['wo'], p['w1'], wout_pad], axis=1)
    # layernorm / bias / CRF-row vectors in one f32 slab
    vecs = jnp.zeros((16, 2 * H), jnp.float32)
    vecs = vecs.at[0, :H].set(p['g1'][0])
    vecs = vecs.at[1, :H].set(p['be1'][0])
    vecs = vecs.at[2, :H].set(p['g2'][0])
    vecs = vecs.at[3, :H].set(p['be2'][0])
    vecs = vecs.at[4, :H].set(p['b2'][0])
    vecs = vecs.at[5, :L].set(p['b_out'][0])
    vecs = vecs.at[6, :F].set(p['b1'][0])
    vecs = vecs.at[7, :L].set(p['start_t'][0])
    vecs = vecs.at[8, :L].set(p['end_t'][0])
    # CRF transition matrices (plus end as a column) in one f32 slab
    crfm = jnp.zeros((3 * L, LANES), jnp.float32)
    crfm = crfm.at[0:L, :L].set(p['trans'])
    crfm = crfm.at[L:2 * L, :L].set(p['trans'].T)
    crfm = crfm.at[2 * L:3 * L, 0].set(p['end_t'][0])
    return {
        'word_emb': p['word_emb'], 'pos_emb': p['pos_emb'],
        'wenc': bf(wenc), 'w2': bf(p['w2']),
        'vecs': vecs, 'crfm': crfm,
    }


if __name__ == "__main__":
    key = jax.random.PRNGKey(0)
    kparam, kid, klab = jax.random.split(key, 3)
    raw_params = init_params(kparam)
    packed = pack_params(raw_params)     # one-time cast / transpose / packing

    input_ids = jax.random.randint(kid, (B, S), 0, V, dtype=jnp.int32)
    attention_mask = jnp.stack([
        jnp.ones((S,), jnp.int32),
        jnp.concatenate([jnp.ones((10,), jnp.int32),
                         jnp.zeros((S - 10,), jnp.int32)]),
    ], axis=0)
    # torchcrf requires mask[:, 0] == 1
    assert bool(jnp.all(attention_mask[:, 0] == 1))
    labels_raw = jax.random.randint(klab, (B, S), 0, L, dtype=jnp.int32)
    labels = jnp.where(attention_mask > 0, labels_raw, -100)

    fwd = jax.jit(encoder_crf_forward)
    out = fwd(packed, input_ids, attention_mask, labels)
    jax.block_until_ready((out['logits'], out['loss'], out['predictions']))

    assert out['logits'].shape == (B, S, L)
    assert bool(jnp.isfinite(out['loss']))
    assert bool(jnp.all((out['predictions'] >= 0) & (out['predictions'] < L)))
    print("KERNEL_OK")
</pallas_src>

<mosaic_0001>
module attributes {stable_mosaic.version = 11 : i64} {
  func.func @fused_kernel(%arg0: i32, %arg1: memref<2xi32, #tpu.memory_space<smem>>, %arg2: memref<1x16x128xf32, #tpu.memory_space<vmem>>, %arg3: memref<1x16x1xi32, #tpu.memory_space<vmem>>, %arg4: memref<128x896xbf16, #tpu.memory_space<vmem>>, %arg5: memref<256x128xbf16, #tpu.memory_space<vmem>>, %arg6: memref<16x256xf32, #tpu.memory_space<vmem>>, %arg7: memref<24x128xf32, #tpu.memory_space<vmem>>, %arg8: memref<1x16x128xf32, #tpu.memory_space<vmem>>, %arg9: memref<1x1x128xf32, #tpu.memory_space<vmem>>) attributes {dimension_semantics = [#tpu.dimension_semantics<parallel>], iteration_bounds = array<i64: 2>, scalar_prefetch = 1 : i64, scratch_operands = 0 : i64, tpu.core_type = #tpu.core_type<tc>, window_params = [{transform_indices = @transform_0, window_bounds = array<i64: 1, 16, 128>}, {transform_indices = @transform_1, window_bounds = array<i64: 1, 16, 1>}, {pipeline_mode = #tpu.pipeline_mode<synchronous>, transform_indices = @transform_2, window_bounds = array<i64: 128, 896>}, {pipeline_mode = #tpu.pipeline_mode<synchronous>, transform_indices = @transform_3, window_bounds = array<i64: 256, 128>}, {pipeline_mode = #tpu.pipeline_mode<synchronous>, transform_indices = @transform_4, window_bounds = array<i64: 16, 256>}, {pipeline_mode = #tpu.pipeline_mode<synchronous>, transform_indices = @transform_5, window_bounds = array<i64: 24, 128>}, {transform_indices = @transform_6, window_bounds = array<i64: 1, 16, 128>}, {transform_indices = @transform_7, window_bounds = array<i64: 1, 1, 128>}]} {
    %0 = arith.index_cast %arg0 : i32 to index
    %1 = memref.load %arg1[%0] : memref<2xi32, #tpu.memory_space<smem>>
    %c1_i32 = arith.constant 1 : i32
    %2 = arith.subi %1, %c1_i32 : i32
    %c0 = arith.constant 0 : index
    %c0_0 = arith.constant 0 : index
    %3 = vector.load %arg6[%c0, %c0_0] : memref<16x256xf32, #tpu.memory_space<vmem>>, vector<1x128xf32>
    %c1 = arith.constant 1 : index
    %c0_1 = arith.constant 0 : index
    %4 = vector.load %arg6[%c1, %c0_1] : memref<16x256xf32, #tpu.memory_space<vmem>>, vector<1x128xf32>
    %c2 = arith.constant 2 : index
    %c0_2 = arith.constant 0 : index
    %5 = vector.load %arg6[%c2, %c0_2] : memref<16x256xf32, #tpu.memory_space<vmem>>, vector<1x128xf32>
    %c3 = arith.constant 3 : index
    %c0_3 = arith.constant 0 : index
    %6 = vector.load %arg6[%c3, %c0_3] : memref<16x256xf32, #tpu.memory_space<vmem>>, vector<1x128xf32>
    %c4 = arith.constant 4 : index
    %c0_4 = arith.constant 0 : index
    %7 = vector.load %arg6[%c4, %c0_4] : memref<16x256xf32, #tpu.memory_space<vmem>>, vector<1x128xf32>
    %c5 = arith.constant 5 : index
    %c0_5 = arith.constant 0 : index
    %8 = vector.load %arg6[%c5, %c0_5] : memref<16x256xf32, #tpu.memory_space<vmem>>, vector<1x128xf32>
    %c6 = arith.constant 6 : index
    %c0_6 = arith.constant 0 : index
    %9 = vector.load %arg6[%c6, %c0_6] : memref<16x256xf32, #tpu.memory_space<vmem>>, vector<1x256xf32>
    %c7 = arith.constant 7 : index
    %c0_7 = arith.constant 0 : index
    %10 = vector.load %arg6[%c7, %c0_7] : memref<16x256xf32, #tpu.memory_space<vmem>>, vector<1x8xf32>
    %c8 = arith.constant 8 : index
    %c0_8 = arith.constant 0 : index
    %11 = vector.load %arg6[%c8, %c0_8] : memref<16x256xf32, #tpu.memory_space<vmem>>, vector<1x8xf32>
    %c0_9 = arith.constant 0 : index
    %c0_10 = arith.constant 0 : index
    %12 = vector.load %arg7[%c0_9, %c0_10] : memref<24x128xf32, #tpu.memory_space<vmem>>, vector<8x8xf32>
    %c8_11 = arith.constant 8 : index
    %c0_12 = arith.constant 0 : index
    %13 = vector.load %arg7[%c8_11, %c0_12] : memref<24x128xf32, #tpu.memory_space<vmem>>, vector<8x8xf32>
    %c16 = arith.constant 16 : index
    %c0_13 = arith.constant 0 : index
    %14 = vector.load %arg7[%c16, %c0_13] : memref<24x128xf32, #tpu.memory_space<vmem>>, vector<8x1xf32>
    %15 = tpu.iota {dimensions = array<i32: 0>} : vector<8x8xi32>
    %16 = tpu.iota {dimensions = array<i32: 1>} : vector<8x8xi32>
    %17 = arith.cmpi eq, %15, %16 : vector<8x8xi32>
    %18 = arith.extui %17 : vector<8x8xi1> to vector<8x8xi32>
    %19 = arith.sitofp %18 : vector<8x8xi32> to vector<8x8xf32>
    %cst = arith.constant 1.000000e+00 : f32
    %20 = vector.broadcast %cst : f32 to vector<8x8xf32>
    %21 = arith.subf %20, %19 : vector<8x8xf32>
    %cst_14 = arith.constant -1.000000e+09 : f32
    %22 = vector.broadcast %cst_14 : f32 to vector<8x8xf32>
    %23 = arith.mulf %21, %22 : vector<8x8xf32>
    %24 = arith.sitofp %16 : vector<8x8xi32> to vector<8x8xf32>
    %25 = arith.sitofp %15 : vector<8x8xi32> to vector<8x8xf32>
    %26 = tpu.iota {dimensions = array<i32: 1>} : vector<1x8xi32>
    %27 = arith.sitofp %26 : vector<1x8xi32> to vector<1x8xf32>
    %28 = tpu.iota {dimensions = array<i32: 0>} : vector<8x1xi32>
    %29 = arith.sitofp %28 : vector<8x1xi32> to vector<8x1xf32>
    %30 = tpu.iota {dimensions = array<i32: 1>} : vector<1x16xi32>
    %31 = tpu.iota {dimensions = array<i32: 0>} : vector<16x1xi32>
    %32 = tpu.iota {dimensions = array<i32: 1>} : vector<16x8xi32>
    %33 = tpu.iota {dimensions = array<i32: 1>} : vector<1x128xi32>
    %34 = vector.broadcast %1 : i32 to vector<1x16xi32>
    %35 = arith.cmpi slt, %30, %34 : vector<1x16xi32>
    %36 = arith.extui %35 : vector<1x16xi1> to vector<1x16xi32>
    %37 = arith.sitofp %36 : vector<1x16xi32> to vector<1x16xf32>
    %38 = vector.broadcast %1 : i32 to vector<16x1xi32>
    %39 = arith.cmpi slt, %31, %38 : vector<16x1xi32>
    %40 = arith.extui %39 : vector<16x1xi1> to vector<16x1xi32>
    %41 = arith.sitofp %40 : vector<16x1xi32> to vector<16x1xf32>
    %c0_15 = arith.constant 0 : index
    %c0_16 = arith.constant 0 : index
    %c0_17 = arith.constant 0 : index
    %42 = vector.load %arg2[%c0_15, %c0_16, %c0_17] : memref<1x16x128xf32, #tpu.memory_space<vmem>>, vector<1x16x128xf32>
    %43 = vector.shape_cast %42 : vector<1x16x128xf32> to vector<16x128xf32>
    %44 = arith.truncf %43 : vector<16x128xf32> to vector<16x128xbf16>
    %c0_18 = arith.constant 0 : index
    %c0_19 = arith.constant 0 : index
    %45 = vector.load %arg4[%c0_18, %c0_19] : memref<128x896xbf16, #tpu.memory_space<vmem>>, vector<128x384xbf16>
    %cst_20 = arith.constant dense<0.000000e+00> : vector<16x384xf32>
    %46 = tpu.matmul %44, %45, %cst_20 {dimension_numbers = #tpu.dot_dimension_numbers<[1], [0], [0], [1], [0, 0, 1, 1], [], []>} : vector<16x128xbf16>, vector<128x384xbf16>, vector<16x384xf32> -> vector<16x384xf32>
    %47 = vector.extract_strided_slice %46 {offsets = [0, 0], sizes = [16, 128], strides = [1, 1]} : vector<16x384xf32> to vector<16x128xf32>
    %48 = vector.extract_strided_slice %46 {offsets = [0, 128], sizes = [16, 128], strides = [1, 1]} : vector<16x384xf32> to vector<16x128xf32>
    %49 = vector.extract_strided_slice %46 {offsets = [0, 256], sizes = [16, 128], strides = [1, 1]} : vector<16x384xf32> to vector<16x128xf32>
    %50 = arith.truncf %47 : vector<16x128xf32> to vector<16x128xbf16>
    %51 = arith.truncf %48 : vector<16x128xf32> to vector<16x128xbf16>
    %cst_21 = arith.constant dense<0.000000e+00> : vector<16x16xf32>
    %52 = tpu.matmul %50, %51, %cst_21 {dimension_numbers = #tpu.dot_dimension_numbers<[1], [1], [0], [0], [0, 0, 1, 0], [], []>} : vector<16x128xbf16>, vector<16x128xbf16>, vector<16x16xf32> -> vector<16x16xf32>
    %cst_22 = arith.constant 0.0883883461 : f32
    %53 = vector.broadcast %cst_22 : f32 to vector<16x16xf32>
    %54 = arith.mulf %52, %53 : vector<16x16xf32>
    %cst_23 = arith.constant 1.000000e+00 : f32
    %55 = vector.broadcast %cst_23 : f32 to vector<1x16xf32>
    %56 = arith.subf %55, %37 : vector<1x16xf32>
    %cst_24 = arith.constant -1.000000e+09 : f32
    %57 = vector.broadcast %cst_24 : f32 to vector<1x16xf32>
    %58 = arith.mulf %56, %57 : vector<1x16xf32>
    %59 = vector.broadcast %58 : vector<1x16xf32> to vector<16x16xf32>
    %60 = arith.addf %54, %59 : vector<16x16xf32>
    %cst_25 = arith.constant dense<0xFF800000> : vector<16xf32>
    %61 = vector.multi_reduction <maximumf>, %60, %cst_25 [1] : vector<16x16xf32> to vector<16xf32>
    %62 = vector.shape_cast %61 : vector<16xf32> to vector<16x1xf32>
    %63 = vector.broadcast %62 : vector<16x1xf32> to vector<16x16xf32>
    %64 = arith.subf %60, %63 : vector<16x16xf32>
    %65 = math.exp %64 : vector<16x16xf32>
    %cst_26 = arith.constant dense<0.000000e+00> : vector<16xf32>
    %66 = vector.multi_reduction <add>, %65, %cst_26 [1] : vector<16x16xf32> to vector<16xf32>
    %67 = vector.shape_cast %66 : vector<16xf32> to vector<16x1xf32>
    %68 = tpu.reciprocal %67 {approx = true} : vector<16x1xf32> -> vector<16x1xf32>
    %69 = vector.broadcast %68 : vector<16x1xf32> to vector<16x16xf32>
    %70 = arith.mulf %65, %69 : vector<16x16xf32>
    %71 = arith.truncf %70 : vector<16x16xf32> to vector<16x16xbf16>
    %72 = arith.truncf %49 : vector<16x128xf32> to vector<16x128xbf16>
    %cst_27 = arith.constant dense<0.000000e+00> : vector<16x128xf32>
    %73 = tpu.matmul %71, %72, %cst_27 {dimension_numbers = #tpu.dot_dimension_numbers<[1], [0], [0], [1], [0, 0, 1, 1], [], []>} : vector<16x16xbf16>, vector<16x128xbf16>, vector<16x128xf32> -> vector<16x128xf32>
    %74 = arith.truncf %73 : vector<16x128xf32> to vector<16x128xbf16>
    %c0_28 = arith.constant 0 : index
    %c384 = arith.constant 384 : index
    %75 = vector.load %arg4[%c0_28, %c384] : memref<128x896xbf16, #tpu.memory_space<vmem>>, vector<128x128xbf16>
    %cst_29 = arith.constant dense<0.000000e+00> : vector<16x128xf32>
    %76 = tpu.matmul %74, %75, %cst_29 {dimension_numbers = #tpu.dot_dimension_numbers<[1], [0], [0], [1], [0, 0, 1, 1], [], []>} : vector<16x128xbf16>, vector<128x128xbf16>, vector<16x128xf32> -> vector<16x128xf32>
    %77 = arith.addf %43, %76 : vector<16x128xf32>
    %cst_30 = arith.constant dense<0.000000e+00> : vector<16xf32>
    %78 = vector.multi_reduction <add>, %77, %cst_30 [1] : vector<16x128xf32> to vector<16xf32>
    %79 = vector.shape_cast %78 : vector<16xf32> to vector<16x1xf32>
    %cst_31 = arith.constant 1.280000e+02 : f32
    %80 = vector.broadcast %cst_31 : f32 to vector<16x1xf32>
    %81 = arith.divf %79, %80 : vector<16x1xf32>
    %82 = vector.broadcast %81 : vector<16x1xf32> to vector<16x128xf32>
    %83 = arith.subf %77, %82 : vector<16x128xf32>
    %84 = arith.mulf %83, %83 : vector<16x128xf32>
    %cst_32 = arith.constant dense<0.000000e+00> : vector<16xf32>
    %85 = vector.multi_reduction <add>, %84, %cst_32 [1] : vector<16x128xf32> to vector<16xf32>
    %86 = vector.shape_cast %85 : vector<16xf32> to vector<16x1xf32>
    %cst_33 = arith.constant 1.280000e+02 : f32
    %87 = vector.broadcast %cst_33 : f32 to vector<16x1xf32>
    %88 = arith.divf %86, %87 : vector<16x1xf32>
    %cst_34 = arith.constant 9.99999996E-13 : f32
    %89 = vector.broadcast %cst_34 : f32 to vector<16x1xf32>
    %90 = arith.addf %88, %89 : vector<16x1xf32>
    %91 = math.rsqrt %90 : vector<16x1xf32>
    %92 = vector.broadcast %91 : vector<16x1xf32> to vector<16x128xf32>
    %93 = arith.mulf %83, %92 : vector<16x128xf32>
    %94 = vector.broadcast %3 : vector<1x128xf32> to vector<16x128xf32>
    %95 = arith.mulf %93, %94 : vector<16x128xf32>
    %96 = vector.broadcast %4 : vector<1x128xf32> to vector<16x128xf32>
    %97 = arith.addf %95, %96 : vector<16x128xf32>
    %98 = arith.truncf %97 : vector<16x128xf32> to vector<16x128xbf16>
    %c0_35 = arith.constant 0 : index
    %c512 = arith.constant 512 : index
    %99 = vector.load %arg4[%c0_35, %c512] : memref<128x896xbf16, #tpu.memory_space<vmem>>, vector<128x256xbf16>
    %cst_36 = arith.constant dense<0.000000e+00> : vector<16x256xf32>
    %100 = tpu.matmul %98, %99, %cst_36 {dimension_numbers = #tpu.dot_dimension_numbers<[1], [0], [0], [1], [0, 0, 1, 1], [], []>} : vector<16x128xbf16>, vector<128x256xbf16>, vector<16x256xf32> -> vector<16x256xf32>
    %101 = vector.broadcast %9 : vector<1x256xf32> to vector<16x256xf32>
    %102 = arith.addf %100, %101 : vector<16x256xf32>
    %103 = arith.mulf %102, %102 : vector<16x256xf32>
    %104 = arith.mulf %102, %103 : vector<16x256xf32>
    %cst_37 = arith.constant 4.471500e-02 : f32
    %105 = vector.broadcast %cst_37 : f32 to vector<16x256xf32>
    %106 = arith.mulf %105, %104 : vector<16x256xf32>
    %107 = arith.addf %102, %106 : vector<16x256xf32>
    %cst_38 = arith.constant 0.797884583 : f32
    %108 = vector.broadcast %cst_38 : f32 to vector<16x256xf32>
    %109 = arith.mulf %108, %107 : vector<16x256xf32>
    %110 = math.tanh %109 : vector<16x256xf32>
    %cst_39 = arith.constant 1.000000e+00 : f32
    %111 = vector.broadcast %cst_39 : f32 to vector<16x256xf32>
    %112 = arith.addf %111, %110 : vector<16x256xf32>
    %cst_40 = arith.constant 5.000000e-01 : f32
    %113 = vector.broadcast %cst_40 : f32 to vector<16x256xf32>
    %114 = arith.mulf %113, %112 : vector<16x256xf32>
    %115 = arith.mulf %102, %114 : vector<16x256xf32>
    %116 = arith.truncf %115 : vector<16x256xf32> to vector<16x256xbf16>
    %c0_41 = arith.constant 0 : index
    %c0_42 = arith.constant 0 : index
    %117 = vector.load %arg5[%c0_41, %c0_42] : memref<256x128xbf16, #tpu.memory_space<vmem>>, vector<256x128xbf16>
    %cst_43 = arith.constant dense<0.000000e+00> : vector<16x128xf32>
    %118 = tpu.matmul %116, %117, %cst_43 {dimension_numbers = #tpu.dot_dimension_numbers<[1], [0], [0], [1], [0, 0, 1, 1], [], []>} : vector<16x256xbf16>, vector<256x128xbf16>, vector<16x128xf32> -> vector<16x128xf32>
    %119 = vector.broadcast %7 : vector<1x128xf32> to vector<16x128xf32>
    %120 = arith.addf %118, %119 : vector<16x128xf32>
    %121 = arith.addf %97, %120 : vector<16x128xf32>
    %cst_44 = arith.constant dense<0.000000e+00> : vector<16xf32>
    %122 = vector.multi_reduction <add>, %121, %cst_44 [1] : vector<16x128xf32> to vector<16xf32>
    %123 = vector.shape_cast %122 : vector<16xf32> to vector<16x1xf32>
    %cst_45 = arith.constant 1.280000e+02 : f32
    %124 = vector.broadcast %cst_45 : f32 to vector<16x1xf32>
    %125 = arith.divf %123, %124 : vector<16x1xf32>
    %126 = vector.broadcast %125 : vector<16x1xf32> to vector<16x128xf32>
    %127 = arith.subf %121, %126 : vector<16x128xf32>
    %128 = arith.mulf %127, %127 : vector<16x128xf32>
    %cst_46 = arith.constant dense<0.000000e+00> : vector<16xf32>
    %129 = vector.multi_reduction <add>, %128, %cst_46 [1] : vector<16x128xf32> to vector<16xf32>
    %130 = vector.shape_cast %129 : vector<16xf32> to vector<16x1xf32>
    %cst_47 = arith.constant 1.280000e+02 : f32
    %131 = vector.broadcast %cst_47 : f32 to vector<16x1xf32>
    %132 = arith.divf %130, %131 : vector<16x1xf32>
    %cst_48 = arith.constant 9.99999996E-13 : f32
    %133 = vector.broadcast %cst_48 : f32 to vector<16x1xf32>
    %134 = arith.addf %132, %133 : vector<16x1xf32>
    %135 = math.rsqrt %134 : vector<16x1xf32>
    %136 = vector.broadcast %135 : vector<16x1xf32> to vector<16x128xf32>
    %137 = arith.mulf %127, %136 : vector<16x128xf32>
    %138 = vector.broadcast %5 : vector<1x128xf32> to vector<16x128xf32>
    %139 = arith.mulf %137, %138 : vector<16x128xf32>
    %140 = vector.broadcast %6 : vector<1x128xf32> to vector<16x128xf32>
    %141 = arith.addf %139, %140 : vector<16x128xf32>
    %142 = arith.truncf %141 : vector<16x128xf32> to vector<16x128xbf16>
    %c0_49 = arith.constant 0 : index
    %c768 = arith.constant 768 : index
    %143 = vector.load %arg4[%c0_49, %c768] : memref<128x896xbf16, #tpu.memory_space<vmem>>, vector<128x128xbf16>
    %cst_50 = arith.constant dense<0.000000e+00> : vector<16x128xf32>
    %144 = tpu.matmul %142, %143, %cst_50 {dimension_numbers = #tpu.dot_dimension_numbers<[1], [0], [0], [1], [0, 0, 1, 1], [], []>} : vector<16x128xbf16>, vector<128x128xbf16>, vector<16x128xf32> -> vector<16x128xf32>
    %145 = vector.broadcast %8 : vector<1x128xf32> to vector<16x128xf32>
    %146 = arith.addf %144, %145 : vector<16x128xf32>
    %c0_51 = arith.constant 0 : index
    %c0_52 = arith.constant 0 : index
    %c0_53 = arith.constant 0 : index
    %147 = vector.load %arg8[%c0_51, %c0_52, %c0_53] : memref<1x16x128xf32, #tpu.memory_space<vmem>>, vector<1x16x128xf32>
    %148 = vector.shape_cast %147 : vector<1x16x128xf32> to vector<16x128xf32>
    %149 = vector.shape_cast %146 : vector<16x128xf32> to vector<1x16x128xf32>
    tpu.vector_store %arg8[%c0_51, %c0_52, %c0_53], %149 {strides = array<i32>} : memref<1x16x128xf32, #tpu.memory_space<vmem>>, vector<1x16x128xf32>,
    %150 = vector.extract_strided_slice %146 {offsets = [0, 0], sizes = [16, 8], strides = [1, 1]} : vector<16x128xf32> to vector<16x8xf32>
    %cst_54 = arith.constant dense<0.000000e+00> : vector<8x16xf32>
    %151 = tpu.matmul %19, %150, %cst_54 {dimension_numbers = #tpu.dot_dimension_numbers<[1], [1], [0], [0], [0, 0, 1, 0], [], []>} : vector<8x8xf32>, vector<16x8xf32>, vector<8x16xf32> -> vector<8x16xf32>
    %c0_55 = arith.constant 0 : index
    %c0_56 = arith.constant 0 : index
    %c0_57 = arith.constant 0 : index
    %152 = vector.load %arg3[%c0_55, %c0_56, %c0_57] : memref<1x16x1xi32, #tpu.memory_space<vmem>>, vector<1x16x1xi32>
    %153 = vector.shape_cast %152 : vector<1x16x1xi32> to vector<16x1xi32>
    %154 = vector.broadcast %153 : vector<16x1xi32> to vector<16x8xi32>
    %155 = arith.cmpi eq, %32, %154 : vector<16x8xi32>
    %156 = arith.extui %155 : vector<16x8xi1> to vector<16x8xi32>
    %157 = arith.sitofp %156 : vector<16x8xi32> to vector<16x8xf32>
    %158 = arith.mulf %150, %157 : vector<16x8xf32>
    %159 = vector.broadcast %41 : vector<16x1xf32> to vector<16x8xf32>
    %160 = arith.mulf %158, %159 : vector<16x8xf32>
    %cst_58 = arith.constant dense<0.000000e+00> : vector<16xf32>
    %161 = vector.multi_reduction <add>, %160, %cst_58 [1] : vector<16x8xf32> to vector<16xf32>
    %162 = vector.shape_cast %161 : vector<16xf32> to vector<16x1xf32>
    %cst_59 = arith.constant dense<0.000000e+00> : vector<1xf32>
    %163 = vector.multi_reduction <add>, %162, %cst_59 [0] : vector<16x1xf32> to vector<1xf32>
    %164 = vector.shape_cast %163 : vector<1xf32> to vector<1x1xf32>
    %cst_60 = arith.constant dense<0.000000e+00> : vector<16x8xf32>
    %165 = tpu.matmul %157, %12, %cst_60 {dimension_numbers = #tpu.dot_dimension_numbers<[1], [0], [0], [1], [0, 0, 1, 1], [], []>} : vector<16x8xf32>, vector<8x8xf32>, vector<16x8xf32> -> vector<16x8xf32>
    %166 = vector.extract_strided_slice %165 {offsets = [0, 0], sizes = [15, 8], strides = [1, 1]} : vector<16x8xf32> to vector<15x8xf32>
    %167 = vector.extract_strided_slice %157 {offsets = [1, 0], sizes = [15, 8], strides = [1, 1]} : vector<16x8xf32> to vector<15x8xf32>
    %168 = arith.mulf %166, %167 : vector<15x8xf32>
    %cst_61 = arith.constant dense<0.000000e+00> : vector<15xf32>
    %169 = vector.multi_reduction <add>, %168, %cst_61 [1] : vector<15x8xf32> to vector<15xf32>
    %170 = vector.shape_cast %169 : vector<15xf32> to vector<15x1xf32>
    %171 = vector.extract_strided_slice %41 {offsets = [1, 0], sizes = [15, 1], strides = [1, 1]} : vector<16x1xf32> to vector<15x1xf32>
    %172 = arith.mulf %170, %171 : vector<15x1xf32>
    %cst_62 = arith.constant dense<0.000000e+00> : vector<1xf32>
    %173 = vector.multi_reduction <add>, %172, %cst_62 [0] : vector<15x1xf32> to vector<1xf32>
    %174 = vector.shape_cast %173 : vector<1xf32> to vector<1x1xf32>
    %175 = vector.extract_strided_slice %157 {offsets = [0, 0], sizes = [1, 8], strides = [1, 1]} : vector<16x8xf32> to vector<1x8xf32>
    %176 = arith.mulf %10, %175 : vector<1x8xf32>
    %cst_63 = arith.constant dense<0.000000e+00> : vector<1xf32>
    %177 = vector.multi_reduction <add>, %176, %cst_63 [1] : vector<1x8xf32> to vector<1xf32>
    %178 = vector.shape_cast %177 : vector<1xf32> to vector<1x1xf32>
    %179 = vector.broadcast %2 : i32 to vector<16x1xi32>
    %180 = arith.cmpi eq, %31, %179 : vector<16x1xi32>
    %181 = arith.extui %180 : vector<16x1xi1> to vector<16x1xi32>
    %182 = arith.sitofp %181 : vector<16x1xi32> to vector<16x1xf32>
    %183 = vector.broadcast %182 : vector<16x1xf32> to vector<16x8xf32>
    %184 = arith.mulf %157, %183 : vector<16x8xf32>
    %cst_64 = arith.constant dense<0.000000e+00> : vector<8xf32>
    %185 = vector.multi_reduction <add>, %184, %cst_64 [0] : vector<16x8xf32> to vector<8xf32>
    %186 = vector.shape_cast %185 : vector<8xf32> to vector<1x8xf32>
    %187 = arith.mulf %11, %186 : vector<1x8xf32>
    %cst_65 = arith.constant dense<0.000000e+00> : vector<1xf32>
    %188 = vector.multi_reduction <add>, %187, %cst_65 [1] : vector<1x8xf32> to vector<1xf32>
    %189 = vector.shape_cast %188 : vector<1xf32> to vector<1x1xf32>
    %190 = arith.addf %164, %174 : vector<1x1xf32>
    %191 = arith.addf %190, %178 : vector<1x1xf32>
    %192 = arith.addf %191, %189 : vector<1x1xf32>
    %193 = vector.extract_strided_slice %150 {offsets = [0, 0], sizes = [1, 8], strides = [1, 1]} : vector<16x8xf32> to vector<1x8xf32>
    %194 = arith.addf %10, %193 : vector<1x8xf32>
    %195 = arith.addf %10, %193 : vector<1x8xf32>
    %c1_i32_66 = arith.constant 1 : i32
    %196 = arith.cmpi sgt, %1, %c1_i32_66 : i32
    %cst_67 = arith.constant 1.000000e+00 : f32
    %cst_68 = arith.constant 0.000000e+00 : f32
    %197 = arith.select %196, %cst_67, %cst_68 : f32
    %198 = arith.select %196, %13, %23 : vector<8x8xf32>
    %199 = vector.extract_strided_slice %151 {offsets = [0, 1], sizes = [8, 1], strides = [1, 1]} : vector<8x16xf32> to vector<8x1xf32>
    %200 = vector.broadcast %197 : f32 to vector<8x1xf32>
    %201 = arith.mulf %199, %200 : vector<8x1xf32>
    %202 = vector.broadcast %194 : vector<1x8xf32> to vector<8x8xf32>
    %203 = arith.addf %198, %202 : vector<8x8xf32>
    %cst_69 = arith.constant dense<0xFF800000> : vector<8xf32>
    %204 = vector.multi_reduction <maximumf>, %203, %cst_69 [1] : vector<8x8xf32> to vector<8xf32>
    %205 = vector.shape_cast %204 : vector<8xf32> to vector<8x1xf32>
    %206 = vector.broadcast %205 : vector<8x1xf32> to vector<8x8xf32>
    %207 = arith.subf %203, %206 : vector<8x8xf32>
    %208 = math.exp %207 : vector<8x8xf32>
    %cst_70 = arith.constant dense<0.000000e+00> : vector<8xf32>
    %209 = vector.multi_reduction <add>, %208, %cst_70 [1] : vector<8x8xf32> to vector<8xf32>
    %210 = vector.shape_cast %209 : vector<8xf32> to vector<8x1xf32>
    %211 = math.log %210 : vector<8x1xf32>
    %212 = arith.addf %205, %211 : vector<8x1xf32>
    %213 = arith.addf %212, %201 : vector<8x1xf32>
    %214 = vector.broadcast %195 : vector<1x8xf32> to vector<8x8xf32>
    %215 = arith.addf %198, %214 : vector<8x8xf32>
    %cst_71 = arith.constant dense<0xFF800000> : vector<8xf32>
    %216 = vector.multi_reduction <maximumf>, %215, %cst_71 [1] : vector<8x8xf32> to vector<8xf32>
    %217 = vector.shape_cast %216 : vector<8xf32> to vector<8x1xf32>
    %218 = vector.broadcast %217 : vector<8x1xf32> to vector<8x8xf32>
    %219 = arith.cmpf oeq, %215, %218 : vector<8x8xf32>
    %cst_72 = arith.constant 8.000000e+00 : f32
    %220 = vector.broadcast %cst_72 : f32 to vector<8x8xf32>
    %221 = arith.select %219, %24, %220 : vector<8x8xi1>, vector<8x8xf32>
    %cst_73 = arith.constant dense<0x7F800000> : vector<8xf32>
    %222 = vector.multi_reduction <minimumf>, %221, %cst_73 [1] : vector<8x8xf32> to vector<8xf32>
    %223 = vector.shape_cast %222 : vector<8xf32> to vector<8x1xf32>
    %224 = arith.addf %217, %201 : vector<8x1xf32>
    %c2_i32 = arith.constant 2 : i32
    %225 = arith.cmpi sgt, %1, %c2_i32 : i32
    %cst_74 = arith.constant 1.000000e+00 : f32
    %cst_75 = arith.constant 0.000000e+00 : f32
    %226 = arith.select %225, %cst_74, %cst_75 : f32
    %227 = arith.select %225, %12, %23 : vector<8x8xf32>
    %228 = vector.extract_strided_slice %150 {offsets = [2, 0], sizes = [1, 8], strides = [1, 1]} : vector<16x8xf32> to vector<1x8xf32>
    %229 = vector.broadcast %226 : f32 to vector<1x8xf32>
    %230 = arith.mulf %228, %229 : vector<1x8xf32>
    %231 = vector.broadcast %213 : vector<8x1xf32> to vector<8x8xf32>
    %232 = arith.addf %227, %231 : vector<8x8xf32>
    %cst_76 = arith.constant dense<0xFF800000> : vector<8xf32>
    %233 = vector.multi_reduction <maximumf>, %232, %cst_76 [0] : vector<8x8xf32> to vector<8xf32>
    %234 = vector.shape_cast %233 : vector<8xf32> to vector<1x8xf32>
    %235 = vector.broadcast %234 : vector<1x8xf32> to vector<8x8xf32>
    %236 = arith.subf %232, %235 : vector<8x8xf32>
    %237 = math.exp %236 : vector<8x8xf32>
    %cst_77 = arith.constant dense<0.000000e+00> : vector<8xf32>
    %238 = vector.multi_reduction <add>, %237, %cst_77 [0] : vector<8x8xf32> to vector<8xf32>
    %239 = vector.shape_cast %238 : vector<8xf32> to vector<1x8xf32>
    %240 = math.log %239 : vector<1x8xf32>
    %241 = arith.addf %234, %240 : vector<1x8xf32>
    %242 = arith.addf %241, %230 : vector<1x8xf32>
    %243 = vector.broadcast %224 : vector<8x1xf32> to vector<8x8xf32>
    %244 = arith.addf %227, %243 : vector<8x8xf32>
    %cst_78 = arith.constant dense<0xFF800000> : vector<8xf32>
    %245 = vector.multi_reduction <maximumf>, %244, %cst_78 [0] : vector<8x8xf32> to vector<8xf32>
    %246 = vector.shape_cast %245 : vector<8xf32> to vector<1x8xf32>
    %247 = vector.broadcast %246 : vector<1x8xf32> to vector<8x8xf32>
    %248 = arith.cmpf oeq, %244, %247 : vector<8x8xf32>
    %cst_79 = arith.constant 8.000000e+00 : f32
    %249 = vector.broadcast %cst_79 : f32 to vector<8x8xf32>
    %250 = arith.select %248, %25, %249 : vector<8x8xi1>, vector<8x8xf32>
    %cst_80 = arith.constant dense<0x7F800000> : vector<8xf32>
    %251 = vector.multi_reduction <minimumf>, %250, %cst_80 [0] : vector<8x8xf32> to vector<8xf32>
    %252 = vector.shape_cast %251 : vector<8xf32> to vector<1x8xf32>
    %253 = arith.addf %246, %230 : vector<1x8xf32>
    %c3_i32 = arith.constant 3 : i32
    %254 = arith.cmpi sgt, %1, %c3_i32 : i32
    %cst_81 = arith.constant 1.000000e+00 : f32
    %cst_82 = arith.constant 0.000000e+00 : f32
    %255 = arith.select %254, %cst_81, %cst_82 : f32
    %256 = arith.select %254, %13, %23 : vector<8x8xf32>
    %257 = vector.extract_strided_slice %151 {offsets = [0, 3], sizes = [8, 1], strides = [1, 1]} : vector<8x16xf32> to vector<8x1xf32>
    %258 = vector.broadcast %255 : f32 to vector<8x1xf32>
    %259 = arith.mulf %257, %258 : vector<8x1xf32>
    %260 = vector.broadcast %242 : vector<1x8xf32> to vector<8x8xf32>
    %261 = arith.addf %256, %260 : vector<8x8xf32>
    %cst_83 = arith.constant dense<0xFF800000> : vector<8xf32>
    %262 = vector.multi_reduction <maximumf>, %261, %cst_83 [1] : vector<8x8xf32> to vector<8xf32>
    %263 = vector.shape_cast %262 : vector<8xf32> to vector<8x1xf32>
    %264 = vector.broadcast %263 : vector<8x1xf32> to vector<8x8xf32>
    %265 = arith.subf %261, %264 : vector<8x8xf32>
    %266 = math.exp %265 : vector<8x8xf32>
    %cst_84 = arith.constant dense<0.000000e+00> : vector<8xf32>
    %267 = vector.multi_reduction <add>, %266, %cst_84 [1] : vector<8x8xf32> to vector<8xf32>
    %268 = vector.shape_cast %267 : vector<8xf32> to vector<8x1xf32>
    %269 = math.log %268 : vector<8x1xf32>
    %270 = arith.addf %263, %269 : vector<8x1xf32>
    %271 = arith.addf %270, %259 : vector<8x1xf32>
    %272 = vector.broadcast %253 : vector<1x8xf32> to vector<8x8xf32>
    %273 = arith.addf %256, %272 : vector<8x8xf32>
    %cst_85 = arith.constant dense<0xFF800000> : vector<8xf32>
    %274 = vector.multi_reduction <maximumf>, %273, %cst_85 [1] : vector<8x8xf32> to vector<8xf32>
    %275 = vector.shape_cast %274 : vector<8xf32> to vector<8x1xf32>
    %276 = vector.broadcast %275 : vector<8x1xf32> to vector<8x8xf32>
    %277 = arith.cmpf oeq, %273, %276 : vector<8x8xf32>
    %cst_86 = arith.constant 8.000000e+00 : f32
    %278 = vector.broadcast %cst_86 : f32 to vector<8x8xf32>
    %279 = arith.select %277, %24, %278 : vector<8x8xi1>, vector<8x8xf32>
    %cst_87 = arith.constant dense<0x7F800000> : vector<8xf32>
    %280 = vector.multi_reduction <minimumf>, %279, %cst_87 [1] : vector<8x8xf32> to vector<8xf32>
    %281 = vector.shape_cast %280 : vector<8xf32> to vector<8x1xf32>
    %282 = arith.addf %275, %259 : vector<8x1xf32>
    %c4_i32 = arith.constant 4 : i32
    %283 = arith.cmpi sgt, %1, %c4_i32 : i32
    %cst_88 = arith.constant 1.000000e+00 : f32
    %cst_89 = arith.constant 0.000000e+00 : f32
    %284 = arith.select %283, %cst_88, %cst_89 : f32
    %285 = arith.select %283, %12, %23 : vector<8x8xf32>
    %286 = vector.extract_strided_slice %150 {offsets = [4, 0], sizes = [1, 8], strides = [1, 1]} : vector<16x8xf32> to vector<1x8xf32>
    %287 = vector.broadcast %284 : f32 to vector<1x8xf32>
    %288 = arith.mulf %286, %287 : vector<1x8xf32>
    %289 = vector.broadcast %271 : vector<8x1xf32> to vector<8x8xf32>
    %290 = arith.addf %285, %289 : vector<8x8xf32>
    %cst_90 = arith.constant dense<0xFF800000> : vector<8xf32>
    %291 = vector.multi_reduction <maximumf>, %290, %cst_90 [0] : vector<8x8xf32> to vector<8xf32>
    %292 = vector.shape_cast %291 : vector<8xf32> to vector<1x8xf32>
    %293 = vector.broadcast %292 : vector<1x8xf32> to vector<8x8xf32>
    %294 = arith.subf %290, %293 : vector<8x8xf32>
    %295 = math.exp %294 : vector<8x8xf32>
    %cst_91 = arith.constant dense<0.000000e+00> : vector<8xf32>
    %296 = vector.multi_reduction <add>, %295, %cst_91 [0] : vector<8x8xf32> to vector<8xf32>
    %297 = vector.shape_cast %296 : vector<8xf32> to vector<1x8xf32>
    %298 = math.log %297 : vector<1x8xf32>
    %299 = arith.addf %292, %298 : vector<1x8xf32>
    %300 = arith.addf %299, %288 : vector<1x8xf32>
    %301 = vector.broadcast %282 : vector<8x1xf32> to vector<8x8xf32>
    %302 = arith.addf %285, %301 : vector<8x8xf32>
    %cst_92 = arith.constant dense<0xFF800000> : vector<8xf32>
    %303 = vector.multi_reduction <maximumf>, %302, %cst_92 [0] : vector<8x8xf32> to vector<8xf32>
    %304 = vector.shape_cast %303 : vector<8xf32> to vector<1x8xf32>
    %305 = vector.broadcast %304 : vector<1x8xf32> to vector<8x8xf32>
    %306 = arith.cmpf oeq, %302, %305 : vector<8x8xf32>
    %cst_93 = arith.constant 8.000000e+00 : f32
    %307 = vector.broadcast %cst_93 : f32 to vector<8x8xf32>
    %308 = arith.select %306, %25, %307 : vector<8x8xi1>, vector<8x8xf32>
    %cst_94 = arith.constant dense<0x7F800000> : vector<8xf32>
    %309 = vector.multi_reduction <minimumf>, %308, %cst_94 [0] : vector<8x8xf32> to vector<8xf32>
    %310 = vector.shape_cast %309 : vector<8xf32> to vector<1x8xf32>
    %311 = arith.addf %304, %288 : vector<1x8xf32>
    %c5_i32 = arith.constant 5 : i32
    %312 = arith.cmpi sgt, %1, %c5_i32 : i32
    %cst_95 = arith.constant 1.000000e+00 : f32
    %cst_96 = arith.constant 0.000000e+00 : f32
    %313 = arith.select %312, %cst_95, %cst_96 : f32
    %314 = arith.select %312, %13, %23 : vector<8x8xf32>
    %315 = vector.extract_strided_slice %151 {offsets = [0, 5], sizes = [8, 1], strides = [1, 1]} : vector<8x16xf32> to vector<8x1xf32>
    %316 = vector.broadcast %313 : f32 to vector<8x1xf32>
    %317 = arith.mulf %315, %316 : vector<8x1xf32>
    %318 = vector.broadcast %300 : vector<1x8xf32> to vector<8x8xf32>
    %319 = arith.addf %314, %318 : vector<8x8xf32>
    %cst_97 = arith.constant dense<0xFF800000> : vector<8xf32>
    %320 = vector.multi_reduction <maximumf>, %319, %cst_97 [1] : vector<8x8xf32> to vector<8xf32>
    %321 = vector.shape_cast %320 : vector<8xf32> to vector<8x1xf32>
    %322 = vector.broadcast %321 : vector<8x1xf32> to vector<8x8xf32>
    %323 = arith.subf %319, %322 : vector<8x8xf32>
    %324 = math.exp %323 : vector<8x8xf32>
    %cst_98 = arith.constant dense<0.000000e+00> : vector<8xf32>
    %325 = vector.multi_reduction <add>, %324, %cst_98 [1] : vector<8x8xf32> to vector<8xf32>
    %326 = vector.shape_cast %325 : vector<8xf32> to vector<8x1xf32>
    %327 = math.log %326 : vector<8x1xf32>
    %328 = arith.addf %321, %327 : vector<8x1xf32>
    %329 = arith.addf %328, %317 : vector<8x1xf32>
    %330 = vector.broadcast %311 : vector<1x8xf32> to vector<8x8xf32>
    %331 = arith.addf %314, %330 : vector<8x8xf32>
    %cst_99 = arith.constant dense<0xFF800000> : vector<8xf32>
    %332 = vector.multi_reduction <maximumf>, %331, %cst_99 [1] : vector<8x8xf32> to vector<8xf32>
    %333 = vector.shape_cast %332 : vector<8xf32> to vector<8x1xf32>
    %334 = vector.broadcast %333 : vector<8x1xf32> to vector<8x8xf32>
    %335 = arith.cmpf oeq, %331, %334 : vector<8x8xf32>
    %cst_100 = arith.constant 8.000000e+00 : f32
    %336 = vector.broadcast %cst_100 : f32 to vector<8x8xf32>
    %337 = arith.select %335, %24, %336 : vector<8x8xi1>, vector<8x8xf32>
    %cst_101 = arith.constant dense<0x7F800000> : vector<8xf32>
    %338 = vector.multi_reduction <minimumf>, %337, %cst_101 [1] : vector<8x8xf32> to vector<8xf32>
    %339 = vector.shape_cast %338 : vector<8xf32> to vector<8x1xf32>
    %340 = arith.addf %333, %317 : vector<8x1xf32>
    %c6_i32 = arith.constant 6 : i32
    %341 = arith.cmpi sgt, %1, %c6_i32 : i32
    %cst_102 = arith.constant 1.000000e+00 : f32
    %cst_103 = arith.constant 0.000000e+00 : f32
    %342 = arith.select %341, %cst_102, %cst_103 : f32
    %343 = arith.select %341, %12, %23 : vector<8x8xf32>
    %344 = vector.extract_strided_slice %150 {offsets = [6, 0], sizes = [1, 8], strides = [1, 1]} : vector<16x8xf32> to vector<1x8xf32>
    %345 = vector.broadcast %342 : f32 to vector<1x8xf32>
    %346 = arith.mulf %344, %345 : vector<1x8xf32>
    %347 = vector.broadcast %329 : vector<8x1xf32> to vector<8x8xf32>
    %348 = arith.addf %343, %347 : vector<8x8xf32>
    %cst_104 = arith.constant dense<0xFF800000> : vector<8xf32>
    %349 = vector.multi_reduction <maximumf>, %348, %cst_104 [0] : vector<8x8xf32> to vector<8xf32>
    %350 = vector.shape_cast %349 : vector<8xf32> to vector<1x8xf32>
    %351 = vector.broadcast %350 : vector<1x8xf32> to vector<8x8xf32>
    %352 = arith.subf %348, %351 : vector<8x8xf32>
    %353 = math.exp %352 : vector<8x8xf32>
    %cst_105 = arith.constant dense<0.000000e+00> : vector<8xf32>
    %354 = vector.multi_reduction <add>, %353, %cst_105 [0] : vector<8x8xf32> to vector<8xf32>
    %355 = vector.shape_cast %354 : vector<8xf32> to vector<1x8xf32>
    %356 = math.log %355 : vector<1x8xf32>
    %357 = arith.addf %350, %356 : vector<1x8xf32>
    %358 = arith.addf %357, %346 : vector<1x8xf32>
    %359 = vector.broadcast %340 : vector<8x1xf32> to vector<8x8xf32>
    %360 = arith.addf %343, %359 : vector<8x8xf32>
    %cst_106 = arith.constant dense<0xFF800000> : vector<8xf32>
    %361 = vector.multi_reduction <maximumf>, %360, %cst_106 [0] : vector<8x8xf32> to vector<8xf32>
    %362 = vector.shape_cast %361 : vector<8xf32> to vector<1x8xf32>
    %363 = vector.broadcast %362 : vector<1x8xf32> to vector<8x8xf32>
    %364 = arith.cmpf oeq, %360, %363 : vector<8x8xf32>
    %cst_107 = arith.constant 8.000000e+00 : f32
    %365 = vector.broadcast %cst_107 : f32 to vector<8x8xf32>
    %366 = arith.select %364, %25, %365 : vector<8x8xi1>, vector<8x8xf32>
    %cst_108 = arith.constant dense<0x7F800000> : vector<8xf32>
    %367 = vector.multi_reduction <minimumf>, %366, %cst_108 [0] : vector<8x8xf32> to vector<8xf32>
    %368 = vector.shape_cast %367 : vector<8xf32> to vector<1x8xf32>
    %369 = arith.addf %362, %346 : vector<1x8xf32>
    %c7_i32 = arith.constant 7 : i32
    %370 = arith.cmpi sgt, %1, %c7_i32 : i32
    %cst_109 = arith.constant 1.000000e+00 : f32
    %cst_110 = arith.constant 0.000000e+00 : f32
    %371 = arith.select %370, %cst_109, %cst_110 : f32
    %372 = arith.select %370, %13, %23 : vector<8x8xf32>
    %373 = vector.extract_strided_slice %151 {offsets = [0, 7], sizes = [8, 1], strides = [1, 1]} : vector<8x16xf32> to vector<8x1xf32>
    %374 = vector.broadcast %371 : f32 to vector<8x1xf32>
    %375 = arith.mulf %373, %374 : vector<8x1xf32>
    %376 = vector.broadcast %358 : vector<1x8xf32> to vector<8x8xf32>
    %377 = arith.addf %372, %376 : vector<8x8xf32>
    %cst_111 = arith.constant dense<0xFF800000> : vector<8xf32>
    %378 = vector.multi_reduction <maximumf>, %377, %cst_111 [1] : vector<8x8xf32> to vector<8xf32>
    %379 = vector.shape_cast %378 : vector<8xf32> to vector<8x1xf32>
    %380 = vector.broadcast %379 : vector<8x1xf32> to vector<8x8xf32>
    %381 = arith.subf %377, %380 : vector<8x8xf32>
    %382 = math.exp %381 : vector<8x8xf32>
    %cst_112 = arith.constant dense<0.000000e+00> : vector<8xf32>
    %383 = vector.multi_reduction <add>, %382, %cst_112 [1] : vector<8x8xf32> to vector<8xf32>
    %384 = vector.shape_cast %383 : vector<8xf32> to vector<8x1xf32>
    %385 = math.log %384 : vector<8x1xf32>
    %386 = arith.addf %379, %385 : vector<8x1xf32>
    %387 = arith.addf %386, %375 : vector<8x1xf32>
    %388 = vector.broadcast %369 : vector<1x8xf32> to vector<8x8xf32>
    %389 = arith.addf %372, %388 : vector<8x8xf32>
    %cst_113 = arith.constant dense<0xFF800000> : vector<8xf32>
    %390 = vector.multi_reduction <maximumf>, %389, %cst_113 [1] : vector<8x8xf32> to vector<8xf32>
    %391 = vector.shape_cast %390 : vector<8xf32> to vector<8x1xf32>
    %392 = vector.broadcast %391 : vector<8x1xf32> to vector<8x8xf32>
    %393 = arith.cmpf oeq, %389, %392 : vector<8x8xf32>
    %cst_114 = arith.constant 8.000000e+00 : f32
    %394 = vector.broadcast %cst_114 : f32 to vector<8x8xf32>
    %395 = arith.select %393, %24, %394 : vector<8x8xi1>, vector<8x8xf32>
    %cst_115 = arith.constant dense<0x7F800000> : vector<8xf32>
    %396 = vector.multi_reduction <minimumf>, %395, %cst_115 [1] : vector<8x8xf32> to vector<8xf32>
    %397 = vector.shape_cast %396 : vector<8xf32> to vector<8x1xf32>
    %398 = arith.addf %391, %375 : vector<8x1xf32>
    %c8_i32 = arith.constant 8 : i32
    %399 = arith.cmpi sgt, %1, %c8_i32 : i32
    %cst_116 = arith.constant 1.000000e+00 : f32
    %cst_117 = arith.constant 0.000000e+00 : f32
    %400 = arith.select %399, %cst_116, %cst_117 : f32
    %401 = arith.select %399, %12, %23 : vector<8x8xf32>
    %402 = vector.extract_strided_slice %150 {offsets = [8, 0], sizes = [1, 8], strides = [1, 1]} : vector<16x8xf32> to vector<1x8xf32>
    %403 = vector.broadcast %400 : f32 to vector<1x8xf32>
    %404 = arith.mulf %402, %403 : vector<1x8xf32>
    %405 = vector.broadcast %387 : vector<8x1xf32> to vector<8x8xf32>
    %406 = arith.addf %401, %405 : vector<8x8xf32>
    %cst_118 = arith.constant dense<0xFF800000> : vector<8xf32>
    %407 = vector.multi_reduction <maximumf>, %406, %cst_118 [0] : vector<8x8xf32> to vector<8xf32>
    %408 = vector.shape_cast %407 : vector<8xf32> to vector<1x8xf32>
    %409 = vector.broadcast %408 : vector<1x8xf32> to vector<8x8xf32>
    %410 = arith.subf %406, %409 : vector<8x8xf32>
    %411 = math.exp %410 : vector<8x8xf32>
    %cst_119 = arith.constant dense<0.000000e+00> : vector<8xf32>
    %412 = vector.multi_reduction <add>, %411, %cst_119 [0] : vector<8x8xf32> to vector<8xf32>
    %413 = vector.shape_cast %412 : vector<8xf32> to vector<1x8xf32>
    %414 = math.log %413 : vector<1x8xf32>
    %415 = arith.addf %408, %414 : vector<1x8xf32>
    %416 = arith.addf %415, %404 : vector<1x8xf32>
    %417 = vector.broadcast %398 : vector<8x1xf32> to vector<8x8xf32>
    %418 = arith.addf %401, %417 : vector<8x8xf32>
    %cst_120 = arith.constant dense<0xFF800000> : vector<8xf32>
    %419 = vector.multi_reduction <maximumf>, %418, %cst_120 [0] : vector<8x8xf32> to vector<8xf32>
    %420 = vector.shape_cast %419 : vector<8xf32> to vector<1x8xf32>
    %421 = vector.broadcast %420 : vector<1x8xf32> to vector<8x8xf32>
    %422 = arith.cmpf oeq, %418, %421 : vector<8x8xf32>
    %cst_121 = arith.constant 8.000000e+00 : f32
    %423 = vector.broadcast %cst_121 : f32 to vector<8x8xf32>
    %424 = arith.select %422, %25, %423 : vector<8x8xi1>, vector<8x8xf32>
    %cst_122 = arith.constant dense<0x7F800000> : vector<8xf32>
    %425 = vector.multi_reduction <minimumf>, %424, %cst_122 [0] : vector<8x8xf32> to vector<8xf32>
    %426 = vector.shape_cast %425 : vector<8xf32> to vector<1x8xf32>
    %427 = arith.addf %420, %404 : vector<1x8xf32>
    %c9_i32 = arith.constant 9 : i32
    %428 = arith.cmpi sgt, %1, %c9_i32 : i32
    %cst_123 = arith.constant 1.000000e+00 : f32
    %cst_124 = arith.constant 0.000000e+00 : f32
    %429 = arith.select %428, %cst_123, %cst_124 : f32
    %430 = arith.select %428, %13, %23 : vector<8x8xf32>
    %431 = vector.extract_strided_slice %151 {offsets = [0, 9], sizes = [8, 1], strides = [1, 1]} : vector<8x16xf32> to vector<8x1xf32>
    %432 = vector.broadcast %429 : f32 to vector<8x1xf32>
    %433 = arith.mulf %431, %432 : vector<8x1xf32>
    %434 = vector.broadcast %416 : vector<1x8xf32> to vector<8x8xf32>
    %435 = arith.addf %430, %434 : vector<8x8xf32>
    %cst_125 = arith.constant dense<0xFF800000> : vector<8xf32>
    %436 = vector.multi_reduction <maximumf>, %435, %cst_125 [1] : vector<8x8xf32> to vector<8xf32>
    %437 = vector.shape_cast %436 : vector<8xf32> to vector<8x1xf32>
    %438 = vector.broadcast %437 : vector<8x1xf32> to vector<8x8xf32>
    %439 = arith.subf %435, %438 : vector<8x8xf32>
    %440 = math.exp %439 : vector<8x8xf32>
    %cst_126 = arith.constant dense<0.000000e+00> : vector<8xf32>
    %441 = vector.multi_reduction <add>, %440, %cst_126 [1] : vector<8x8xf32> to vector<8xf32>
    %442 = vector.shape_cast %441 : vector<8xf32> to vector<8x1xf32>
    %443 = math.log %442 : vector<8x1xf32>
    %444 = arith.addf %437, %443 : vector<8x1xf32>
    %445 = arith.addf %444, %433 : vector<8x1xf32>
    %446 = vector.broadcast %427 : vector<1x8xf32> to vector<8x8xf32>
    %447 = arith.addf %430, %446 : vector<8x8xf32>
    %cst_127 = arith.constant dense<0xFF800000> : vector<8xf32>
    %448 = vector.multi_reduction <maximumf>, %447, %cst_127 [1] : vector<8x8xf32> to vector<8xf32>
    %449 = vector.shape_cast %448 : vector<8xf32> to vector<8x1xf32>
    %450 = vector.broadcast %449 : vector<8x1xf32> to vector<8x8xf32>
    %451 = arith.cmpf oeq, %447, %450 : vector<8x8xf32>
    %cst_128 = arith.constant 8.000000e+00 : f32
    %452 = vector.broadcast %cst_128 : f32 to vector<8x8xf32>
    %453 = arith.select %451, %24, %452 : vector<8x8xi1>, vector<8x8xf32>
    %cst_129 = arith.constant dense<0x7F800000> : vector<8xf32>
    %454 = vector.multi_reduction <minimumf>, %453, %cst_129 [1] : vector<8x8xf32> to vector<8xf32>
    %455 = vector.shape_cast %454 : vector<8xf32> to vector<8x1xf32>
    %456 = arith.addf %449, %433 : vector<8x1xf32>
    %c10_i32 = arith.constant 10 : i32
    %457 = arith.cmpi sgt, %1, %c10_i32 : i32
    %cst_130 = arith.constant 1.000000e+00 : f32
    %cst_131 = arith.constant 0.000000e+00 : f32
    %458 = arith.select %457, %cst_130, %cst_131 : f32
    %459 = arith.select %457, %12, %23 : vector<8x8xf32>
    %460 = vector.extract_strided_slice %150 {offsets = [10, 0], sizes = [1, 8], strides = [1, 1]} : vector<16x8xf32> to vector<1x8xf32>
    %461 = vector.broadcast %458 : f32 to vector<1x8xf32>
    %462 = arith.mulf %460, %461 : vector<1x8xf32>
    %463 = vector.broadcast %445 : vector<8x1xf32> to vector<8x8xf32>
    %464 = arith.addf %459, %463 : vector<8x8xf32>
    %cst_132 = arith.constant dense<0xFF800000> : vector<8xf32>
    %465 = vector.multi_reduction <maximumf>, %464, %cst_132 [0] : vector<8x8xf32> to vector<8xf32>
    %466 = vector.shape_cast %465 : vector<8xf32> to vector<1x8xf32>
    %467 = vector.broadcast %466 : vector<1x8xf32> to vector<8x8xf32>
    %468 = arith.subf %464, %467 : vector<8x8xf32>
    %469 = math.exp %468 : vector<8x8xf32>
    %cst_133 = arith.constant dense<0.000000e+00> : vector<8xf32>
    %470 = vector.multi_reduction <add>, %469, %cst_133 [0] : vector<8x8xf32> to vector<8xf32>
    %471 = vector.shape_cast %470 : vector<8xf32> to vector<1x8xf32>
    %472 = math.log %471 : vector<1x8xf32>
    %473 = arith.addf %466, %472 : vector<1x8xf32>
    %474 = arith.addf %473, %462 : vector<1x8xf32>
    %475 = vector.broadcast %456 : vector<8x1xf32> to vector<8x8xf32>
    %476 = arith.addf %459, %475 : vector<8x8xf32>
    %cst_134 = arith.constant dense<0xFF800000> : vector<8xf32>
    %477 = vector.multi_reduction <maximumf>, %476, %cst_134 [0] : vector<8x8xf32> to vector<8xf32>
    %478 = vector.shape_cast %477 : vector<8xf32> to vector<1x8xf32>
    %479 = vector.broadcast %478 : vector<1x8xf32> to vector<8x8xf32>
    %480 = arith.cmpf oeq, %476, %479 : vector<8x8xf32>
    %cst_135 = arith.constant 8.000000e+00 : f32
    %481 = vector.broadcast %cst_135 : f32 to vector<8x8xf32>
    %482 = arith.select %480, %25, %481 : vector<8x8xi1>, vector<8x8xf32>
    %cst_136 = arith.constant dense<0x7F800000> : vector<8xf32>
    %483 = vector.multi_reduction <minimumf>, %482, %cst_136 [0] : vector<8x8xf32> to vector<8xf32>
    %484 = vector.shape_cast %483 : vector<8xf32> to vector<1x8xf32>
    %485 = arith.addf %478, %462 : vector<1x8xf32>
    %c11_i32 = arith.constant 11 : i32
    %486 = arith.cmpi sgt, %1, %c11_i32 : i32
    %cst_137 = arith.constant 1.000000e+00 : f32
    %cst_138 = arith.constant 0.000000e+00 : f32
    %487 = arith.select %486, %cst_137, %cst_138 : f32
    %488 = arith.select %486, %13, %23 : vector<8x8xf32>
    %489 = vector.extract_strided_slice %151 {offsets = [0, 11], sizes = [8, 1], strides = [1, 1]} : vector<8x16xf32> to vector<8x1xf32>
    %490 = vector.broadcast %487 : f32 to vector<8x1xf32>
    %491 = arith.mulf %489, %490 : vector<8x1xf32>
    %492 = vector.broadcast %474 : vector<1x8xf32> to vector<8x8xf32>
    %493 = arith.addf %488, %492 : vector<8x8xf32>
    %cst_139 = arith.constant dense<0xFF800000> : vector<8xf32>
    %494 = vector.multi_reduction <maximumf>, %493, %cst_139 [1] : vector<8x8xf32> to vector<8xf32>
    %495 = vector.shape_cast %494 : vector<8xf32> to vector<8x1xf32>
    %496 = vector.broadcast %495 : vector<8x1xf32> to vector<8x8xf32>
    %497 = arith.subf %493, %496 : vector<8x8xf32>
    %498 = math.exp %497 : vector<8x8xf32>
    %cst_140 = arith.constant dense<0.000000e+00> : vector<8xf32>
    %499 = vector.multi_reduction <add>, %498, %cst_140 [1] : vector<8x8xf32> to vector<8xf32>
    %500 = vector.shape_cast %499 : vector<8xf32> to vector<8x1xf32>
    %501 = math.log %500 : vector<8x1xf32>
    %502 = arith.addf %495, %501 : vector<8x1xf32>
    %503 = arith.addf %502, %491 : vector<8x1xf32>
    %504 = vector.broadcast %485 : vector<1x8xf32> to vector<8x8xf32>
    %505 = arith.addf %488, %504 : vector<8x8xf32>
    %cst_141 = arith.constant dense<0xFF800000> : vector<8xf32>
    %506 = vector.multi_reduction <maximumf>, %505, %cst_141 [1] : vector<8x8xf32> to vector<8xf32>
    %507 = vector.shape_cast %506 : vector<8xf32> to vector<8x1xf32>
    %508 = vector.broadcast %507 : vector<8x1xf32> to vector<8x8xf32>
    %509 = arith.cmpf oeq, %505, %508 : vector<8x8xf32>
    %cst_142 = arith.constant 8.000000e+00 : f32
    %510 = vector.broadcast %cst_142 : f32 to vector<8x8xf32>
    %511 = arith.select %509, %24, %510 : vector<8x8xi1>, vector<8x8xf32>
    %cst_143 = arith.constant dense<0x7F800000> : vector<8xf32>
    %512 = vector.multi_reduction <minimumf>, %511, %cst_143 [1] : vector<8x8xf32> to vector<8xf32>
    %513 = vector.shape_cast %512 : vector<8xf32> to vector<8x1xf32>
    %514 = arith.addf %507, %491 : vector<8x1xf32>
    %c12_i32 = arith.constant 12 : i32
    %515 = arith.cmpi sgt, %1, %c12_i32 : i32
    %cst_144 = arith.constant 1.000000e+00 : f32
    %cst_145 = arith.constant 0.000000e+00 : f32
    %516 = arith.select %515, %cst_144, %cst_145 : f32
    %517 = arith.select %515, %12, %23 : vector<8x8xf32>
    %518 = vector.extract_strided_slice %150 {offsets = [12, 0], sizes = [1, 8], strides = [1, 1]} : vector<16x8xf32> to vector<1x8xf32>
    %519 = vector.broadcast %516 : f32 to vector<1x8xf32>
    %520 = arith.mulf %518, %519 : vector<1x8xf32>
    %521 = vector.broadcast %503 : vector<8x1xf32> to vector<8x8xf32>
    %522 = arith.addf %517, %521 : vector<8x8xf32>
    %cst_146 = arith.constant dense<0xFF800000> : vector<8xf32>
    %523 = vector.multi_reduction <maximumf>, %522, %cst_146 [0] : vector<8x8xf32> to vector<8xf32>
    %524 = vector.shape_cast %523 : vector<8xf32> to vector<1x8xf32>
    %525 = vector.broadcast %524 : vector<1x8xf32> to vector<8x8xf32>
    %526 = arith.subf %522, %525 : vector<8x8xf32>
    %527 = math.exp %526 : vector<8x8xf32>
    %cst_147 = arith.constant dense<0.000000e+00> : vector<8xf32>
    %528 = vector.multi_reduction <add>, %527, %cst_147 [0] : vector<8x8xf32> to vector<8xf32>
    %529 = vector.shape_cast %528 : vector<8xf32> to vector<1x8xf32>
    %530 = math.log %529 : vector<1x8xf32>
    %531 = arith.addf %524, %530 : vector<1x8xf32>
    %532 = arith.addf %531, %520 : vector<1x8xf32>
    %533 = vector.broadcast %514 : vector<8x1xf32> to vector<8x8xf32>
    %534 = arith.addf %517, %533 : vector<8x8xf32>
    %cst_148 = arith.constant dense<0xFF800000> : vector<8xf32>
    %535 = vector.multi_reduction <maximumf>, %534, %cst_148 [0] : vector<8x8xf32> to vector<8xf32>
    %536 = vector.shape_cast %535 : vector<8xf32> to vector<1x8xf32>
    %537 = vector.broadcast %536 : vector<1x8xf32> to vector<8x8xf32>
    %538 = arith.cmpf oeq, %534, %537 : vector<8x8xf32>
    %cst_149 = arith.constant 8.000000e+00 : f32
    %539 = vector.broadcast %cst_149 : f32 to vector<8x8xf32>
    %540 = arith.select %538, %25, %539 : vector<8x8xi1>, vector<8x8xf32>
    %cst_150 = arith.constant dense<0x7F800000> : vector<8xf32>
    %541 = vector.multi_reduction <minimumf>, %540, %cst_150 [0] : vector<8x8xf32> to vector<8xf32>
    %542 = vector.shape_cast %541 : vector<8xf32> to vector<1x8xf32>
    %543 = arith.addf %536, %520 : vector<1x8xf32>
    %c13_i32 = arith.constant 13 : i32
    %544 = arith.cmpi sgt, %1, %c13_i32 : i32
    %cst_151 = arith.constant 1.000000e+00 : f32
    %cst_152 = arith.constant 0.000000e+00 : f32
    %545 = arith.select %544, %cst_151, %cst_152 : f32
    %546 = arith.select %544, %13, %23 : vector<8x8xf32>
    %547 = vector.extract_strided_slice %151 {offsets = [0, 13], sizes = [8, 1], strides = [1, 1]} : vector<8x16xf32> to vector<8x1xf32>
    %548 = vector.broadcast %545 : f32 to vector<8x1xf32>
    %549 = arith.mulf %547, %548 : vector<8x1xf32>
    %550 = vector.broadcast %532 : vector<1x8xf32> to vector<8x8xf32>
    %551 = arith.addf %546, %550 : vector<8x8xf32>
    %cst_153 = arith.constant dense<0xFF800000> : vector<8xf32>
    %552 = vector.multi_reduction <maximumf>, %551, %cst_153 [1] : vector<8x8xf32> to vector<8xf32>
    %553 = vector.shape_cast %552 : vector<8xf32> to vector<8x1xf32>
    %554 = vector.broadcast %553 : vector<8x1xf32> to vector<8x8xf32>
    %555 = arith.subf %551, %554 : vector<8x8xf32>
    %556 = math.exp %555 : vector<8x8xf32>
    %cst_154 = arith.constant dense<0.000000e+00> : vector<8xf32>
    %557 = vector.multi_reduction <add>, %556, %cst_154 [1] : vector<8x8xf32> to vector<8xf32>
    %558 = vector.shape_cast %557 : vector<8xf32> to vector<8x1xf32>
    %559 = math.log %558 : vector<8x1xf32>
    %560 = arith.addf %553, %559 : vector<8x1xf32>
    %561 = arith.addf %560, %549 : vector<8x1xf32>
    %562 = vector.broadcast %543 : vector<1x8xf32> to vector<8x8xf32>
    %563 = arith.addf %546, %562 : vector<8x8xf32>
    %cst_155 = arith.constant dense<0xFF800000> : vector<8xf32>
    %564 = vector.multi_reduction <maximumf>, %563, %cst_155 [1] : vector<8x8xf32> to vector<8xf32>
    %565 = vector.shape_cast %564 : vector<8xf32> to vector<8x1xf32>
    %566 = vector.broadcast %565 : vector<8x1xf32> to vector<8x8xf32>
    %567 = arith.cmpf oeq, %563, %566 : vector<8x8xf32>
    %cst_156 = arith.constant 8.000000e+00 : f32
    %568 = vector.broadcast %cst_156 : f32 to vector<8x8xf32>
    %569 = arith.select %567, %24, %568 : vector<8x8xi1>, vector<8x8xf32>
    %cst_157 = arith.constant dense<0x7F800000> : vector<8xf32>
    %570 = vector.multi_reduction <minimumf>, %569, %cst_157 [1] : vector<8x8xf32> to vector<8xf32>
    %571 = vector.shape_cast %570 : vector<8xf32> to vector<8x1xf32>
    %572 = arith.addf %565, %549 : vector<8x1xf32>
    %c14_i32 = arith.constant 14 : i32
    %573 = arith.cmpi sgt, %1, %c14_i32 : i32
    %cst_158 = arith.constant 1.000000e+00 : f32
    %cst_159 = arith.constant 0.000000e+00 : f32
    %574 = arith.select %573, %cst_158, %cst_159 : f32
    %575 = arith.select %573, %12, %23 : vector<8x8xf32>
    %576 = vector.extract_strided_slice %150 {offsets = [14, 0], sizes = [1, 8], strides = [1, 1]} : vector<16x8xf32> to vector<1x8xf32>
    %577 = vector.broadcast %574 : f32 to vector<1x8xf32>
    %578 = arith.mulf %576, %577 : vector<1x8xf32>
    %579 = vector.broadcast %561 : vector<8x1xf32> to vector<8x8xf32>
    %580 = arith.addf %575, %579 : vector<8x8xf32>
    %cst_160 = arith.constant dense<0xFF800000> : vector<8xf32>
    %581 = vector.multi_reduction <maximumf>, %580, %cst_160 [0] : vector<8x8xf32> to vector<8xf32>
    %582 = vector.shape_cast %581 : vector<8xf32> to vector<1x8xf32>
    %583 = vector.broadcast %582 : vector<1x8xf32> to vector<8x8xf32>
    %584 = arith.subf %580, %583 : vector<8x8xf32>
    %585 = math.exp %584 : vector<8x8xf32>
    %cst_161 = arith.constant dense<0.000000e+00> : vector<8xf32>
    %586 = vector.multi_reduction <add>, %585, %cst_161 [0] : vector<8x8xf32> to vector<8xf32>
    %587 = vector.shape_cast %586 : vector<8xf32> to vector<1x8xf32>
    %588 = math.log %587 : vector<1x8xf32>
    %589 = arith.addf %582, %588 : vector<1x8xf32>
    %590 = arith.addf %589, %578 : vector<1x8xf32>
    %591 = vector.broadcast %572 : vector<8x1xf32> to vector<8x8xf32>
    %592 = arith.addf %575, %591 : vector<8x8xf32>
    %cst_162 = arith.constant dense<0xFF800000> : vector<8xf32>
    %593 = vector.multi_reduction <maximumf>, %592, %cst_162 [0] : vector<8x8xf32> to vector<8xf32>
    %594 = vector.shape_cast %593 : vector<8xf32> to vector<1x8xf32>
    %595 = vector.broadcast %594 : vector<1x8xf32> to vector<8x8xf32>
    %596 = arith.cmpf oeq, %592, %595 : vector<8x8xf32>
    %cst_163 = arith.constant 8.000000e+00 : f32
    %597 = vector.broadcast %cst_163 : f32 to vector<8x8xf32>
    %598 = arith.select %596, %25, %597 : vector<8x8xi1>, vector<8x8xf32>
    %cst_164 = arith.constant dense<0x7F800000> : vector<8xf32>
    %599 = vector.multi_reduction <minimumf>, %598, %cst_164 [0] : vector<8x8xf32> to vector<8xf32>
    %600 = vector.shape_cast %599 : vector<8xf32> to vector<1x8xf32>
    %601 = arith.addf %594, %578 : vector<1x8xf32>
    %c15_i32 = arith.constant 15 : i32
    %602 = arith.cmpi sgt, %1, %c15_i32 : i32
    %cst_165 = arith.constant 1.000000e+00 : f32
    %cst_166 = arith.constant 0.000000e+00 : f32
    %603 = arith.select %602, %cst_165, %cst_166 : f32
    %604 = arith.select %602, %13, %23 : vector<8x8xf32>
    %605 = vector.extract_strided_slice %151 {offsets = [0, 15], sizes = [8, 1], strides = [1, 1]} : vector<8x16xf32> to vector<8x1xf32>
    %606 = vector.broadcast %603 : f32 to vector<8x1xf32>
    %607 = arith.mulf %605, %606 : vector<8x1xf32>
    %608 = vector.broadcast %590 : vector<1x8xf32> to vector<8x8xf32>
    %609 = arith.addf %604, %608 : vector<8x8xf32>
    %cst_167 = arith.constant dense<0xFF800000> : vector<8xf32>
    %610 = vector.multi_reduction <maximumf>, %609, %cst_167 [1] : vector<8x8xf32> to vector<8xf32>
    %611 = vector.shape_cast %610 : vector<8xf32> to vector<8x1xf32>
    %612 = vector.broadcast %611 : vector<8x1xf32> to vector<8x8xf32>
    %613 = arith.subf %609, %612 : vector<8x8xf32>
    %614 = math.exp %613 : vector<8x8xf32>
    %cst_168 = arith.constant dense<0.000000e+00> : vector<8xf32>
    %615 = vector.multi_reduction <add>, %614, %cst_168 [1] : vector<8x8xf32> to vector<8xf32>
    %616 = vector.shape_cast %615 : vector<8xf32> to vector<8x1xf32>
    %617 = math.log %616 : vector<8x1xf32>
    %618 = arith.addf %611, %617 : vector<8x1xf32>
    %619 = arith.addf %618, %607 : vector<8x1xf32>
    %620 = vector.broadcast %601 : vector<1x8xf32> to vector<8x8xf32>
    %621 = arith.addf %604, %620 : vector<8x8xf32>
    %cst_169 = arith.constant dense<0xFF800000> : vector<8xf32>
    %622 = vector.multi_reduction <maximumf>, %621, %cst_169 [1] : vector<8x8xf32> to vector<8xf32>
    %623 = vector.shape_cast %622 : vector<8xf32> to vector<8x1xf32>
    %624 = vector.broadcast %623 : vector<8x1xf32> to vector<8x8xf32>
    %625 = arith.cmpf oeq, %621, %624 : vector<8x8xf32>
    %cst_170 = arith.constant 8.000000e+00 : f32
    %626 = vector.broadcast %cst_170 : f32 to vector<8x8xf32>
    %627 = arith.select %625, %24, %626 : vector<8x8xi1>, vector<8x8xf32>
    %cst_171 = arith.constant dense<0x7F800000> : vector<8xf32>
    %628 = vector.multi_reduction <minimumf>, %627, %cst_171 [1] : vector<8x8xf32> to vector<8xf32>
    %629 = vector.shape_cast %628 : vector<8xf32> to vector<8x1xf32>
    %630 = arith.addf %623, %607 : vector<8x1xf32>
    %631 = arith.addf %619, %14 : vector<8x1xf32>
    %cst_172 = arith.constant dense<0xFF800000> : vector<1xf32>
    %632 = vector.multi_reduction <maximumf>, %631, %cst_172 [0] : vector<8x1xf32> to vector<1xf32>
    %633 = vector.shape_cast %632 : vector<1xf32> to vector<1x1xf32>
    %634 = vector.broadcast %633 : vector<1x1xf32> to vector<8x1xf32>
    %635 = arith.subf %631, %634 : vector<8x1xf32>
    %636 = math.exp %635 : vector<8x1xf32>
    %cst_173 = arith.constant dense<0.000000e+00> : vector<1xf32>
    %637 = vector.multi_reduction <add>, %636, %cst_173 [0] : vector<8x1xf32> to vector<1xf32>
    %638 = vector.shape_cast %637 : vector<1xf32> to vector<1x1xf32>
    %639 = math.log %638 : vector<1x1xf32>
    %640 = arith.addf %633, %639 : vector<1x1xf32>
    %641 = arith.addf %630, %14 : vector<8x1xf32>
    %cst_174 = arith.constant dense<0xFF800000> : vector<1xf32>
    %642 = vector.multi_reduction <maximumf>, %641, %cst_174 [0] : vector<8x1xf32> to vector<1xf32>
    %643 = vector.shape_cast %642 : vector<1xf32> to vector<1x1xf32>
    %644 = vector.broadcast %643 : vector<1x1xf32> to vector<8x1xf32>
    %645 = arith.cmpf oeq, %641, %644 : vector<8x1xf32>
    %cst_175 = arith.constant 8.000000e+00 : f32
    %646 = vector.broadcast %cst_175 : f32 to vector<8x1xf32>
    %647 = arith.select %645, %29, %646 : vector<8x1xi1>, vector<8x1xf32>
    %cst_176 = arith.constant dense<0x7F800000> : vector<1xf32>
    %648 = vector.multi_reduction <minimumf>, %647, %cst_176 [0] : vector<8x1xf32> to vector<1xf32>
    %649 = vector.shape_cast %648 : vector<1xf32> to vector<1x1xf32>
    %650 = arith.subf %192, %640 : vector<1x1xf32>
    %651 = vector.broadcast %2 : i32 to vector<1x128xi32>
    %652 = arith.cmpi eq, %33, %651 : vector<1x128xi32>
    %653 = vector.shape_cast %649 : vector<1x1xf32> to vector<1x1xf32>
    %654 = vector.broadcast %653 : vector<1x1xf32> to vector<1x128xf32>
    %cst_177 = arith.constant 0.000000e+00 : f32
    %655 = vector.broadcast %cst_177 : f32 to vector<1x128xf32>
    %656 = arith.select %652, %654, %655 : vector<1x128xi1>, vector<1x128xf32>
    %c15_i32_178 = arith.constant 15 : i32
    %657 = arith.cmpi sge, %2, %c15_i32_178 : i32
    %658 = vector.broadcast %649 : vector<1x1xf32> to vector<8x1xf32>
    %659 = arith.cmpf oeq, %29, %658 : vector<8x1xf32>
    %cst_179 = arith.constant 0.000000e+00 : f32
    %660 = vector.broadcast %cst_179 : f32 to vector<8x1xf32>
    %661 = arith.select %659, %629, %660 : vector<8x1xi1>, vector<8x1xf32>
    %cst_180 = arith.constant dense<0.000000e+00> : vector<1xf32>
    %662 = vector.multi_reduction <add>, %661, %cst_180 [0] : vector<8x1xf32> to vector<1xf32>
    %663 = vector.shape_cast %662 : vector<1xf32> to vector<1x1xf32>
    %664 = arith.select %657, %663, %649 : vector<1x1xf32>
    %c14_i32_181 = arith.constant 14 : i32
    %665 = vector.broadcast %c14_i32_181 : i32 to vector<1x128xi32>
    %666 = arith.cmpi eq, %33, %665 : vector<1x128xi32>
    %667 = vector.broadcast %657 : i1 to vector<1x128xi1>
    %668 = arith.andi %667, %666 : vector<1x128xi1>
    %669 = vector.shape_cast %664 : vector<1x1xf32> to vector<1x1xf32>
    %670 = vector.broadcast %669 : vector<1x1xf32> to vector<1x128xf32>
    %671 = arith.select %668, %670, %656 : vector<1x128xi1>, vector<1x128xf32>
    %c14_i32_182 = arith.constant 14 : i32
    %672 = arith.cmpi sge, %2, %c14_i32_182 : i32
    %673 = vector.broadcast %664 : vector<1x1xf32> to vector<1x8xf32>
    %674 = arith.cmpf oeq, %27, %673 : vector<1x8xf32>
    %cst_183 = arith.constant 0.000000e+00 : f32
    %675 = vector.broadcast %cst_183 : f32 to vector<1x8xf32>
    %676 = arith.select %674, %600, %675 : vector<1x8xi1>, vector<1x8xf32>
    %cst_184 = arith.constant dense<0.000000e+00> : vector<1xf32>
    %677 = vector.multi_reduction <add>, %676, %cst_184 [1] : vector<1x8xf32> to vector<1xf32>
    %678 = vector.shape_cast %677 : vector<1xf32> to vector<1x1xf32>
    %679 = arith.select %672, %678, %664 : vector<1x1xf32>
    %c13_i32_185 = arith.constant 13 : i32
    %680 = vector.broadcast %c13_i32_185 : i32 to vector<1x128xi32>
    %681 = arith.cmpi eq, %33, %680 : vector<1x128xi32>
    %682 = vector.broadcast %672 : i1 to vector<1x128xi1>
    %683 = arith.andi %682, %681 : vector<1x128xi1>
    %684 = vector.shape_cast %679 : vector<1x1xf32> to vector<1x1xf32>
    %685 = vector.broadcast %684 : vector<1x1xf32> to vector<1x128xf32>
    %686 = arith.select %683, %685, %671 : vector<1x128xi1>, vector<1x128xf32>
    %c13_i32_186 = arith.constant 13 : i32
    %687 = arith.cmpi sge, %2, %c13_i32_186 : i32
    %688 = vector.broadcast %679 : vector<1x1xf32> to vector<8x1xf32>
    %689 = arith.cmpf oeq, %29, %688 : vector<8x1xf32>
    %cst_187 = arith.constant 0.000000e+00 : f32
    %690 = vector.broadcast %cst_187 : f32 to vector<8x1xf32>
    %691 = arith.select %689, %571, %690 : vector<8x1xi1>, vector<8x1xf32>
    %cst_188 = arith.constant dense<0.000000e+00> : vector<1xf32>
    %692 = vector.multi_reduction <add>, %691, %cst_188 [0] : vector<8x1xf32> to vector<1xf32>
    %693 = vector.shape_cast %692 : vector<1xf32> to vector<1x1xf32>
    %694 = arith.select %687, %693, %679 : vector<1x1xf32>
    %c12_i32_189 = arith.constant 12 : i32
    %695 = vector.broadcast %c12_i32_189 : i32 to vector<1x128xi32>
    %696 = arith.cmpi eq, %33, %695 : vector<1x128xi32>
    %697 = vector.broadcast %687 : i1 to vector<1x128xi1>
    %698 = arith.andi %697, %696 : vector<1x128xi1>
    %699 = vector.shape_cast %694 : vector<1x1xf32> to vector<1x1xf32>
    %700 = vector.broadcast %699 : vector<1x1xf32> to vector<1x128xf32>
    %701 = arith.select %698, %700, %686 : vector<1x128xi1>, vector<1x128xf32>
    %c12_i32_190 = arith.constant 12 : i32
    %702 = arith.cmpi sge, %2, %c12_i32_190 : i32
    %703 = vector.broadcast %694 : vector<1x1xf32> to vector<1x8xf32>
    %704 = arith.cmpf oeq, %27, %703 : vector<1x8xf32>
    %cst_191 = arith.constant 0.000000e+00 : f32
    %705 = vector.broadcast %cst_191 : f32 to vector<1x8xf32>
    %706 = arith.select %704, %542, %705 : vector<1x8xi1>, vector<1x8xf32>
    %cst_192 = arith.constant dense<0.000000e+00> : vector<1xf32>
    %707 = vector.multi_reduction <add>, %706, %cst_192 [1] : vector<1x8xf32> to vector<1xf32>
    %708 = vector.shape_cast %707 : vector<1xf32> to vector<1x1xf32>
    %709 = arith.select %702, %708, %694 : vector<1x1xf32>
    %c11_i32_193 = arith.constant 11 : i32
    %710 = vector.broadcast %c11_i32_193 : i32 to vector<1x128xi32>
    %711 = arith.cmpi eq, %33, %710 : vector<1x128xi32>
    %712 = vector.broadcast %702 : i1 to vector<1x128xi1>
    %713 = arith.andi %712, %711 : vector<1x128xi1>
    %714 = vector.shape_cast %709 : vector<1x1xf32> to vector<1x1xf32>
    %715 = vector.broadcast %714 : vector<1x1xf32> to vector<1x128xf32>
    %716 = arith.select %713, %715, %701 : vector<1x128xi1>, vector<1x128xf32>
    %c11_i32_194 = arith.constant 11 : i32
    %717 = arith.cmpi sge, %2, %c11_i32_194 : i32
    %718 = vector.broadcast %709 : vector<1x1xf32> to vector<8x1xf32>
    %719 = arith.cmpf oeq, %29, %718 : vector<8x1xf32>
    %cst_195 = arith.constant 0.000000e+00 : f32
    %720 = vector.broadcast %cst_195 : f32 to vector<8x1xf32>
    %721 = arith.select %719, %513, %720 : vector<8x1xi1>, vector<8x1xf32>
    %cst_196 = arith.constant dense<0.000000e+00> : vector<1xf32>
    %722 = vector.multi_reduction <add>, %721, %cst_196 [0] : vector<8x1xf32> to vector<1xf32>
    %723 = vector.shape_cast %722 : vector<1xf32> to vector<1x1xf32>
    %724 = arith.select %717, %723, %709 : vector<1x1xf32>
    %c10_i32_197 = arith.constant 10 : i32
    %725 = vector.broadcast %c10_i32_197 : i32 to vector<1x128xi32>
    %726 = arith.cmpi eq, %33, %725 : vector<1x128xi32>
    %727 = vector.broadcast %717 : i1 to vector<1x128xi1>
    %728 = arith.andi %727, %726 : vector<1x128xi1>
    %729 = vector.shape_cast %724 : vector<1x1xf32> to vector<1x1xf32>
    %730 = vector.broadcast %729 : vector<1x1xf32> to vector<1x128xf32>
    %731 = arith.select %728, %730, %716 : vector<1x128xi1>, vector<1x128xf32>
    %c10_i32_198 = arith.constant 10 : i32
    %732 = arith.cmpi sge, %2, %c10_i32_198 : i32
    %733 = vector.broadcast %724 : vector<1x1xf32> to vector<1x8xf32>
    %734 = arith.cmpf oeq, %27, %733 : vector<1x8xf32>
    %cst_199 = arith.constant 0.000000e+00 : f32
    %735 = vector.broadcast %cst_199 : f32 to vector<1x8xf32>
    %736 = arith.select %734, %484, %735 : vector<1x8xi1>, vector<1x8xf32>
    %cst_200 = arith.constant dense<0.000000e+00> : vector<1xf32>
    %737 = vector.multi_reduction <add>, %736, %cst_200 [1] : vector<1x8xf32> to vector<1xf32>
    %738 = vector.shape_cast %737 : vector<1xf32> to vector<1x1xf32>
    %739 = arith.select %732, %738, %724 : vector<1x1xf32>
    %c9_i32_201 = arith.constant 9 : i32
    %740 = vector.broadcast %c9_i32_201 : i32 to vector<1x128xi32>
    %741 = arith.cmpi eq, %33, %740 : vector<1x128xi32>
    %742 = vector.broadcast %732 : i1 to vector<1x128xi1>
    %743 = arith.andi %742, %741 : vector<1x128xi1>
    %744 = vector.shape_cast %739 : vector<1x1xf32> to vector<1x1xf32>
    %745 = vector.broadcast %744 : vector<1x1xf32> to vector<1x128xf32>
    %746 = arith.select %743, %745, %731 : vector<1x128xi1>, vector<1x128xf32>
    %c9_i32_202 = arith.constant 9 : i32
    %747 = arith.cmpi sge, %2, %c9_i32_202 : i32
    %748 = vector.broadcast %739 : vector<1x1xf32> to vector<8x1xf32>
    %749 = arith.cmpf oeq, %29, %748 : vector<8x1xf32>
    %cst_203 = arith.constant 0.000000e+00 : f32
    %750 = vector.broadcast %cst_203 : f32 to vector<8x1xf32>
    %751 = arith.select %749, %455, %750 : vector<8x1xi1>, vector<8x1xf32>
    %cst_204 = arith.constant dense<0.000000e+00> : vector<1xf32>
    %752 = vector.multi_reduction <add>, %751, %cst_204 [0] : vector<8x1xf32> to vector<1xf32>
    %753 = vector.shape_cast %752 : vector<1xf32> to vector<1x1xf32>
    %754 = arith.select %747, %753, %739 : vector<1x1xf32>
    %c8_i32_205 = arith.constant 8 : i32
    %755 = vector.broadcast %c8_i32_205 : i32 to vector<1x128xi32>
    %756 = arith.cmpi eq, %33, %755 : vector<1x128xi32>
    %757 = vector.broadcast %747 : i1 to vector<1x128xi1>
    %758 = arith.andi %757, %756 : vector<1x128xi1>
    %759 = vector.shape_cast %754 : vector<1x1xf32> to vector<1x1xf32>
    %760 = vector.broadcast %759 : vector<1x1xf32> to vector<1x128xf32>
    %761 = arith.select %758, %760, %746 : vector<1x128xi1>, vector<1x128xf32>
    %c8_i32_206 = arith.constant 8 : i32
    %762 = arith.cmpi sge, %2, %c8_i32_206 : i32
    %763 = vector.broadcast %754 : vector<1x1xf32> to vector<1x8xf32>
    %764 = arith.cmpf oeq, %27, %763 : vector<1x8xf32>
    %cst_207 = arith.constant 0.000000e+00 : f32
    %765 = vector.broadcast %cst_207 : f32 to vector<1x8xf32>
    %766 = arith.select %764, %426, %765 : vector<1x8xi1>, vector<1x8xf32>
    %cst_208 = arith.constant dense<0.000000e+00> : vector<1xf32>
    %767 = vector.multi_reduction <add>, %766, %cst_208 [1] : vector<1x8xf32> to vector<1xf32>
    %768 = vector.shape_cast %767 : vector<1xf32> to vector<1x1xf32>
    %769 = arith.select %762, %768, %754 : vector<1x1xf32>
    %c7_i32_209 = arith.constant 7 : i32
    %770 = vector.broadcast %c7_i32_209 : i32 to vector<1x128xi32>
    %771 = arith.cmpi eq, %33, %770 : vector<1x128xi32>
    %772 = vector.broadcast %762 : i1 to vector<1x128xi1>
    %773 = arith.andi %772, %771 : vector<1x128xi1>
    %774 = vector.shape_cast %769 : vector<1x1xf32> to vector<1x1xf32>
    %775 = vector.broadcast %774 : vector<1x1xf32> to vector<1x128xf32>
    %776 = arith.select %773, %775, %761 : vector<1x128xi1>, vector<1x128xf32>
    %c7_i32_210 = arith.constant 7 : i32
    %777 = arith.cmpi sge, %2, %c7_i32_210 : i32
    %778 = vector.broadcast %769 : vector<1x1xf32> to vector<8x1xf32>
    %779 = arith.cmpf oeq, %29, %778 : vector<8x1xf32>
    %cst_211 = arith.constant 0.000000e+00 : f32
    %780 = vector.broadcast %cst_211 : f32 to vector<8x1xf32>
    %781 = arith.select %779, %397, %780 : vector<8x1xi1>, vector<8x1xf32>
    %cst_212 = arith.constant dense<0.000000e+00> : vector<1xf32>
    %782 = vector.multi_reduction <add>, %781, %cst_212 [0] : vector<8x1xf32> to vector<1xf32>
    %783 = vector.shape_cast %782 : vector<1xf32> to vector<1x1xf32>
    %784 = arith.select %777, %783, %769 : vector<1x1xf32>
    %c6_i32_213 = arith.constant 6 : i32
    %785 = vector.broadcast %c6_i32_213 : i32 to vector<1x128xi32>
    %786 = arith.cmpi eq, %33, %785 : vector<1x128xi32>
    %787 = vector.broadcast %777 : i1 to vector<1x128xi1>
    %788 = arith.andi %787, %786 : vector<1x128xi1>
    %789 = vector.shape_cast %784 : vector<1x1xf32> to vector<1x1xf32>
    %790 = vector.broadcast %789 : vector<1x1xf32> to vector<1x128xf32>
    %791 = arith.select %788, %790, %776 : vector<1x128xi1>, vector<1x128xf32>
    %c6_i32_214 = arith.constant 6 : i32
    %792 = arith.cmpi sge, %2, %c6_i32_214 : i32
    %793 = vector.broadcast %784 : vector<1x1xf32> to vector<1x8xf32>
    %794 = arith.cmpf oeq, %27, %793 : vector<1x8xf32>
    %cst_215 = arith.constant 0.000000e+00 : f32
    %795 = vector.broadcast %cst_215 : f32 to vector<1x8xf32>
    %796 = arith.select %794, %368, %795 : vector<1x8xi1>, vector<1x8xf32>
    %cst_216 = arith.constant dense<0.000000e+00> : vector<1xf32>
    %797 = vector.multi_reduction <add>, %796, %cst_216 [1] : vector<1x8xf32> to vector<1xf32>
    %798 = vector.shape_cast %797 : vector<1xf32> to vector<1x1xf32>
    %799 = arith.select %792, %798, %784 : vector<1x1xf32>
    %c5_i32_217 = arith.constant 5 : i32
    %800 = vector.broadcast %c5_i32_217 : i32 to vector<1x128xi32>
    %801 = arith.cmpi eq, %33, %800 : vector<1x128xi32>
    %802 = vector.broadcast %792 : i1 to vector<1x128xi1>
    %803 = arith.andi %802, %801 : vector<1x128xi1>
    %804 = vector.shape_cast %799 : vector<1x1xf32> to vector<1x1xf32>
    %805 = vector.broadcast %804 : vector<1x1xf32> to vector<1x128xf32>
    %806 = arith.select %803, %805, %791 : vector<1x128xi1>, vector<1x128xf32>
    %c5_i32_218 = arith.constant 5 : i32
    %807 = arith.cmpi sge, %2, %c5_i32_218 : i32
    %808 = vector.broadcast %799 : vector<1x1xf32> to vector<8x1xf32>
    %809 = arith.cmpf oeq, %29, %808 : vector<8x1xf32>
    %cst_219 = arith.constant 0.000000e+00 : f32
    %810 = vector.broadcast %cst_219 : f32 to vector<8x1xf32>
    %811 = arith.select %809, %339, %810 : vector<8x1xi1>, vector<8x1xf32>
    %cst_220 = arith.constant dense<0.000000e+00> : vector<1xf32>
    %812 = vector.multi_reduction <add>, %811, %cst_220 [0] : vector<8x1xf32> to vector<1xf32>
    %813 = vector.shape_cast %812 : vector<1xf32> to vector<1x1xf32>
    %814 = arith.select %807, %813, %799 : vector<1x1xf32>
    %c4_i32_221 = arith.constant 4 : i32
    %815 = vector.broadcast %c4_i32_221 : i32 to vector<1x128xi32>
    %816 = arith.cmpi eq, %33, %815 : vector<1x128xi32>
    %817 = vector.broadcast %807 : i1 to vector<1x128xi1>
    %818 = arith.andi %817, %816 : vector<1x128xi1>
    %819 = vector.shape_cast %814 : vector<1x1xf32> to vector<1x1xf32>
    %820 = vector.broadcast %819 : vector<1x1xf32> to vector<1x128xf32>
    %821 = arith.select %818, %820, %806 : vector<1x128xi1>, vector<1x128xf32>
    %c4_i32_222 = arith.constant 4 : i32
    %822 = arith.cmpi sge, %2, %c4_i32_222 : i32
    %823 = vector.broadcast %814 : vector<1x1xf32> to vector<1x8xf32>
    %824 = arith.cmpf oeq, %27, %823 : vector<1x8xf32>
    %cst_223 = arith.constant 0.000000e+00 : f32
    %825 = vector.broadcast %cst_223 : f32 to vector<1x8xf32>
    %826 = arith.select %824, %310, %825 : vector<1x8xi1>, vector<1x8xf32>
    %cst_224 = arith.constant dense<0.000000e+00> : vector<1xf32>
    %827 = vector.multi_reduction <add>, %826, %cst_224 [1] : vector<1x8xf32> to vector<1xf32>
    %828 = vector.shape_cast %827 : vector<1xf32> to vector<1x1xf32>
    %829 = arith.select %822, %828, %814 : vector<1x1xf32>
    %c3_i32_225 = arith.constant 3 : i32
    %830 = vector.broadcast %c3_i32_225 : i32 to vector<1x128xi32>
    %831 = arith.cmpi eq, %33, %830 : vector<1x128xi32>
    %832 = vector.broadcast %822 : i1 to vector<1x128xi1>
    %833 = arith.andi %832, %831 : vector<1x128xi1>
    %834 = vector.shape_cast %829 : vector<1x1xf32> to vector<1x1xf32>
    %835 = vector.broadcast %834 : vector<1x1xf32> to vector<1x128xf32>
    %836 = arith.select %833, %835, %821 : vector<1x128xi1>, vector<1x128xf32>
    %c3_i32_226 = arith.constant 3 : i32
    %837 = arith.cmpi sge, %2, %c3_i32_226 : i32
    %838 = vector.broadcast %829 : vector<1x1xf32> to vector<8x1xf32>
    %839 = arith.cmpf oeq, %29, %838 : vector<8x1xf32>
    %cst_227 = arith.constant 0.000000e+00 : f32
    %840 = vector.broadcast %cst_227 : f32 to vector<8x1xf32>
    %841 = arith.select %839, %281, %840 : vector<8x1xi1>, vector<8x1xf32>
    %cst_228 = arith.constant dense<0.000000e+00> : vector<1xf32>
    %842 = vector.multi_reduction <add>, %841, %cst_228 [0] : vector<8x1xf32> to vector<1xf32>
    %843 = vector.shape_cast %842 : vector<1xf32> to vector<1x1xf32>
    %844 = arith.select %837, %843, %829 : vector<1x1xf32>
    %c2_i32_229 = arith.constant 2 : i32
    %845 = vector.broadcast %c2_i32_229 : i32 to vector<1x128xi32>
    %846 = arith.cmpi eq, %33, %845 : vector<1x128xi32>
    %847 = vector.broadcast %837 : i1 to vector<1x128xi1>
    %848 = arith.andi %847, %846 : vector<1x128xi1>
    %849 = vector.shape_cast %844 : vector<1x1xf32> to vector<1x1xf32>
    %850 = vector.broadcast %849 : vector<1x1xf32> to vector<1x128xf32>
    %851 = arith.select %848, %850, %836 : vector<1x128xi1>, vector<1x128xf32>
    %c2_i32_230 = arith.constant 2 : i32
    %852 = arith.cmpi sge, %2, %c2_i32_230 : i32
    %853 = vector.broadcast %844 : vector<1x1xf32> to vector<1x8xf32>
    %854 = arith.cmpf oeq, %27, %853 : vector<1x8xf32>
    %cst_231 = arith.constant 0.000000e+00 : f32
    %855 = vector.broadcast %cst_231 : f32 to vector<1x8xf32>
    %856 = arith.select %854, %252, %855 : vector<1x8xi1>, vector<1x8xf32>
    %cst_232 = arith.constant dense<0.000000e+00> : vector<1xf32>
    %857 = vector.multi_reduction <add>, %856, %cst_232 [1] : vector<1x8xf32> to vector<1xf32>
    %858 = vector.shape_cast %857 : vector<1xf32> to vector<1x1xf32>
    %859 = arith.select %852, %858, %844 : vector<1x1xf32>
    %c1_i32_233 = arith.constant 1 : i32
    %860 = vector.broadcast %c1_i32_233 : i32 to vector<1x128xi32>
    %861 = arith.cmpi eq, %33, %860 : vector<1x128xi32>
    %862 = vector.broadcast %852 : i1 to vector<1x128xi1>
    %863 = arith.andi %862, %861 : vector<1x128xi1>
    %864 = vector.shape_cast %859 : vector<1x1xf32> to vector<1x1xf32>
    %865 = vector.broadcast %864 : vector<1x1xf32> to vector<1x128xf32>
    %866 = arith.select %863, %865, %851 : vector<1x128xi1>, vector<1x128xf32>
    %c1_i32_234 = arith.constant 1 : i32
    %867 = arith.cmpi sge, %2, %c1_i32_234 : i32
    %868 = vector.broadcast %859 : vector<1x1xf32> to vector<8x1xf32>
    %869 = arith.cmpf oeq, %29, %868 : vector<8x1xf32>
    %cst_235 = arith.constant 0.000000e+00 : f32
    %870 = vector.broadcast %cst_235 : f32 to vector<8x1xf32>
    %871 = arith.select %869, %223, %870 : vector<8x1xi1>, vector<8x1xf32>
    %cst_236 = arith.constant dense<0.000000e+00> : vector<1xf32>
    %872 = vector.multi_reduction <add>, %871, %cst_236 [0] : vector<8x1xf32> to vector<1xf32>
    %873 = vector.shape_cast %872 : vector<1xf32> to vector<1x1xf32>
    %874 = arith.select %867, %873, %859 : vector<1x1xf32>
    %c0_i32 = arith.constant 0 : i32
    %875 = vector.broadcast %c0_i32 : i32 to vector<1x128xi32>
    %876 = arith.cmpi eq, %33, %875 : vector<1x128xi32>
    %877 = vector.broadcast %867 : i1 to vector<1x128xi1>
    %878 = arith.andi %877, %876 : vector<1x128xi1>
    %879 = vector.shape_cast %874 : vector<1x1xf32> to vector<1x1xf32>
    %880 = vector.broadcast %879 : vector<1x1xf32> to vector<1x128xf32>
    %881 = arith.select %878, %880, %866 : vector<1x128xi1>, vector<1x128xf32>
    %c16_i32 = arith.constant 16 : i32
    %882 = vector.broadcast %c16_i32 : i32 to vector<1x128xi32>
    %883 = arith.cmpi eq, %33, %882 : vector<1x128xi32>
    %884 = vector.shape_cast %650 : vector<1x1xf32> to vector<1x1xf32>
    %885 = vector.broadcast %884 : vector<1x1xf32> to vector<1x128xf32>
    %886 = arith.select %883, %885, %881 : vector<1x128xi1>, vector<1x128xf32>
    %c0_237 = arith.constant 0 : index
    %c0_238 = arith.constant 0 : index
    %c0_239 = arith.constant 0 : index
    %887 = vector.load %arg9[%c0_237, %c0_238, %c0_239] : memref<1x1x128xf32, #tpu.memory_space<vmem>>, vector<1x1x128xf32>
    %888 = vector.shape_cast %887 : vector<1x1x128xf32> to vector<1x128xf32>
    %889 = vector.shape_cast %886 : vector<1x128xf32> to vector<1x1x128xf32>
    tpu.vector_store %arg9[%c0_237, %c0_238, %c0_239], %889 {strides = array<i32>} : memref<1x1x128xf32, #tpu.memory_space<vmem>>, vector<1x1x128xf32>,
    return
  }
  func.func @transform_0(%arg0: i32, %arg1: memref<2xi32, #tpu.memory_space<smem>>) -> (i32, i32, i32) {
    %c0_i32 = arith.constant 0 : i32
    %c0_i32_0 = arith.constant 0 : i32
    %c0_i32_1 = arith.constant 0 : i32
    return %arg0, %c0_i32, %c0_i32_0 : i32, i32, i32
  }
  func.func @transform_1(%arg0: i32, %arg1: memref<2xi32, #tpu.memory_space<smem>>) -> (i32, i32, i32) {
    %c0_i32 = arith.constant 0 : i32
    %c0_i32_0 = arith.constant 0 : i32
    %c0_i32_1 = arith.constant 0 : i32
    return %arg0, %c0_i32, %c0_i32_0 : i32, i32, i32
  }
  func.func @transform_2(%arg0: i32, %arg1: memref<2xi32, #tpu.memory_space<smem>>) -> (i32, i32) {
    %c0_i32 = arith.constant 0 : i32
    %c0_i32_0 = arith.constant 0 : i32
    %c0_i32_1 = arith.constant 0 : i32
    return %c0_i32, %c0_i32_0 : i32, i32
  }
  func.func @transform_3(%arg0: i32, %arg1: memref<2xi32, #tpu.memory_space<smem>>) -> (i32, i32) {
    %c0_i32 = arith.constant 0 : i32
    %c0_i32_0 = arith.constant 0 : i32
    %c0_i32_1 = arith.constant 0 : i32
    return %c0_i32, %c0_i32_0 : i32, i32
  }
  func.func @transform_4(%arg0: i32, %arg1: memref<2xi32, #tpu.memory_space<smem>>) -> (i32, i32) {
    %c0_i32 = arith.constant 0 : i32
    %c0_i32_0 = arith.constant 0 : i32
    %c0_i32_1 = arith.constant 0 : i32
    return %c0_i32, %c0_i32_0 : i32, i32
  }
  func.func @transform_5(%arg0: i32, %arg1: memref<2xi32, #tpu.memory_space<smem>>) -> (i32, i32) {
    %c0_i32 = arith.constant 0 : i32
    %c0_i32_0 = arith.constant 0 : i32
    %c0_i32_1 = arith.constant 0 : i32
    return %c0_i32, %c0_i32_0 : i32, i32
  }
  func.func @transform_6(%arg0: i32, %arg1: memref<2xi32, #tpu.memory_space<smem>>) -> (i32, i32, i32) {
    %c0_i32 = arith.constant 0 : i32
    %c0_i32_0 = arith.constant 0 : i32
    %c0_i32_1 = arith.constant 0 : i32
    return %arg0, %c0_i32, %c0_i32_0 : i32, i32, i32
  }
  func.func @transform_7(%arg0: i32, %arg1: memref<2xi32, #tpu.memory_space<smem>>) -> (i32, i32, i32) {
    %c0_i32 = arith.constant 0 : i32
    %c0_i32_0 = arith.constant 0 : i32
    %c0_i32_1 = arith.constant 0 : i32
    return %arg0, %c0_i32, %c0_i32_0 : i32, i32, i32
  }
}

</mosaic_0001>

<bundles_post_ra>
// kernel: encoder_crf_forward.1
= control target key start
LH: loop header
LB: loop body
LE: loop exit
PB: predicated region body
PF: predicated region fallthrough
CT: control target
= control target key end

     0   :  { %s3123_s30 = smov [#allocation3]   ;;  %s4192_s0 = inlined_call_operand.vmem [shape: s32[2], index: 0, kind: input, shape index: {}]   ;;  %s4193_s1 = inlined_call_operand.vmem [shape: f32[2,16,128], index: 1, kind: input, shape index: {}]   ;;  %s4194_s2 = inlined_call_operand.vmem [shape: s32[2,16,1], index: 2, kind: input, shape index: {}]   ;;  %s4195_s3 = inlined_call_operand.hbm [shape: bf16[128,896], index: 3, kind: input, shape index: {}]   ;;  %s4196_s4 = inlined_call_operand.vmem [shape: bf16[256,128], index: 4, kind: input, shape index: {}]   ;;  %s4197_s5 = inlined_call_operand.vmem [shape: f32[16,256], index: 5, kind: input, shape index: {}]   ;;  %s4198_s6 = inlined_call_operand.vmem [shape: f32[24,128], index: 6, kind: input, shape index: {}]   ;;  %s4199_s7 = inlined_call_operand.vmem [shape: f32[2,16,128], index: 7, kind: output, shape index: {0}]   ;;  %s4200_s8 = inlined_call_operand.vmem [shape: f32[2,1,128], index: 8, kind: output, shape index: {1}]  }
   0x1   :  { %s15_s29 = sshll.u32 %s4192_s0, 4  ;;  %s16_s29 = int_to_ptr.vmem [resolvable:$true] %s15_s29 }
   0x2   :  { %18 = dma.vmem_to_smem %s16_s29, 16, %s3123_s30, [#allocation2] }
   0x3   :  { %3113 = dma.done.wait [#allocation2], 16 }
   0x4   :  { %3114 = vsyncadd [#allocation2], 4294967280 }
   0x5   :  { %21 = sfence }
   0x6   :  { %22 = vsyncpa [#allocation5], 0  ;;  %s3188_s9 = smov 0  }
   0x7 LB: > { %s232_s0 = sshll.u32 %s4195_s3, 4  ;;  %s3197_s12 = sadd.s32 4294967295, %s3121_s9   ;;  %s3121_s9 = sphi %s3188_s9, %s28_s9   ;;  %s233_s0 = int_to_ptr.hbm [resolvable:$true] %s232_s0 }
   0x8   : > { %p2524_p0 = scmp.ge.s32.totalorder %s3121_s9, 1  ;;  %p221_p1 = scmp.lt.s32.totalorder %s3121_s9, 3 }
   0x9   : > { %p2924_p2 = scmp.eq.s32.totalorder %s3197_s12, 0  ;;  %s3124_s13 = smov [#allocation4]  }
   0xa   : > { %p222_p3 = pnand %p2524_p0, %p221_p1  ;;  %s234_s14 = sshll.u32 %s3124_s13, 4  ;;  %s235_s14 = int_to_ptr.vmem [resolvable:$true] %s234_s14 }
   0xb   : > { %s3125_s15 = smov 448   ;;  %s3126_s16 = smov 28  }
   0xc   : > { %p2920_p4 = pneg %p222_p3  ;;  %275 = sbr.rel (%p222_p3) target bundleno = 5737 (0x1669), region = 44 }
   0xe   : > { %p2921_p5 = pnand %p2924_p2, %p2920_p4 }
  0x10   : > { %2923 = dma.hbm_to_vmem [thread:$0]  (!%p2921_p5), %s233_s0, 7168, %s235_s14, [#allocation5], %s3125_s15, %s3125_s15, %s3126_s16  }
  0x11   : > { %3116 = dma.done.wait (%p2924_p2), [#allocation5], 7168  }
  0x12   : > { %3118 = vsyncadd (%p2924_p2), [#allocation5], 4294960128  ;;  %v2627_v0 = vld [vmem:[#allocation4 + $0x188] sm:$0xf]  ;;  %v2866_v1 = vld [vmem:[#allocation4 + $0x1a0] sm:$0xf0]  ;;  %v350_v57 = vlaneseq }
  0x13   : > { %v2865_v2 = vld [vmem:[#allocation4 + $0x18c] sm:$0xf]  ;;  %v2628_v3 = vor.u32 %v2866_v1, %v2627_v0  ;;  %v2629_v4 = vld [vmem:[#allocation4 + $0x1a4] sm:$0xf0]  ;;  %v2615_v5 = vld [vmem:[#allocation4 + $0x150] sm:$0xf] }
  0x14   : > { %v2863_v6 = vld [vmem:[#allocation4 + $0x168] sm:$0xf0]  ;;  %v2632_v7 = vor.u32 %v2865_v2, %v2629_v4  ;;  %v2862_v8 = vld [vmem:[#allocation4 + $0x154] sm:$0xf]  ;;  %v2617_v9 = vld [vmem:[#allocation4 + $0x16c] sm:$0xf0] }
  0x15   : > { %535 = vmatpush.bf16.msra.mxu0 %v2628_v3  ;;  %v2616_v10 = vor.u32 %v2863_v6, %v2615_v5  ;;  %v2620_v11 = vor.u32 %v2862_v8, %v2617_v9  ;;  %v2603_v12 = vld [vmem:[#allocation4 + $0x118] sm:$0xf]  ;;  %v2860_v13 = vld [vmem:[#allocation4 + $0x130] sm:$0xf0]  ;;  %v2859_v14 = vld [vmem:[#allocation4 + $0x11c] sm:$0xf] }
  0x16   : > { %549 = vmatpush.bf16.msra.mxu1 %v2632_v7  ;;  %v2605_v15 = vld [vmem:[#allocation4 + $0x134] sm:$0xf0]  ;;  %v2604_v16 = vor.u32 %v2860_v13, %v2603_v12  ;;  %v2591_v18 = vld [vmem:[#allocation4 + $0xe0] sm:$0xf]  ;;  %v2857_v19 = vld [vmem:[#allocation4 + $0xf8] sm:$0xf0] }
  0x17   : > { %v2608_v17 = vor.u32 %v2859_v14, %v2605_v15  ;;  %v2856_v20 = vld [vmem:[#allocation4 + $0xe4] sm:$0xf]  ;;  %v2593_v21 = vld [vmem:[#allocation4 + $0xfc] sm:$0xf0]  ;;  %v2592_v22 = vor.u32 %v2857_v19, %v2591_v18  ;;  %v2579_v24 = vld [vmem:[#allocation4 + $0xa8] sm:$0xf] }
  0x18   : > { %v2596_v23 = vor.u32 %v2856_v20, %v2593_v21  ;;  %v2854_v25 = vld [vmem:[#allocation4 + $0xc0] sm:$0xf0]  ;;  %v2853_v26 = vld [vmem:[#allocation4 + $0xac] sm:$0xf]  ;;  %v2581_v27 = vld [vmem:[#allocation4 + $0xc4] sm:$0xf0] }
  0x19   : > { %536 = vmatpush.bf16.msra.mxu0 %v2616_v10  ;;  %p316_p6 = scmp.lt.s32.totalorder %s3197_s12, 1  ;;  %v2580_v28 = vor.u32 %v2854_v25, %v2579_v24  ;;  %v2584_v29 = vor.u32 %v2853_v26, %v2581_v27  ;;  %v2567_v30 = vld [vmem:[#allocation4 + $0x70] sm:$0xf]  ;;  %v2851_v31 = vld [vmem:[#allocation4 + $0x88] sm:$0xf0]  ;;  %s3224_s22 = sld [smem:[#allocation3 + %s3197_s12]] }
  0x1a   : > { %550 = vmatpush.bf16.msra.mxu1 %v2620_v11  ;;  %v2850_v32 = vld [vmem:[#allocation4 + $0x74] sm:$0xf]  ;;  %v2569_v33 = vld [vmem:[#allocation4 + $0x8c] sm:$0xf0]  ;;  %v2568_v34 = vor.u32 %v2851_v31, %v2567_v30  ;;  %v2555_v36 = vld [vmem:[#allocation4 + $0x38] sm:$0xf] }
  0x1b   : > { %s3204_s17 = scalar_select %p316_p6, %s3197_s12, 1  ;;  %v2572_v35 = vor.u32 %v2850_v32, %v2569_v33  ;;  %v2848_v37 = vld [vmem:[#allocation4 + $0x50] sm:$0xf0]  ;;  %v2847_v38 = vld [vmem:[#allocation4 + $0x3c] sm:$0xf]  ;;  %v3227_v63 = vand.u32 127, %v350_v57 }
  0x1c   : > { %v2557_v39 = vld [vmem:[#allocation4 + $0x54] sm:$0xf0]  ;;  %v2556_v40 = vor.u32 %v2848_v37, %v2555_v36  ;;  %v2543_v42 = vld [vmem:[#allocation4] sm:$0xf]  ;;  %v2845_v43 = vld [vmem:[#allocation4 + $0x18] sm:$0xf0] }
  0x1d   : > { %537 = vmatpush.bf16.msra.mxu0 %v2604_v16  ;;  %s3207_s18 = sshll.u32 %s3204_s17, 4  ;;  %v2560_v41 = vor.u32 %v2847_v38, %v2557_v39  ;;  %v2844_v44 = vld [vmem:[#allocation4 + $0x4] sm:$0xf]  ;;  %v2545_v45 = vld [vmem:[#allocation4 + $0x1c] sm:$0xf0]  ;;  %v2544_v46 = vor.u32 %v2845_v43, %v2543_v42  ;;  %v4201_v7 = vmov 0.0  }
  0x1e   : > { %551 = vmatpush.bf16.msra.mxu1 %v2608_v17  ;;  %s320_s21 = scalar_lea.vmem %s4193_s1, %s3207_s18  ;;  %v2548_v49 = vor.u32 %v2844_v44, %v2545_v45  ;;  %v2635_v58 = vld [vmem:[#allocation4 + $0x190] sm:$0xf]  ;;  %v2867_v59 = vld [vmem:[#allocation4 + $0x1a8] sm:$0xf0]  ;;  %v2623_v60 = vld [vmem:[#allocation4 + $0x158] sm:$0xf]  ;;  %s3363_s12 = scalar_lea.vmem %s4199_s7, %s3207_s18 }
  0x1f   : > { %v3213_v47 = vld [vmem:[%s320_s21] sm:$0xff]  ;;  %v3215_v48 = vld [vmem:[%s320_s21 + $0x8] sm:$0xff]  ;;  %v2636_v61 = vor.u32 %v2867_v59, %v2635_v58  ;;  %v2864_v62 = vld [vmem:[#allocation4 + $0x170] sm:$0xf0]  ;;  %v3230_v1 = vstv %s3224_s22  ;;  %vm599_vm1 = vcmask 130048   ;;  %p1380_p7 = scmp.gt.s32.totalorder %s3224_s22, 1 }
  0x20   : > { %v3219_v50 = vpack.c.bf16 %v3215_v48, %v3213_v47  ;;  %v2624_v0 = vor.u32 %v2864_v62, %v2623_v60  ;;  %v2611_v2 = vld [vmem:[#allocation4 + $0x120] sm:$0xf]  ;;  %v2861_v3 = vld [vmem:[#allocation4 + $0x138] sm:$0xf0]  ;;  %vm363_vm0 = vcmp.lt.s32.totalorder %v3227_v63, %v3230_v1  ;;  %v2599_v5 = vld [vmem:[#allocation4 + $0xe8] sm:$0xf] }
  0x21   : > { %538 = vmatpush.bf16.msra.mxu0 %v2592_v22  ;;  %563 = vmatpush.bf16.msra.mxu2 %v2636_v61  ;;  %v2612_v4 = vor.u32 %v2861_v3, %v2611_v2  ;;  %v2858_v6 = vld [vmem:[#allocation4 + $0x100] sm:$0xf0]  ;;  %v2538_v8 = vsel %vm363_vm0, 1.0, %v4201_v7  ;;  %v2587_v10 = vld [vmem:[#allocation4 + $0xb0] sm:$0xf]  ;;  %p1409_p8 = scmp.gt.s32.totalorder %s3224_s22, 2 }
  0x22   : > { %552 = vmatpush.bf16.msra.mxu1 %v2596_v23  ;;  %v2600_v9 = vor.u32 %v2858_v6, %v2599_v5  ;;  %v2855_v11 = vld [vmem:[#allocation4 + $0xc8] sm:$0xf0]  ;;  %v595_v12 = vsub.f32 1.0, %v2538_v8  ;;  %v2575_v14 = vld [vmem:[#allocation4 + $0x78] sm:$0xf]  ;;  %p1467_p9 = scmp.gt.s32.totalorder %s3224_s22, 3 }
  0x23   : > { %v2588_v13 = vor.u32 %v2855_v11, %v2587_v10  ;;  %v2852_v15 = vld [vmem:[#allocation4 + $0x90] sm:$0xf0]  ;;  %v2563_v20 = vld [vmem:[#allocation4 + $0x40] sm:$0xf]  ;;  %v2849_v21 = vld [vmem:[#allocation4 + $0x58] sm:$0xf0] }
  0x24   : > { %v596_v16 = vmul.f32 -1e+09, %v595_v12  ;;  %v2576_v19 = vor.u32 %v2852_v15, %v2575_v14  ;;  %v2564_v24 = vor.u32 %v2849_v21, %v2563_v20  ;;  %v2551_v25 = vld [vmem:[#allocation4 + $0x8] sm:$0xf]  ;;  %v2846_v26 = vld [vmem:[#allocation4 + $0x20] sm:$0xf0] }
  0x25   : > { %539 = vmatpush.bf16.msra.mxu0 %v2580_v28  ;;  %564 = vmatpush.bf16.msra.mxu2 %v2624_v0  ;;  %v2668_v45 = vld [vmem:[#allocation4 + $0x194] sm:$0xf]  ;;  %v2872_v58 = vld [vmem:[#allocation4 + $0x104] sm:$0xf0]  ;;  %v2871_v62 = vld [vmem:[#allocation4 + $0xcc] sm:$0xf0] }
  0x26   : > { %553 = vmatpush.bf16.msra.mxu1 %v2584_v29  ;;  %v2552_v29 = vor.u32 %v2846_v26, %v2551_v25  ;;  %v2652_v61 = vld [vmem:[#allocation4 + $0xb4] sm:$0xf]  ;;  %v2870_v10 = vld [vmem:[#allocation4 + $0x94] sm:$0xf0]  ;;  %v2644_v12 = vld [vmem:[#allocation4 + $0x44] sm:$0xf] }
  0x27   : > { %v2653_v0 = vor.u32 %v2871_v62, %v2652_v61  ;;  %v2640_v15 = vld [vmem:[#allocation4 + $0xc] sm:$0xf]  ;;  %v3128_v25 = vmov 128.0   ;;  %v2884_v61 = vld [vmem:[#allocation4 + $0xf4] sm:$0xf]  ;;  %p1501_p10 = scmp.gt.s32.totalorder %s3224_s22, 4 }
  0x28   : > { %s1382_s29 = scalar_select %p1380_p7, 1, 0 }
  0x29   : > { %540 = vmatpush.bf16.msra.mxu0 %v2568_v34  ;;  %565 = vmatpush.bf16.msra.mxu2 %v2612_v4  ;;  %s1381_s19 = scalar_select %p1380_p7, 1.0, 0.0 }
  0x2a   : > { %554 = vmatpush.bf16.msra.mxu1 %v2572_v35  ;;  %s1411_s23 = scalar_select %p1409_p8, 1, 0 }
  0x2b   : > { %s1410_s24 = scalar_select %p1409_p8, 1.0, 0.0 }
  0x2c   : > { %s1469_s25 = scalar_select %p1467_p9, 1, 0 }
  0x2d   : > { %541 = vmatpush.bf16.msra.mxu0 %v2556_v40  ;;  %566 = vmatpush.bf16.msra.mxu2 %v2600_v9  ;;  %v2648_v9 = vld [vmem:[#allocation4 + $0x7c] sm:$0xf]  ;;  %s1468_s26 = scalar_select %p1467_p9, 1.0, 0.0 }
  0x2e   : > { %555 = vmatpush.bf16.msra.mxu1 %v2560_v41  ;;  %v2649_v11 = vor.u32 %v2870_v10, %v2648_v9  ;;  %v2688_v10 = vld [vmem:[#allocation4 + $0x80] sm:$0xf]  ;;  %s1503_s27 = scalar_select %p1501_p10, 1, 0 }
  0x2f   : > { %p1559_p11 = scmp.gt.s32.totalorder %s3224_s22, 5  ;;  %p1593_p12 = scmp.gt.s32.totalorder %s3224_s22, 6 }
  0x30   : > { %s1502_s28 = scalar_select %p1501_p10, 1.0, 0.0 }
  0x31   : > { %542 = vmatpush.bf16.msra.mxu0 %v2544_v46  ;;  %567 = vmatpush.bf16.msra.mxu2 %v2588_v13  ;;  %v2875_v46 = vld [vmem:[#allocation4 + $0x1ac] sm:$0xf0]  ;;  %v2869_v13 = vld [vmem:[#allocation4 + $0x5c] sm:$0xf0]  ;;  %s1560_s30 = scalar_select %p1559_p11, 1.0, 0.0 }
  0x32   : > { %556 = vmatpush.bf16.msra.mxu1 %v2548_v49  ;;  %v2664_v49 = vld [vmem:[#allocation4 + $0x15c] sm:$0xf]  ;;  %v2645_v14 = vor.u32 %v2869_v13, %v2644_v12  ;;  %v2880_v12 = vld [vmem:[#allocation4 + $0x84] sm:$0xf]  ;;  %s1595_s10 = scalar_select %p1593_p12, 1, 0 }
  0x33   : > { %p1651_p13 = scmp.gt.s32.totalorder %s3224_s22, 7  ;;  %p1685_p0 = scmp.gt.s32.totalorder %s3224_s22, 8 }
  0x34   : > { %543 = vmatmul.bf16.vlgmr.msra.gmra.mxu0 %v3219_v50  ;;  %s1594_s11 = scalar_select %p1593_p12, 1.0, 0.0 }
  0x35   : > { %557 = vmatmul.bf16.vlgmr.msra.gmra.mxu1 %v3219_v50  ;;  %568 = vmatpush.bf16.msra.mxu2 %v2576_v19  ;;  %s1653_s0 = scalar_select %p1651_p13, 1, 0 }
  0x36   : > { %s1652_s13 = scalar_select %p1651_p13, 1.0, 0.0 }
  0x37   : > { %s1687_s14 = scalar_select %p1685_p0, 1, 0 }
  0x38   : > { %p1743_p1 = scmp.gt.s32.totalorder %s3224_s22, 9  ;;  %p1777_p2 = scmp.gt.s32.totalorder %s3224_s22, 10 }
  0x39   : > { %569 = vmatpush.bf16.msra.mxu2 %v2564_v24  ;;  %s1686_s15 = scalar_select %p1685_p0, 1.0, 0.0 }
  0x3a   : > { %s1745_s16 = scalar_select %p1743_p1, 1, 0 }
  0x3b   : > { %s1779_s20 = scalar_select %p1777_p2, 1, 0 }
  0x3c   : > { %p1835_p3 = scmp.gt.s32.totalorder %s3224_s22, 11  ;;  %p1869_p4 = scmp.gt.s32.totalorder %s3224_s22, 12 }
  0x3d   : > { %570 = vmatpush.bf16.msra.mxu2 %v2552_v29  ;;  %s1778_s21 = scalar_select %p1777_p2, 1.0, 0.0 }
  0x3e   : > { %p1927_p5 = scmp.gt.s32.totalorder %s3224_s22, 13  ;;  %p1961_p6 = scmp.gt.s32.totalorder %s3224_s22, 14 }
  0x3f   : > { %p2019_p7 = scmp.gt.s32.totalorder %s3224_s22, 15 }
  0x40   : > { %571 = vmatmul.bf16.vlgmr.msra.gmra.mxu2 %v3219_v50  ;;  %v2669_v50 = vor.u32 %v2875_v46, %v2668_v45  ;;  %v2889_v45 = vld [vmem:[#allocation4 + $0x178] sm:$0xf0]  ;;  %v2888_v46 = vld [vmem:[#allocation4 + $0x164] sm:$0xf] }
  0xb1   : > { %v544_v52 = vpop.f32.mrf.mxu0 }
  0xb2   : > { %v558_v51 = vpop.f32.mrf.mxu1 }
  0xb9   : > { %v546_v55 = vpop.f32.mrf.mxu0 }
  0xba   : > { %v560_v53 = vpop.f32.mrf.mxu1  ;;  %v577_v56 = vpack.c.bf16 %v546_v55, %v544_v52 }
  0xbb   : > { %v578_v54 = vpack.c.bf16 %v560_v53, %v558_v51  ;;  %v2874_v51 = vld [vmem:[#allocation4 + $0x174] sm:$0xf0]  ;;  %v2660_v53 = vld [vmem:[#allocation4 + $0x124] sm:$0xf] }
  0xbc   : > { %v2665_v52 = vor.u32 %v2874_v51, %v2664_v49 }
  0xbd   : > { %586 = vmatpush.bf16.xpose.msra.mxu3 %v578_v54  ;;  %v2873_v54 = vld [vmem:[#allocation4 + $0x13c] sm:$0xf0] }
  0xbe   : > { %v2661_v55 = vor.u32 %v2873_v54, %v2660_v53  ;;  %v2887_v53 = vld [vmem:[#allocation4 + $0x140] sm:$0xf0]  ;;  %v2886_v54 = vld [vmem:[#allocation4 + $0x12c] sm:$0xf] }
  0xc3   : > { %v572_v42 = vpop.f32.mrf.mxu2 }
  0xc4   : > { %587 = vmatmul.bf16.vlgmr.msra.gmra.mxu3 %v577_v56  ;;  %v2656_v56 = vld [vmem:[#allocation4 + $0xec] sm:$0xf] }
  0xc5   : > { %v2657_v59 = vor.u32 %v2872_v58, %v2656_v56  ;;  %v2714_v56 = vld [vmem:[#allocation4 + $0x144] sm:$0xf0] }
  0xc6   : > { %v2717_v58 = vor.u32 %v2886_v54, %v2714_v56 }
  0xcb   : > { %v574_v43 = vpop.f32.mrf.mxu2 }
  0xcc   : > { %v623_v44 = vpack.c.bf16 %v574_v43, %v572_v42  ;;  %v2730_v42 = vld [vmem:[#allocation4 + $0x1b4] sm:$0xf0] }
  0xce   : > { %634 = vmatpush.bf16.msrb.mxu3 %v623_v44  ;;  %v2720_v44 = vld [vmem:[#allocation4 + $0x160] sm:$0xf] }
  0xcf   : > { %v2721_v49 = vor.u32 %v2889_v45, %v2720_v44 }
  0xd2   : > { %706 = vmatpush.bf16.msra.mxu3 %v2669_v50  ;;  %v2722_v50 = vld [vmem:[#allocation4 + $0x17c] sm:$0xf0] }
  0xd3   : > { %v2725_v51 = vor.u32 %v2888_v46, %v2722_v50 }
  0xd6   : > { %707 = vmatpush.bf16.msra.mxu3 %v2665_v52  ;;  %v2712_v52 = vld [vmem:[#allocation4 + $0x128] sm:$0xf] }
  0xda   : > { %708 = vmatpush.bf16.msra.mxu3 %v2661_v55  ;;  %v2713_v55 = vor.u32 %v2887_v53, %v2712_v52 }
  0xde   : > { %709 = vmatpush.bf16.msra.mxu3 %v2657_v59  ;;  %v2704_v59 = vld [vmem:[#allocation4 + $0xf0] sm:$0xf] }
  0xe2   : > { %710 = vmatpush.bf16.msra.mxu3 %v2653_v0  ;;  %v2706_v0 = vld [vmem:[#allocation4 + $0x10c] sm:$0xf0] }
  0xe6   : > { %711 = vmatpush.bf16.msra.mxu3 %v2649_v11  ;;  %v2881_v11 = vld [vmem:[#allocation4 + $0x98] sm:$0xf0] }
  0xe7   : > { %v2689_v13 = vor.u32 %v2881_v11, %v2688_v10  ;;  %v2536_v10 = vld [vmem:[%s4197_s5 + $0x6] ss:$8 sm:$0x3] }
  0xe8   : > { %v2893_v11 = vld [vmem:[%s4196_s4 + $0x8] sm:$0xff] }
  0xea   : > { %712 = vmatpush.bf16.msra.mxu3 %v2645_v14  ;;  %v2690_v14 = vld [vmem:[#allocation4 + $0x9c] sm:$0xf0] }
 0x147   : > { %v588_v17 = vpop.f32.mrf.mxu3 }
 0x148   : > { %v593_v18 = vmul.f32 0.088388346, %v588_v17 }
 0x14a   : > { %v597_v22 = vadd.f32 %v596_v16, %v593_v18 }
 0x14c   : > { %v600_v23 = vsel %vm599_vm1, %v597_v22, -inf }
 0x14d   : > { %601 = vmax.xlane.f32.xlu0 %v600_v23 }
 0x14f   : > { %v590_v27 = vpop.f32.mrf.mxu3 }
 0x150   : > { %v594_v28 = vmul.f32 0.088388346, %v590_v27 }
 0x152   : > { %v598_v30 = vadd.f32 %v596_v16, %v594_v28  ;;  %v2868_v16 = vld [vmem:[#allocation4 + $0x24] sm:$0xf0] }
 0x153   : > { %v2641_v17 = vor.u32 %v2868_v16, %v2640_v15  ;;  %v2693_v15 = vor.u32 %v2880_v12, %v2690_v14  ;;  %v2680_v16 = vld [vmem:[#allocation4 + $0x48] sm:$0xf]  ;;  %v792_v14 = vperm.slane %v2536_v10, 1 }
 0x154   : > { %v603_v31 = vsel %vm599_vm1, %v598_v30, -inf  ;;  %v2901_v12 = vld [vmem:[%s4196_s4 + $0x48] sm:$0xff] }
 0x155   : > { %604 = vmax.xlane.f32.xlu0 %v603_v31  ;;  %713 = vmatpush.bf16.msra.mxu3 %v2641_v17  ;;  %v2879_v17 = vld [vmem:[#allocation4 + $0x60] sm:$0xf0] }
 0x1c0   : > { %v602_v32 = vpop.xlane.xlu0 %601 }
 0x1c1   : > { %v606_v33 = vsub.f32 %v597_v22, %v602_v32 }
 0x1c3   : > { %v608_v34 = vmul.f32 1.442695, %v606_v33 }
 0x1c5   : > { %2974 = vpow2.f32 %v608_v34 }
 0x1c8   : > { %v605_v35 = vpop.xlane.xlu0 %604 }
 0x1c9   : > { %v607_v36 = vsub.f32 %v598_v30, %v605_v35 }
 0x1cb   : > { %v2975_v37 = vpop.eup %2974  ;;  %v610_v38 = vmul.f32 1.442695, %v607_v36 }
 0x1cc   : > { %v612_v39 = vsel %vm599_vm1, %v2975_v37, 0.0 }
 0x1cd   : > { %2976 = vpow2.f32 %v610_v38  ;;  %613 = vadd.xlane.f32.xlu1 %v612_v39  ;;  %v2728_v38 = vld [vmem:[#allocation4 + $0x198] sm:$0xf]  ;;  %v2891_v39 = vld [vmem:[#allocation4 + $0x1b0] sm:$0xf0] }
 0x1d3   : > { %v2977_v40 = vpop.eup %2976 }
 0x1d4   : > { %v615_v41 = vsel %vm599_vm1, %v2977_v40, 0.0 }
 0x1d5   : > { %616 = vadd.xlane.f32.xlu1 %v615_v41  ;;  %v2729_v41 = vor.u32 %v2891_v39, %v2728_v38 }
 0x1d7   : > { %875 = vmatpush.bf16.msrb.mxu0 %v2729_v41 }
 0x1db   : > { %876 = vmatpush.bf16.msrb.mxu0 %v2721_v49 }
 0x1df   : > { %877 = vmatpush.bf16.msrb.mxu0 %v2713_v55  ;;  %v338_v55 = vld [vmem:[%s4197_s5 + $0x1] ss:$0 sm:$0xff] }
 0x240   : > { %v614_v60 = vpop.xlane.xlu1 %613 }
 0x241   : > { %2978 = vrcp.f32 %v614_v60  ;;  %v2885_v60 = vld [vmem:[#allocation4 + $0x108] sm:$0xf0] }
 0x242   : > { %v2705_v62 = vor.u32 %v2885_v60, %v2704_v59  ;;  %v2899_v60 = vld [vmem:[%s4196_s4 + $0x38] sm:$0xff] }
 0x243   : > { %1069 = vmatpush.bf16.msrb.mxu2 %v2899_v60 }
 0x244   : > { %878 = vmatpush.bf16.msrb.mxu0 %v2705_v62  ;;  %v2906_v62 = vld [vmem:[%s4196_s4 + $0x70] sm:$0xff] }
 0x247   : > { %v2979_v3 = vpop.eup %2978 }
 0x248   : > { %v617_v2 = vpop.xlane.xlu1 %616  ;;  %v620_v5 = vmul.f32 %v2979_v3, %v2975_v37  ;;  %v2696_v3 = vld [vmem:[#allocation4 + $0xb8] sm:$0xf] }
 0x249   : > { %2980 = vrcp.f32 %v617_v2  ;;  %v2709_v2 = vor.u32 %v2884_v61, %v2706_v0  ;;  %v2898_v61 = vld [vmem:[%s4196_s4 + $0x30] sm:$0xff]  ;;  %v2897_v0 = vld [vmem:[%s4196_s4 + $0x28] sm:$0xff] }
 0x24a   : > { %2982 = vrcp.f32 %v3128_v25  ;;  %1070 = vmatpush.bf16.msrb.mxu2 %v2898_v61 }
 0x24e   : > { %1071 = vmatpush.bf16.msrb.mxu2 %v2897_v0 }
 0x24f   : > { %v2981_v4 = vpop.eup %2980 }
 0x250   : > { %v621_v6 = vmul.f32 %v2981_v4, %v2977_v40  ;;  %v2983_v26 = vpop.eup %2982  ;;  %v2890_v40 = vld [vmem:[#allocation4 + $0x19c] sm:$0xf]  ;;  %v2883_v4 = vld [vmem:[#allocation4 + $0xd0] sm:$0xf0] }
 0x251   : > { %v727_v27 = vmul.f32 128.0, %v2983_v26  ;;  %vm731_vm2 = vweird.f32 %v2983_v26  ;;  %v2733_v43 = vor.u32 %v2890_v40, %v2730_v42 }
 0x252   : > { %v622_v8 = vpack.c.bf16 %v621_v6, %v620_v5  ;;  %v2882_v5 = vld [vmem:[#allocation4 + $0xbc] sm:$0xf]  ;;  %v2697_v6 = vor.u32 %v2883_v4, %v2696_v3  ;;  %v2896_v3 = vld [vmem:[%s4196_s4 + $0x20] sm:$0xff] }
 0x253   : > { %v728_v28 = vsub.f32 1.0, %v727_v27  ;;  %889 = vmatpush.bf16.msrb.mxu1 %v2733_v43  ;;  %v2674_v27 = vld [vmem:[#allocation4 + $0x2c] sm:$0xf0]  ;;  %v2904_v4 = vld [vmem:[%s4196_s4 + $0x60] sm:$0xff]  ;;  %1072 = vmatpush.bf16.msrb.mxu2 %v2896_v3 }
 0x254   : > { %2637 = vmatmul.msk.bf16.vlgmr.msrb.gmra.mxu3 %vm599_vm1, %v622_v8  ;;  %v2698_v8 = vld [vmem:[#allocation4 + $0xd4] sm:$0xf0]  ;;  %879 = vmatpush.bf16.msrb.mxu0 %v2697_v6  ;;  %vm1224_vm1 = vcmask 64512  }
 0x255   : > { %v729_v29 = vmul.f32 %v2983_v26, %v728_v28  ;;  %v2701_v9 = vor.u32 %v2882_v5, %v2698_v8  ;;  %v2895_v5 = vld [vmem:[%s4196_s4 + $0x18] sm:$0xff]  ;;  %v2894_v8 = vld [vmem:[%s4196_s4 + $0x10] sm:$0xff] }
 0x256   : > { %v2903_v6 = vld [vmem:[%s4196_s4 + $0x58] sm:$0xff] }
 0x257   : > { %v730_v30 = vadd.f32 %v2983_v26, %v729_v29  ;;  %890 = vmatpush.bf16.msrb.mxu1 %v2725_v51  ;;  %v337_v51 = vld [vmem:[%s4197_s5] ss:$0 sm:$0xff]  ;;  %1073 = vmatpush.bf16.msrb.mxu2 %v2895_v5  ;;  %v341_v5 = vld [vmem:[%s4197_s5 + $0x4] ss:$0 sm:$0xff] }
 0x258   : > { %880 = vmatpush.bf16.msrb.mxu0 %v2689_v13  ;;  %v791_v13 = vperm.slane %v2536_v10, 0 }
 0x259   : > { %v3243_v31 = vsel %vm731_vm2, %v2983_v26, %v730_v30 }
 0x25b   : > { %891 = vmatpush.bf16.msrb.mxu1 %v2717_v58  ;;  %1074 = vmatpush.bf16.msrb.mxu2 %v2894_v8 }
 0x25f   : > { %892 = vmatpush.bf16.msrb.mxu1 %v2709_v2  ;;  %v2905_v2 = vld [vmem:[%s4196_s4 + $0x68] sm:$0xff]  ;;  %1075 = vmatpush.bf16.msrb.mxu2 %v2893_v11 }
 0x263   : > { %893 = vmatpush.bf16.msrb.mxu1 %v2701_v9  ;;  %v2902_v9 = vld [vmem:[%s4196_s4 + $0x50] sm:$0xff] }
 0x267   : > { %894 = vmatpush.bf16.msrb.mxu1 %v2693_v15 }
 0x2d7   : > { %v636_v18 = vpop.f32.mrf.mxu3 }
 0x2df   : > { %v638_v19 = vpop.f32.mrf.mxu3 }
 0x2e0   : > { %v641_v20 = vpack.c.bf16 %v638_v19, %v636_v18  ;;  %v2878_v18 = vld [vmem:[#allocation4 + $0x4c] sm:$0xf]  ;;  %v2681_v19 = vor.u32 %v2879_v17, %v2680_v16  ;;  %v2892_v17 = vld [vmem:[%s4196_s4] sm:$0xff] }
 0x2e1   : > { %1076 = vmatpush.bf16.msrb.mxu2 %v2892_v17 }
 0x2e2   : > { %714 = vmatmul.bf16.vlgmr.msra.gmra.mxu3 %v641_v20  ;;  %v2682_v20 = vld [vmem:[#allocation4 + $0x64] sm:$0xf0]  ;;  %881 = vmatpush.bf16.msrb.mxu0 %v2681_v19 }
 0x365   : > { %v715_v21 = vpop.f32.mrf.mxu3 }
 0x366   : > { %v720_v22 = vadd.f32 %v715_v21, %v3213_v47  ;;  %v2685_v21 = vor.u32 %v2878_v18, %v2682_v20  ;;  %v2900_v18 = vld [vmem:[%s4196_s4 + $0x40] sm:$0xff] }
 0x368   : > { %722 = vadd.xlane.f32.xlu2 %v720_v22  ;;  %895 = vmatpush.bf16.msrb.mxu1 %v2685_v21 }
 0x36d   : > { %v717_v23 = vpop.f32.mrf.mxu3 }
 0x36e   : > { %v721_v24 = vadd.f32 %v717_v23, %v3215_v48  ;;  %v2877_v23 = vld [vmem:[#allocation4 + $0x28] sm:$0xf0] }
 0x370   : > { %724 = vadd.xlane.f32.xlu2 %v721_v24 }
 0x3db   : > { %v723_v32 = vpop.xlane.xlu2 %722 }
 0x3dc   : > { %v733_v33 = vmul.f32 %v3243_v31, %v723_v32 }
 0x3de   : > { %v3246_v34 = vsub.f32 %v720_v22, %v733_v33  ;;  %v2672_v22 = vld [vmem:[#allocation4 + $0x10] sm:$0xf] }
 0x3df   : > { %v2673_v26 = vor.u32 %v2877_v23, %v2672_v22 }
 0x3e0   : > { %v737_v47 = vmul.f32 %v3246_v34, %v3246_v34 }
 0x3e1   : > { %882 = vmatpush.bf16.msrb.mxu0 %v2673_v26 }
 0x3e2   : > { %739 = vadd.xlane.f32.xlu0 %v737_v47 }
 0x3e3   : > { %v725_v48 = vpop.xlane.xlu2 %724 }
 0x3e4   : > { %v734_v35 = vmul.f32 %v3243_v31, %v725_v48 }
 0x3e6   : > { %v3251_v36 = vsub.f32 %v721_v24, %v734_v35  ;;  %v2876_v24 = vld [vmem:[#allocation4 + $0x14] sm:$0xf] }
 0x3e7   : > { %v2677_v29 = vor.u32 %v2876_v24, %v2674_v27 }
 0x3e8   : > { %v738_v37 = vmul.f32 %v3251_v36, %v3251_v36 }
 0x3e9   : > { %896 = vmatpush.bf16.msrb.mxu1 %v2677_v29 }
 0x3ea   : > { %741 = vadd.xlane.f32.xlu1 %v738_v37 }
 0x455   : > { %v740_v25 = vpop.xlane.xlu0 %739 }
 0x456   : > { %v743_v28 = vmul.f32 %v740_v25, %v3243_v31 }
 0x458   : > { %v745_v30 = vadd.f32 1e-12, %v743_v28 }
 0x45a   : > { %2984 = vrsqrt.f32 %v745_v30  ;;  %vm753_vm4 = vweird.f32 %v745_v30 }
 0x45d   : > { %v742_v32 = vpop.xlane.xlu1 %741 }
 0x45e   : > { %v744_v33 = vmul.f32 %v742_v32, %v3243_v31 }
 0x460   : > { %v2985_v47 = vpop.eup %2984  ;;  %v746_v48 = vadd.f32 1e-12, %v744_v33 }
 0x461   : > { %v748_v35 = vmul.f32 %v2985_v47, %v745_v30  ;;  %vm754_vm3 = vweird.f32 %v2985_v47 }
 0x462   : > { %2986 = vrsqrt.f32 %v746_v48  ;;  %vm755_vm5 = vmor %vm753_vm4, %vm754_vm3  ;;  %vm763_vm7 = vweird.f32 %v746_v48 }
 0x463   : > { %v749_v37 = vmul.f32 %v2985_v47, %v748_v35 }
 0x465   : > { %v750_v38 = vmul.f32 0.5, %v749_v37 }
 0x467   : > { %v751_v39 = vsub.f32 1.5, %v750_v38 }
 0x468   : > { %v2987_v40 = vpop.eup %2986 }
 0x469   : > { %v752_v41 = vmul.f32 %v2985_v47, %v751_v39  ;;  %v758_v42 = vmul.f32 %v2987_v40, %v746_v48  ;;  %vm764_vm6 = vweird.f32 %v2987_v40 }
 0x46a   : > { %vm765_vm8 = vmor %vm763_vm7, %vm764_vm6 }
 0x46b   : > { %v759_v43 = vmul.f32 %v2987_v40, %v758_v42  ;;  %v756_v44 = vsel %vm755_vm5, %v2985_v47, %v752_v41 }
 0x46c   : > { %v767_v49 = vmul.f32 %v756_v44, %v3246_v34 }
 0x46d   : > { %v760_v45 = vmul.f32 0.5, %v759_v43 }
 0x46e   : > { %v769_v54 = vmul.f32 %v767_v49, %v337_v51 }
 0x46f   : > { %v761_v46 = vsub.f32 1.5, %v760_v45 }
 0x470   : > { %v3265_v58 = vadd.f32 %v769_v54, %v338_v55 }
 0x471   : > { %v762_v50 = vmul.f32 %v2987_v40, %v761_v46 }
 0x473   : > { %v766_v52 = vsel %vm765_vm8, %v2987_v40, %v762_v50 }
 0x474   : > { %v768_v53 = vmul.f32 %v766_v52, %v3251_v36  ;;  %v2907_v36 = vld [vmem:[%s4196_s4 + $0x78] sm:$0xff] }
 0x475   : > { %1083 = vmatpush.bf16.msrb.mxu3 %v2907_v36 }
 0x476   : > { %v770_v56 = vmul.f32 %v768_v53, %v337_v51 }
 0x478   : > { %v3267_v59 = vadd.f32 %v770_v56, %v338_v55 }
 0x479   : > { %1084 = vmatpush.bf16.msrb.mxu3 %v2906_v62 }
 0x47a   : > { %v773_v34 = vpack.c.bf16 %v3267_v59, %v3265_v58 }
 0x47c   : > { %883 = vmatmul.bf16.vlgmr.msrb.gmra.mxu0 %v773_v34  ;;  %897 = vmatmul.bf16.vlgmr.msrb.gmra.mxu1 %v773_v34 }
 0x47d   : > { %1085 = vmatpush.bf16.msrb.mxu3 %v2905_v2 }
 0x481   : > { %1086 = vmatpush.bf16.msrb.mxu3 %v2904_v4 }
 0x485   : > { %1087 = vmatpush.bf16.msrb.mxu3 %v2903_v6 }
 0x489   : > { %1088 = vmatpush.bf16.msrb.mxu3 %v2902_v9 }
 0x48d   : > { %1089 = vmatpush.bf16.msrb.mxu3 %v2901_v12 }
 0x491   : > { %1090 = vmatpush.bf16.msrb.mxu3 %v2900_v18 }
 0x4f9   : > { %v884_v15 = vpop.f32.mrf.mxu0  ;;  %v898_v16 = vpop.f32.mrf.mxu1 }
 0x4fa   : > { %v885_v19 = vadd.f32 %v884_v15, %v791_v13  ;;  %v899_v20 = vadd.f32 %v898_v16, %v792_v14 }
 0x4fc   : > { %v903_v21 = vmul.f32 %v885_v19, %v885_v19  ;;  %v904_v22 = vmul.f32 %v899_v20, %v899_v20 }
 0x4fe   : > { %v907_v23 = vmul.f32 %v903_v21, %v885_v19  ;;  %v908_v24 = vmul.f32 %v904_v22, %v899_v20 }
 0x500   : > { %v911_v25 = vmul.f32 0.044715, %v907_v23  ;;  %v912_v26 = vmul.f32 0.044715, %v908_v24  ;;  %v2915_v24 = vld [vmem:[#allocation4 + $0x1b8] sm:$0xf0] }
 0x501   : > { %v886_v27 = vpop.f32.mrf.mxu0  ;;  %v900_v28 = vpop.f32.mrf.mxu1 }
 0x502   : > { %v915_v29 = vadd.f32 %v911_v25, %v885_v19  ;;  %v916_v30 = vadd.f32 %v912_v26, %v899_v20  ;;  %v887_v32 = vadd.f32 %v886_v27, %v791_v13  ;;  %v901_v33 = vadd.f32 %v900_v28, %v792_v14  ;;  %v2824_v26 = vld [vmem:[#allocation4 + $0x168] sm:$0xf]  ;;  %v2914_v27 = vld [vmem:[#allocation4 + $0x180] sm:$0xf0] }
 0x503   : > { %v2825_v28 = vor.u32 %v2914_v27, %v2824_v26 }
 0x504   : > { %v919_v47 = vmul.f32 0.7978846, %v915_v29  ;;  %v905_v48 = vmul.f32 %v887_v32, %v887_v32  ;;  %v906_v35 = vmul.f32 %v901_v33, %v901_v33  ;;  %v920_v37 = vmul.f32 0.7978846, %v916_v30  ;;  %v2820_v29 = vld [vmem:[#allocation4 + $0x130] sm:$0xf] }
 0x505   : > { %v2913_v30 = vld [vmem:[#allocation4 + $0x148] sm:$0xf0] }
 0x506   : > { %v909_v38 = vmul.f32 %v905_v48, %v887_v32  ;;  %v910_v39 = vmul.f32 %v906_v35, %v901_v33  ;;  %2988 = vtanh.f32 %v919_v47  ;;  %v2912_v47 = vld [vmem:[#allocation4 + $0x110] sm:$0xf0]  ;;  %v2812_v35 = vld [vmem:[#allocation4 + $0xc0] sm:$0xf] }
 0x507   : > { %2990 = vtanh.f32 %v920_v37  ;;  %v2911_v37 = vld [vmem:[#allocation4 + $0xd8] sm:$0xf0] }
 0x508   : > { %v913_v40 = vmul.f32 0.044715, %v909_v38  ;;  %v914_v41 = vmul.f32 0.044715, %v910_v39  ;;  %v2813_v38 = vor.u32 %v2911_v37, %v2812_v35  ;;  %v2808_v39 = vld [vmem:[#allocation4 + $0x88] sm:$0xf] }
 0x50a   : > { %v917_v42 = vadd.f32 %v913_v40, %v887_v32  ;;  %v918_v43 = vadd.f32 %v914_v41, %v901_v33  ;;  %v2910_v40 = vld [vmem:[#allocation4 + $0xa0] sm:$0xf0] }
 0x50b   : > { %v2809_v41 = vor.u32 %v2910_v40, %v2808_v39  ;;  %v1386_v39 = vstv %s1381_s19  ;;  %s1744_s19 = scalar_select %p1743_p1, 1.0, 0.0 }
 0x50c   : > { %v921_v44 = vmul.f32 0.7978846, %v917_v42  ;;  %v922_v45 = vmul.f32 0.7978846, %v918_v43  ;;  %v2989_v46 = vpop.eup %2988  ;;  %v2804_v42 = vld [vmem:[#allocation4 + $0x50] sm:$0xf] }
 0x50d   : > { %v2991_v49 = vpop.eup %2990  ;;  %v927_v50 = vadd.f32 1.0, %v2989_v46  ;;  %v2909_v43 = vld [vmem:[#allocation4 + $0x68] sm:$0xf0]  ;;  %v2908_v46 = vld [vmem:[#allocation4 + $0x30] sm:$0xf0] }
 0x50e   : > { %2992 = vtanh.f32 %v921_v44  ;;  %v928_v51 = vadd.f32 1.0, %v2991_v49  ;;  %v2805_v44 = vor.u32 %v2909_v43, %v2804_v42  ;;  %v3409_v43 = vld [vmem:[%s4198_s6] sm:$0xff] }
 0x50f   : > { %2994 = vtanh.f32 %v922_v45  ;;  %v931_v55 = vmul.f32 0.5, %v927_v50  ;;  %v2800_v45 = vld [vmem:[#allocation4 + $0x18] sm:$0xf]  ;;  %1306 = vmatpush.msra.mxu2 %v3409_v43 }
 0x510   : > { %v932_v56 = vmul.f32 0.5, %v928_v51  ;;  %v2801_v51 = vor.u32 %v2908_v46, %v2800_v45  ;;  %v1412_v45 = vstv %s1411_s23  ;;  %s1837_s23 = scalar_select %p1835_p3, 1, 0 }
 0x511   : > { %v935_v61 = vmul.f32 %v931_v55, %v885_v19  ;;  %vm1413_vm2 = vcmp.eq.s32.totalorder %v1412_v45, 1 }
 0x512   : > { %v936_v0 = vmul.f32 %v932_v56, %v899_v20 }
 0x514   : > { %v2993_v52 = vpop.eup %2992 }
 0x515   : > { %v2995_v53 = vpop.eup %2994  ;;  %v929_v54 = vadd.f32 1.0, %v2993_v52 }
 0x516   : > { %v930_v34 = vadd.f32 1.0, %v2995_v53 }
 0x517   : > { %v933_v60 = vmul.f32 0.5, %v929_v54 }
 0x518   : > { %v934_v36 = vmul.f32 0.5, %v930_v34 }
 0x519   : > { %v937_v62 = vmul.f32 %v933_v60, %v887_v32  ;;  %v2821_v32 = vor.u32 %v2913_v30, %v2820_v29 }
 0x51a   : > { %v938_v2 = vmul.f32 %v934_v36, %v901_v33  ;;  %v2816_v33 = vld [vmem:[#allocation4 + $0xf8] sm:$0xf] }
 0x51b   : > { %v939_v3 = vpack.c.bf16 %v937_v62, %v935_v61  ;;  %v2817_v48 = vor.u32 %v2912_v47, %v2816_v33  ;;  %v3129_v33 = vmov 1  }
 0x51c   : > { %v940_v4 = vpack.c.bf16 %v938_v2, %v936_v0  ;;  %2952 = vset.pattern.permute.xlu0 %v3129_v33  ;;  %2951 = vset.pattern.permute.xlu2 %v3129_v33 }
 0x51d   : > { %1077 = vmatmul.bf16.vlgmr.msrb.gmra.mxu2 %v939_v3 }
 0x51e   : > { %1091 = vmatmul.bf16.vlgmr.msrb.gmra.mxu3 %v940_v4 }
 0x5a0   : > { %v1078_v6 = vpop.f32.mrf.mxu2 }
 0x5a1   : > { %v1079_v8 = vadd.f32 %v1078_v6, %v341_v5  ;;  %v1092_v9 = vpop.f32.mrf.mxu3 }
 0x5a3   : > { %v1093_v10 = vadd.f32 %v1092_v9, %v1079_v8  ;;  %v339_v9 = vld [vmem:[%s4197_s5 + $0x2] ss:$0 sm:$0xff] }
 0x5a5   : > { %v1097_v11 = vadd.f32 %v1093_v10, %v3265_v58 }
 0x5a7   : > { %1099 = vadd.xlane.f32.xlu2 %v1097_v11 }
 0x5a8   : > { %v1080_v12 = vpop.f32.mrf.mxu2 }
 0x5a9   : > { %v1081_v13 = vadd.f32 %v1080_v12, %v341_v5  ;;  %v1094_v14 = vpop.f32.mrf.mxu3 }
 0x5ab   : > { %v1095_v15 = vadd.f32 %v1094_v14, %v1081_v13  ;;  %v340_v13 = vld [vmem:[%s4197_s5 + $0x3] ss:$0 sm:$0xff] }
 0x5ad   : > { %v1098_v16 = vadd.f32 %v1095_v15, %v3267_v59  ;;  %v2828_v59 = vld [vmem:[#allocation4 + $0x1a0] sm:$0xf] }
 0x5ae   : > { %v2829_v25 = vor.u32 %v2915_v24, %v2828_v59  ;;  %v3375_v24 = vld [vmem:[%s4198_s6 + $0x8] sm:$0xff] }
 0x5af   : > { %1101 = vadd.xlane.f32.xlu0 %v1098_v16 }
 0x5b0   : > { %1208 = vmatpush.bf16.msra.mxu0 %v2829_v25 }
 0x5b4   : > { %1209 = vmatpush.bf16.msra.mxu0 %v2825_v28 }
 0x5b8   : > { %1210 = vmatpush.bf16.msra.mxu0 %v2821_v32 }
 0x5bc   : > { %1211 = vmatpush.bf16.msra.mxu0 %v2817_v48 }
 0x5c0   : > { %1212 = vmatpush.bf16.msra.mxu0 %v2813_v38 }
 0x5c4   : > { %1213 = vmatpush.bf16.msra.mxu0 %v2809_v41 }
 0x5c8   : > { %1214 = vmatpush.bf16.msra.mxu0 %v2805_v44 }
 0x5cc   : > { %1215 = vmatpush.bf16.msra.mxu0 %v2801_v51 }
 0x61a   : > { %v1100_v17 = vpop.xlane.xlu2 %1099 }
 0x61b   : > { %v1103_v18 = vmul.f32 %v1100_v17, %v3243_v31 }
 0x61d   : > { %v3328_v19 = vsub.f32 %v1097_v11, %v1103_v18  ;;  %v3348_v18 = vshrl.u32 %v350_v57, 7 }
 0x61f   : > { %v1107_v20 = vmul.f32 %v3328_v19, %v3328_v19  ;;  %vm354_vm15 = vcmp.eq.s32.totalorder %v3348_v18, %v3227_v63 }
 0x621   : > { %1109 = vadd.xlane.f32.xlu1 %v1107_v20 }
 0x622   : > { %v1102_v21 = vpop.xlane.xlu0 %1101 }
 0x623   : > { %v1104_v58 = vmul.f32 %v1102_v21, %v3243_v31  ;;  %v342_v21 = vld [vmem:[%s4197_s5 + $0x5] ss:$0 sm:$0xff] }
 0x625   : > { %v3333_v22 = vsub.f32 %v1098_v16, %v1104_v58  ;;  %v1383_v58 = vstv %s1382_s29  ;;  %s1561_s29 = scalar_select %p1559_p11, 1, 0 }
 0x626   : > { %vm1384_vm0 = vcmp.eq.s32.totalorder %v1383_v58, 1 }
 0x627   : > { %v1108_v23 = vmul.f32 %v3333_v22, %v3333_v22 }
 0x629   : > { %1111 = vadd.xlane.f32.xlu2 %v1108_v23  ;;  %v345_v23 = vld [vmem:[%s4197_s5 + $0x7] ss:$0 sm:$0xff] }
 0x694   : > { %v1110_v49 = vpop.xlane.xlu1 %1109 }
 0x695   : > { %v1113_v50 = vmul.f32 %v1110_v49, %v3243_v31 }
 0x697   : > { %v1115_v52 = vadd.f32 1e-12, %v1113_v50 }
 0x699   : > { %2996 = vrsqrt.f32 %v1115_v52  ;;  %vm1123_vm10 = vweird.f32 %v1115_v52 }
 0x69c   : > { %v1112_v53 = vpop.xlane.xlu2 %1111 }
 0x69d   : > { %v1114_v54 = vmul.f32 %v1112_v53, %v3243_v31 }
 0x69f   : > { %v2997_v55 = vpop.eup %2996  ;;  %v1116_v56 = vadd.f32 1e-12, %v1114_v54 }
 0x6a0   : > { %v1118_v34 = vmul.f32 %v2997_v55, %v1115_v52  ;;  %vm1124_vm9 = vweird.f32 %v2997_v55 }
 0x6a1   : > { %2998 = vrsqrt.f32 %v1116_v56  ;;  %vm1125_vm11 = vmor %vm1123_vm10, %vm1124_vm9  ;;  %vm1133_vm13 = vweird.f32 %v1116_v56 }
 0x6a2   : > { %v1119_v60 = vmul.f32 %v2997_v55, %v1118_v34 }
 0x6a4   : > { %v1120_v36 = vmul.f32 0.5, %v1119_v60 }
 0x6a6   : > { %v1121_v61 = vsub.f32 1.5, %v1120_v36 }
 0x6a7   : > { %v2999_v62 = vpop.eup %2998 }
 0x6a8   : > { %v1122_v0 = vmul.f32 %v2997_v55, %v1121_v61  ;;  %v1128_v2 = vmul.f32 %v2999_v62, %v1116_v56  ;;  %vm1134_vm12 = vweird.f32 %v2999_v62  ;;  %v1415_v61 = vstv %s1410_s24  ;;  %s1836_s24 = scalar_select %p1835_p3, 1.0, 0.0 }
 0x6a9   : > { %vm1135_vm14 = vmor %vm1133_vm13, %vm1134_vm12 }
 0x6aa   : > { %v1129_v3 = vmul.f32 %v2999_v62, %v1128_v2  ;;  %v1126_v4 = vsel %vm1125_vm11, %v2997_v55, %v1122_v0 }
 0x6ab   : > { %v1137_v31 = vmul.f32 %v1126_v4, %v3328_v19  ;;  %v2537_v19 = vsel %vm354_vm15, 1.0, %v4201_v7 }
 0x6ac   : > { %v1130_v5 = vmul.f32 0.5, %v1129_v3  ;;  %v357_v20 = vsub.f32 1.0, %v2537_v19 }
 0x6ad   : > { %v1139_v12 = vmul.f32 %v1137_v31, %v339_v9 }
 0x6ae   : > { %v1131_v6 = vsub.f32 1.5, %v1130_v5  ;;  %v3365_v57 = vmul.f32 -1e+09, %v357_v20 }
 0x6af   : > { %v1141_v15 = vadd.f32 %v1139_v12, %v340_v13 }
 0x6b0   : > { %v1132_v8 = vmul.f32 %v2999_v62, %v1131_v6  ;;  %v1385_v26 = vsel %vm1384_vm0, %v3375_v24, %v3365_v57  ;;  %v1414_v49 = vsel %vm1413_vm2, %v3409_v43, %v3365_v57 }
 0x6b2   : > { %v1136_v10 = vsel %vm1135_vm14, %v2999_v62, %v1132_v8  ;;  %v1470_v62 = vstv %s1469_s25  ;;  %s1871_s25 = scalar_select %p1869_p4, 1, 0 }
 0x6b3   : > { %v1138_v11 = vmul.f32 %v1136_v10, %v3333_v22  ;;  %vm1471_vm3 = vcmp.eq.s32.totalorder %v1470_v62, 1 }
 0x6b4   : > { %v1472_v5 = vsel %vm1471_vm3, %v3375_v24, %v3365_v57 }
 0x6b5   : > { %v1140_v14 = vmul.f32 %v1138_v11, %v339_v9 }
 0x6b7   : > { %v1142_v16 = vadd.f32 %v1140_v14, %v340_v13 }
 0x6b9   : > { %v1143_v17 = vpack.c.bf16 %v1142_v16, %v1141_v15 }
 0x6bb   : > { %1216 = vmatmul.bf16.vlgmr.msra.gmra.mxu0 %v1143_v17 }
 0x738   : > { %v1217_v22 = vpop.f32.mrf.mxu0 }
 0x739   : > { %v3370_v59 = vadd.f32 %v1217_v22, %v342_v21  ;;  %v3130_v22 = vmov 3  }
 0x73a   : > { %2953 = vset.pattern.permute.xlu1 %v3130_v22 }
 0x73b   : > { %1222 = vst [vmem:[%s3363_s12] sm:$0xff] %v3370_v59  ;;  %v1379_v25 = vadd.f32 %v3370_v59, %v345_v23  ;;  %v1416_v3 = vmul.f32 %v1415_v61, %v3370_v59 }
 0x73d   : > { %v1388_v27 = vperm.slane %v1379_v25, 0 }
 0x73f   : > { %v3382_v28 = vadd.f32 %v1388_v27, %v1385_v26 }
 0x740   : > { %v1219_v29 = vpop.f32.mrf.mxu0 }
 0x741   : > { %v3384_v30 = vadd.f32 %v1219_v29, %v342_v21  ;;  %v1390_v32 = vsel %vm1224_vm1, %v3382_v28, -inf }
 0x742   : > { %1391 = vmax.xlane.f32.xlu0 %v1390_v32 }
 0x743   : > { %1223 = vst [vmem:[%s3363_s12 + $0x8] sm:$0xff] %v3384_v30  ;;  %2830 = vmatpush.xpose.msk.msra.mxu1 %vm1224_vm1, %v3384_v30 }
 0x747   : > { %2831 = vmatpush.xpose.msk.msra.mxu1 %vm1224_vm1, %v3370_v59 }
 0x74a   : > { %2832 = vmatmul.msk.f32.vlgmr.msra.gmra.mxu1 %vm1224_vm1, %v2537_v19 }
 0x7b5   : > { %v3395_v47 = vpop.xlane.xlu0 %1391 }
 0x7b6   : > { %v1393_v48 = vsub.f32 %v3382_v28, %v3395_v47 }
 0x7b8   : > { %v1394_v35 = vmul.f32 1.442695, %v1393_v48 }
 0x7ba   : > { %3000 = vpow2.f32 %v1394_v35 }
 0x7c0   : > { %v3001_v37 = vpop.eup %3000 }
 0x7c1   : > { %v1396_v38 = vsel %vm1224_vm1, %v3001_v37, 0.0 }
 0x7c2   : > { %1397 = vadd.xlane.f32.xlu1 %v1396_v38 }
 0x7c7   : > { %v3402_v40 = vpop.f32.mrf.mxu1 }
 0x7c8   : > { %v1387_v41 = vmul.f32 %v1386_v39, %v3402_v40 }
 0x7ca   : > { %v1408_v42 = vadd.f32 %v3395_v47, %v1387_v41 }
 0x7cc   : > { %1446 = vperm.xlu0 %2952, %v1408_v42   ;;  %v1473_v42 = vstv %s1468_s26  ;;  %s1870_s26 = scalar_select %p1869_p4, 1.0, 0.0 }
 0x7cd   : > { %v1474_v45 = vmul.f32 %v1473_v42, %v3402_v40 }
 0x835   : > { %v1398_v44 = vpop.xlane.xlu1 %1397 }
 0x836   : > { %3002 = vlog2.f32 %v1398_v44 }
 0x83c   : > { %v3003_v46 = vpop.eup %3002 }
 0x83d   : > { %v1400_v50 = vmul.f32 0.6931472, %v3003_v46 }
 0x83e   : > { %v1447_v51 = vpop.permute.xlu0 %1446 }
 0x83f   : > { %v1401_v52 = vadd.f32 %v1400_v50, %v3395_v47  ;;  %v3418_v53 = vadd.f32 %v1447_v51, %v1414_v49 }
 0x841   : > { %v1450_v54 = vsel %vm1224_vm1, %v3418_v53, -inf  ;;  %v1402_v55 = vadd.f32 %v1401_v52, %v1387_v41 }
 0x842   : > { %v1451_v56 = vrot.slane %v1450_v54, 4 }
 0x843   : > { %1419 = vperm.xlu2 %2951, %v1402_v55   ;;  %v1504_v55 = vstv %s1503_s27  ;;  %s1929_s27 = scalar_select %p1927_p5, 1, 0 }
 0x844   : > { %v1452_v34 = vmax.f32 %v1450_v54, %v1451_v56  ;;  %vm1505_vm5 = vcmp.eq.s32.totalorder %v1504_v55, 1 }
 0x845   : > { %v1506_v56 = vsel %vm1505_vm5, %v3409_v43, %v3365_v57 }
 0x846   : > { %v1453_v60 = vrot.slane %v1452_v34, 2 }
 0x848   : > { %v1454_v36 = vmax.f32 %v1452_v34, %v1453_v60 }
 0x84a   : > { %v1455_v0 = vrot.slane %v1454_v36, 1 }
 0x84c   : > { %v3427_v2 = vmax.f32 %v1454_v36, %v1455_v0 }
 0x84e   : > { %v1466_v4 = vadd.f32 %v3427_v2, %v1416_v3 }
 0x850   : > { %v1490_v6 = vperm.slane %v1466_v4, 2  ;;  %v1507_v4 = vstv %s1502_s28  ;;  %s1928_s28 = scalar_select %p1927_p5, 1.0, 0.0 }
 0x852   : > { %v3435_v31 = vadd.f32 %v1490_v6, %v1472_v5 }
 0x854   : > { %v1492_v8 = vsel %vm1224_vm1, %v3435_v31, -inf }
 0x855   : > { %1493 = vmax.xlane.f32.xlu1 %v1492_v8 }
 0x89d   : > { %v1420_v9 = vpop.permute.xlu2 %1419 }
 0x89e   : > { %v1422_v10 = vadd.f32 %v1420_v9, %v1414_v49  ;;  %v3466_v9 = vmul.f32 %v1507_v4, %v3370_v59  ;;  %v1654_v4 = vstv %s1653_s0 }
 0x89f   : > { %vm1655_vm9 = vcmp.eq.s32.totalorder %v1654_v4, 1 }
 0x8a0   : > { %v1423_v11 = vsel %vm1224_vm1, %v1422_v10, -inf }
 0x8a1   : > { %v1424_v12 = vrot.slane %v1423_v11, 4 }
 0x8a3   : > { %v1425_v13 = vmax.f32 %v1423_v11, %v1424_v12 }
 0x8a5   : > { %v1426_v14 = vrot.slane %v1425_v13, 2 }
 0x8a7   : > { %v1427_v15 = vmax.f32 %v1425_v13, %v1426_v14 }
 0x8a9   : > { %v1428_v16 = vrot.slane %v1427_v15, 1 }
 0x8ab   : > { %v1429_v17 = vmax.f32 %v1427_v15, %v1428_v16  ;;  %v3131_v16 = vmov 5  }
 0x8ac   : > { %2956 = vset.pattern.permute.xlu0 %v3131_v16 }
 0x8ad   : > { %v1430_v19 = vsub.f32 %v1422_v10, %v1429_v17 }
 0x8af   : > { %v1431_v20 = vmul.f32 1.442695, %v1430_v19 }
 0x8b1   : > { %3004 = vpow2.f32 %v1431_v20 }
 0x8b7   : > { %v3005_v21 = vpop.eup %3004 }
 0x8b8   : > { %v1433_v58 = vsel %vm1224_vm1, %v3005_v21, 0.0 }
 0x8b9   : > { %v1434_v23 = vrot.slane %v1433_v58, 4 }
 0x8bb   : > { %v1435_v25 = vadd.f32 %v1434_v23, %v1433_v58  ;;  %v1565_v58 = vstv %s1560_s30  ;;  %s1962_s30 = scalar_select %p1961_p6, 1.0, 0.0 }
 0x8bc   : > { %v3484_v22 = vmul.f32 %v1565_v58, %v3402_v40 }
 0x8bd   : > { %v1436_v26 = vrot.slane %v1435_v25, 2 }
 0x8bf   : > { %v1437_v27 = vadd.f32 %v1436_v26, %v1435_v25 }
 0x8c1   : > { %v1438_v29 = vrot.slane %v1437_v27, 1 }
 0x8c3   : > { %v1439_v32 = vadd.f32 %v1438_v29, %v1437_v27 }
 0x8c5   : > { %3006 = vlog2.f32 %v1439_v32 }
 0x8c8   : > { %v3444_v44 = vpop.xlane.xlu1 %1493 }
 0x8c9   : > { %v1500_v46 = vadd.f32 %v3444_v44, %v1474_v45  ;;  %vm1495_vm4 = vcmp.eq.f32.partialorder %v3435_v31, %v3444_v44 }
 0x8cb   : > { %v3007_v33 = vpop.eup %3006 }
 0x8cc   : > { %v1441_v48 = vmul.f32 0.6931472, %v3007_v33 }
 0x8ce   : > { %v1442_v35 = vadd.f32 %v1441_v48, %v1429_v17 }
 0x8d0   : > { %v1443_v37 = vadd.f32 %v1442_v35, %v1416_v3 }
 0x8d2   : > { %v1475_v38 = vperm.slane %v1443_v37, 2 }
 0x8d4   : > { %v1476_v39 = vadd.f32 %v1475_v38, %v1472_v5  ;;  %v1562_v5 = vstv %s1561_s29  ;;  %s1963_s29 = scalar_select %p1961_p6, 1, 0 }
 0x8d5   : > { %vm1563_vm6 = vcmp.eq.s32.totalorder %v1562_v5, 1 }
 0x8d6   : > { %v1477_v41 = vsel %vm1224_vm1, %v1476_v39, -inf  ;;  %v3474_v11 = vsel %vm1563_vm6, %v3375_v24, %v3365_v57 }
 0x8d7   : > { %1478 = vmax.xlane.f32.xlu1 %v1477_v41 }
 0x8f0   : > { %1538 = vperm.xlu1 %2953, %v1500_v46  }
 0x94a   : > { %v1479_v49 = vpop.xlane.xlu1 %1478 }
 0x94b   : > { %v1480_v50 = vsub.f32 %v1476_v39, %v1479_v49  ;;  %v1596_v39 = vstv %s1595_s10  ;;  %s2021_s10 = scalar_select %p2019_p7, 1, 0 }
 0x94c   : > { %vm1597_vm8 = vcmp.eq.s32.totalorder %v1596_v39, 1 }
 0x94d   : > { %v1481_v51 = vmul.f32 1.442695, %v1480_v50 }
 0x94f   : > { %3008 = vpow2.f32 %v1481_v51 }
 0x955   : > { %v3009_v52 = vpop.eup %3008 }
 0x956   : > { %v1483_v54 = vsel %vm1224_vm1, %v3009_v52, 0.0 }
 0x957   : > { %1484 = vadd.xlane.f32.xlu2 %v1483_v54 }
 0x962   : > { %v1539_v34 = vpop.permute.xlu1 %1538 }
 0x963   : > { %v3454_v60 = vadd.f32 %v1539_v34, %v1506_v56 }
 0x965   : > { %v1542_v36 = vsel %vm1224_vm1, %v3454_v60, -inf }
 0x966   : > { %v1543_v61 = vrot.slane %v1542_v36, 4 }
 0x968   : > { %v1544_v62 = vmax.f32 %v1542_v36, %v1543_v61 }
 0x96a   : > { %v1545_v0 = vrot.slane %v1544_v62, 2 }
 0x96c   : > { %v1546_v3 = vmax.f32 %v1544_v62, %v1545_v0 }
 0x96e   : > { %v1547_v6 = vrot.slane %v1546_v3, 1 }
 0x970   : > { %v3463_v8 = vmax.f32 %v1546_v3, %v1547_v6  ;;  %v1599_v3 = vstv %s1594_s11 }
 0x972   : > { %vm1549_vm7 = vcmp.eq.f32.partialorder %v3454_v60, %v3463_v8  ;;  %v1558_v10 = vadd.f32 %v3463_v8, %v3466_v9 }
 0x974   : > { %v1582_v12 = vperm.slane %v1558_v10, 4 }
 0x976   : > { %v3477_v13 = vadd.f32 %v1582_v12, %v3474_v11  ;;  %v3512_v12 = vmul.f32 %v1599_v3, %v3370_v59 }
 0x978   : > { %v1584_v14 = vsel %vm1224_vm1, %v3477_v13, -inf }
 0x979   : > { %1585 = vmax.xlane.f32.xlu0 %v1584_v14 }
 0x9ca   : > { %v1485_v15 = vpop.xlane.xlu2 %1484 }
 0x9cb   : > { %3010 = vlog2.f32 %v1485_v15 }
 0x9d1   : > { %v3011_v17 = vpop.eup %3010 }
 0x9d2   : > { %v1487_v19 = vmul.f32 0.6931472, %v3011_v17 }
 0x9d4   : > { %v1488_v20 = vadd.f32 %v1487_v19, %v1479_v49 }
 0x9d6   : > { %v1489_v21 = vadd.f32 %v1488_v20, %v1474_v45  ;;  %v3496_v45 = vsel %vm1597_vm8, %v3409_v43, %v3365_v57 }
 0x9d8   : > { %1511 = vperm.xlu1 %2953, %v1489_v21  }
 0x9e0   : > { %2954 = vset.pattern.permute.xlu1 %v3131_v16  ;;  %v3520_v16 = vsel %vm1655_vm9, %v3375_v24, %v3365_v57 }
 0x9ec   : > { %v3486_v23 = vpop.xlane.xlu0 %1585 }
 0x9ed   : > { %v1592_v25 = vadd.f32 %v3486_v23, %v3484_v22 }
 0x9ef   : > { %1630 = vperm.xlu1 %2954, %v1592_v25  }
 0xa4a   : > { %v1512_v26 = vpop.permute.xlu1 %1511 }
 0xa4b   : > { %v1514_v27 = vadd.f32 %v1512_v26, %v1506_v56 }
 0xa4d   : > { %v1515_v29 = vsel %vm1224_vm1, %v1514_v27, -inf }
 0xa4e   : > { %v1516_v32 = vrot.slane %v1515_v29, 4 }
 0xa50   : > { %v1517_v33 = vmax.f32 %v1515_v29, %v1516_v32  ;;  %v3132_v32 = vmov 7  }
 0xa51   : > { %2955 = vset.pattern.permute.xlu2 %v3132_v32 }
 0xa52   : > { %v1518_v48 = vrot.slane %v1517_v33, 2 }
 0xa54   : > { %v1519_v35 = vmax.f32 %v1517_v33, %v1518_v48  ;;  %v1657_v33 = vstv %s1652_s13  ;;  %s3136_s13 = smov 15  }
 0xa55   : > { %v3533_v48 = vmul.f32 %v1657_v33, %v3402_v40 }
 0xa56   : > { %v1520_v37 = vrot.slane %v1519_v35, 1 }
 0xa58   : > { %v1521_v38 = vmax.f32 %v1519_v35, %v1520_v37 }
 0xa5a   : > { %v1522_v41 = vsub.f32 %v1514_v27, %v1521_v38 }
 0xa5c   : > { %v1523_v42 = vmul.f32 1.442695, %v1522_v41 }
 0xa5e   : > { %3012 = vpow2.f32 %v1523_v42  ;;  %v1688_v42 = vstv %s1687_s14  ;;  %s2020_s14 = scalar_select %p2019_p7, 1.0, 0.0 }
 0xa5f   : > { %vm1689_vm11 = vcmp.eq.s32.totalorder %v1688_v42, 1 }
 0xa61   : > { %v1631_v46 = vpop.permute.xlu1 %1630 }
 0xa62   : > { %v3499_v49 = vadd.f32 %v1631_v46, %v3496_v45  ;;  %v3543_v46 = vsel %vm1689_vm11, %v3409_v43, %v3365_v57 }
 0xa64   : > { %v3013_v50 = vpop.eup %3012  ;;  %v1634_v51 = vsel %vm1224_vm1, %v3499_v49, -inf }
 0xa65   : > { %v1525_v52 = vsel %vm1224_vm1, %v3013_v50, 0.0  ;;  %v1635_v54 = vrot.slane %v1634_v51, 4 }
 0xa66   : > { %v1526_v55 = vrot.slane %v1525_v52, 4 }
 0xa67   : > { %v1636_v56 = vmax.f32 %v1634_v51, %v1635_v54 }
 0xa68   : > { %v1527_v34 = vadd.f32 %v1526_v55, %v1525_v52 }
 0xa69   : > { %v1637_v36 = vrot.slane %v1636_v56, 2 }
 0xa6a   : > { %v1528_v61 = vrot.slane %v1527_v34, 2 }
 0xa6b   : > { %v1638_v62 = vmax.f32 %v1636_v56, %v1637_v36  ;;  %v1691_v36 = vstv %s1686_s15  ;;  %s3741_s15 = sadd.s32 4294967295, %s3224_s22 }
 0xa6c   : > { %v1529_v0 = vadd.f32 %v1528_v61, %v1527_v34  ;;  %v1746_v61 = vstv %s1745_s16  ;;  %v3556_v3 = vmul.f32 %v1691_v36, %v3384_v30  ;;  %p2108_p8 = scmp.ge.s32.totalorder %s3741_s15, 15  ;;  %p2130_p9 = scmp.ge.s32.totalorder %s3741_s15, 14 }
 0xa6d   : > { %v1639_v5 = vrot.slane %v1638_v62, 1  ;;  %vm1747_vm12 = vcmp.eq.s32.totalorder %v1746_v61, 1  ;;  %p2148_p10 = scmp.ge.s32.totalorder %s3741_s15, 13  ;;  %p2170_p11 = scmp.ge.s32.totalorder %s3741_s15, 12 }
 0xa6e   : > { %v1530_v6 = vrot.slane %v1529_v0, 1  ;;  %s2118_s16 = scalar_select %p2108_p8, 1, 0 }
 0xa6f   : > { %v3509_v10 = vmax.f32 %v1638_v62, %v1639_v5  ;;  %v3564_v5 = vsel %vm1747_vm12, %v3375_v24, %v3365_v57  ;;  %vm4207_vm12 = vcmask 130168   ;;  %s2136_s22 = scalar_select %p2130_p9, 1, 0 }
 0xa70   : > { %v1531_v14 = vadd.f32 %v1530_v6, %v1529_v0  ;;  %p2188_p12 = scmp.ge.s32.totalorder %s3741_s15, 11  ;;  %p2210_p13 = scmp.ge.s32.totalorder %s3741_s15, 10 }
 0xa71   : > { %vm1641_vm10 = vcmp.eq.f32.partialorder %v3499_v49, %v3509_v10  ;;  %v1650_v15 = vadd.f32 %v3509_v10, %v3512_v12  ;;  %p2228_p0 = scmp.ge.s32.totalorder %s3741_s15, 9  ;;  %p2250_p1 = scmp.ge.s32.totalorder %s3741_s15, 8 }
 0xa72   : > { %3014 = vlog2.f32 %v1531_v14  ;;  %p2268_p2 = scmp.ge.s32.totalorder %s3741_s15, 7  ;;  %p2290_p3 = scmp.ge.s32.totalorder %s3741_s15, 6 }
 0xa73   : > { %v1674_v17 = vperm.slane %v1650_v15, 6  ;;  %p2308_p4 = scmp.ge.s32.totalorder %s3741_s15, 5  ;;  %p2330_p5 = scmp.ge.s32.totalorder %s3741_s15, 4 }
 0xa74   : > { %p2348_p6 = scmp.ge.s32.totalorder %s3741_s15, 3  ;;  %p2370_p7 = scmp.ge.s32.totalorder %s3741_s15, 2 }
 0xa75   : > { %v3523_v19 = vadd.f32 %v1674_v17, %v3520_v16  ;;  %p2388_p8 = scmp.ge.s32.totalorder %s3741_s15, 1 }
 0xa77   : > { %v1676_v59 = vsel %vm1224_vm1, %v3523_v19, -inf }
 0xa78   : > { %v3015_v20 = vpop.eup %3014  ;;  %1677 = vmax.xlane.f32.xlu1 %v1676_v59 }
 0xa79   : > { %v1533_v21 = vmul.f32 0.6931472, %v3015_v20 }
 0xa7b   : > { %v1534_v58 = vadd.f32 %v1533_v21, %v1521_v38 }
 0xa7d   : > { %v1535_v25 = vadd.f32 %v1534_v58, %v3466_v9 }
 0xa7f   : > { %v1567_v26 = vperm.slane %v1535_v25, 4  ;;  %v3133_v25 = vmov 9  }
 0xa80   : > { %2957 = vset.pattern.permute.xlu1 %v3133_v25 }
 0xa81   : > { %v1568_v27 = vadd.f32 %v1567_v26, %v3474_v11  ;;  %v1749_v26 = vstv %s1744_s19  ;;  %s2158_s19 = scalar_select %p2148_p10, 1, 0 }
 0xa83   : > { %v1569_v29 = vsel %vm1224_vm1, %v1568_v27, -inf }
 0xa84   : > { %1570 = vmax.xlane.f32.xlu2 %v1569_v29 }
 0xaeb   : > { %v3535_v35 = vpop.xlane.xlu1 %1677 }
 0xaec   : > { %v1684_v9 = vadd.f32 %v3535_v35, %v3533_v48 }
 0xaee   : > { %1722 = vperm.xlu2 %2955, %v1684_v9  }
 0xaf7   : > { %v1571_v37 = vpop.xlane.xlu2 %1570 }
 0xaf8   : > { %v1572_v11 = vsub.f32 %v1568_v27, %v1571_v37  ;;  %v3576_v27 = vmul.f32 %v1749_v26, %v3402_v40 }
 0xafa   : > { %v1573_v38 = vmul.f32 1.442695, %v1572_v11 }
 0xafc   : > { %3016 = vpow2.f32 %v1573_v38 }
 0xb02   : > { %v3017_v39 = vpop.eup %3016 }
 0xb03   : > { %v1575_v41 = vsel %vm1224_vm1, %v3017_v39, 0.0 }
 0xb04   : > { %1576 = vadd.xlane.f32.xlu0 %v1575_v41 }
 0xb48   : > { %v1723_v50 = vpop.permute.xlu2 %1722 }
 0xb49   : > { %v3546_v51 = vadd.f32 %v1723_v50, %v3543_v46 }
 0xb4b   : > { %v1726_v52 = vsel %vm1224_vm1, %v3546_v51, -inf }
 0xb4c   : > { %v1727_v54 = vrot.slane %v1726_v52, 4 }
 0xb4e   : > { %v1728_v55 = vmax.f32 %v1726_v52, %v1727_v54 }
 0xb50   : > { %v1729_v56 = vrot.slane %v1728_v55, 2 }
 0xb52   : > { %v1730_v34 = vmax.f32 %v1728_v55, %v1729_v56 }
 0xb54   : > { %v1731_v62 = vrot.slane %v1730_v34, 1 }
 0xb56   : > { %v3553_v0 = vmax.f32 %v1730_v34, %v1731_v62 }
 0xb58   : > { %vm1733_vm13 = vcmp.eq.f32.partialorder %v3546_v51, %v3553_v0  ;;  %v1742_v4 = vadd.f32 %v3553_v0, %v3556_v3 }
 0xb5a   : > { %v1766_v6 = vperm.slane %v1742_v4, 0 }
 0xb5c   : > { %v3567_v14 = vadd.f32 %v1766_v6, %v3564_v5 }
 0xb5e   : > { %v1768_v15 = vsel %vm1224_vm1, %v3567_v14, -inf }
 0xb5f   : > { %1769 = vmax.xlane.f32.xlu2 %v1768_v15 }
 0xb77   : > { %v1577_v17 = vpop.xlane.xlu0 %1576 }
 0xb78   : > { %3018 = vlog2.f32 %v1577_v17 }
 0xb7e   : > { %v3019_v59 = vpop.eup %3018 }
 0xb7f   : > { %v1579_v20 = vmul.f32 0.6931472, %v3019_v59 }
 0xb81   : > { %v1580_v21 = vadd.f32 %v1579_v20, %v1571_v37 }
 0xb83   : > { %v1581_v58 = vadd.f32 %v1580_v21, %v3484_v22 }
 0xb85   : > { %1603 = vperm.xlu0 %2956, %v1581_v58   ;;  %v1780_v58 = vstv %s1779_s20  ;;  %s2176_s20 = scalar_select %p2170_p11, 1, 0 }
 0xb86   : > { %vm1781_vm14 = vcmp.eq.s32.totalorder %v1780_v58, 1 }
 0xb87   : > { %v3591_v26 = vsel %vm1781_vm14, %v3409_v43, %v3365_v57 }
 0xbd2   : > { %v3578_v29 = vpop.xlane.xlu2 %1769 }
 0xbd3   : > { %v1776_v33 = vadd.f32 %v3578_v29, %v3576_v27 }
 0xbd5   : > { %1814 = vperm.xlu1 %2957, %v1776_v33  }
 0xbdd   : > { %2959 = vset.pattern.permute.xlu1 %v3132_v32 }
 0xbf7   : > { %v1604_v9 = vpop.permute.xlu0 %1603 }
 0xbf8   : > { %v1606_v22 = vadd.f32 %v1604_v9, %v3496_v45 }
 0xbfa   : > { %v1607_v37 = vsel %vm1224_vm1, %v1606_v22, -inf }
 0xbfb   : > { %v1608_v11 = vrot.slane %v1607_v37, 4 }
 0xbfd   : > { %v1609_v38 = vmax.f32 %v1607_v37, %v1608_v11 }
 0xbff   : > { %v1610_v39 = vrot.slane %v1609_v38, 2 }
 0xc01   : > { %v1611_v41 = vmax.f32 %v1609_v38, %v1610_v39  ;;  %v1783_v38 = vstv %s1778_s21  ;;  %v1838_v39 = vstv %s1837_s23  ;;  %s2198_s21 = scalar_select %p2188_p12, 1, 0 }
 0xc02   : > { %vm1839_vm15 = vcmp.eq.s32.totalorder %v1838_v39, 1  ;;  %v1930_v39 = vstv %s1929_s27  ;;  %s2216_s23 = scalar_select %p2210_p13, 1, 0 }
 0xc03   : > { %v1612_v42 = vrot.slane %v1611_v41, 1  ;;  %vm1931_vm3 = vcmp.eq.s32.totalorder %v1930_v39, 1  ;;  %s3883_s27 = scalar_lea.vmem %s4194_s2, %s3207_s18 }
 0xc04   : > { %s2256_s18 = scalar_select %p2250_p1, 1, 0 }
 0xc05   : > { %v1613_v50 = vmax.f32 %v1611_v41, %v1612_v42 }
 0xc07   : > { %v1614_v52 = vsub.f32 %v1606_v22, %v1613_v50 }
 0xc09   : > { %v1615_v54 = vmul.f32 1.442695, %v1614_v52 }
 0xc0b   : > { %3020 = vpow2.f32 %v1615_v54  ;;  %v3612_v54 = vsel %vm1839_vm15, %v3375_v24, %v3365_v57 }
 0xc11   : > { %v3021_v55 = vpop.eup %3020 }
 0xc12   : > { %v1617_v56 = vsel %vm1224_vm1, %v3021_v55, 0.0 }
 0xc13   : > { %v1618_v34 = vrot.slane %v1617_v56, 4 }
 0xc15   : > { %v1619_v32 = vadd.f32 %v1618_v34, %v1617_v56 }
 0xc17   : > { %v1620_v36 = vrot.slane %v1619_v32, 2 }
 0xc19   : > { %v1621_v61 = vadd.f32 %v1620_v36, %v1619_v32  ;;  %v3134_v32 = vmov 11   ;;  %v1841_v36 = vstv %s1836_s24  ;;  %s2238_s24 = scalar_select %p2228_p0, 1, 0 }
 0xc1a   : > { %2958 = vset.pattern.permute.xlu2 %v3134_v32 }
 0xc1b   : > { %v1622_v45 = vrot.slane %v1621_v61, 1 }
 0xc1d   : > { %v1623_v62 = vadd.f32 %v1622_v45, %v1621_v61  ;;  %v3623_v61 = vmul.f32 %v1841_v36, %v3402_v40  ;;  %v3654_v36 = vsel %vm1931_vm3, %v3375_v24, %v3365_v57 }
 0xc1f   : > { %3022 = vlog2.f32 %v1623_v62 }
 0xc25   : > { %v3023_v4 = vpop.eup %3022 }
 0xc26   : > { %v1625_v6 = vmul.f32 0.6931472, %v3023_v4 }
 0xc28   : > { %v1626_v15 = vadd.f32 %v1625_v6, %v1613_v50  ;;  %v3604_v50 = vmul.f32 %v1783_v38, %v3384_v30  ;;  %v1875_v38 = vstv %s1870_s26 }
 0xc2a   : > { %v1627_v17 = vadd.f32 %v1626_v15, %v3512_v12 }
 0xc2c   : > { %v1659_v59 = vperm.slane %v1627_v17, 6 }
 0xc2e   : > { %v1660_v20 = vadd.f32 %v1659_v59, %v3520_v16 }
 0xc30   : > { %v1661_v21 = vsel %vm1224_vm1, %v1660_v20, -inf }
 0xc31   : > { %1662 = vmax.xlane.f32.xlu1 %v1661_v21  ;;  %v1872_v21 = vstv %s1871_s25 }
 0xc32   : > { %vm1873_vm2 = vcmp.eq.s32.totalorder %v1872_v21, 1 }
 0xc33   : > { %v3633_v58 = vsel %vm1873_vm2, %v3409_v43, %v3365_v57 }
 0xc47   : > { %v1815_v33 = vpop.permute.xlu1 %1814 }
 0xc48   : > { %v3594_v9 = vadd.f32 %v1815_v33, %v3591_v26 }
 0xc4a   : > { %v1818_v12 = vsel %vm1224_vm1, %v3594_v9, -inf }
 0xc4b   : > { %v1819_v22 = vrot.slane %v1818_v12, 4 }
 0xc4d   : > { %v1820_v16 = vmax.f32 %v1818_v12, %v1819_v22 }
 0xc4f   : > { %v1821_v37 = vrot.slane %v1820_v16, 2 }
 0xc51   : > { %v1822_v11 = vmax.f32 %v1820_v16, %v1821_v37 }
 0xc53   : > { %v1823_v41 = vrot.slane %v1822_v11, 1 }
 0xc55   : > { %v3601_v42 = vmax.f32 %v1822_v11, %v1823_v41 }
 0xc57   : > { %vm1825_vm0 = vcmp.eq.f32.partialorder %v3594_v9, %v3601_v42  ;;  %v1834_v52 = vadd.f32 %v3601_v42, %v3604_v50 }
 0xc59   : > { %v1858_v55 = vperm.slane %v1834_v52, 2 }
 0xc5b   : > { %v3615_v56 = vadd.f32 %v1858_v55, %v3612_v54  ;;  %v3646_v55 = vmul.f32 %v1875_v38, %v3384_v30 }
 0xc5d   : > { %v1860_v34 = vsel %vm1224_vm1, %v3615_v56, -inf }
 0xc5e   : > { %1861 = vmax.xlane.f32.xlu0 %v1860_v34 }
 0xca4   : > { %v1663_v4 = vpop.xlane.xlu1 %1662 }
 0xca5   : > { %v1664_v6 = vsub.f32 %v1660_v20, %v1663_v4 }
 0xca7   : > { %v1665_v15 = vmul.f32 1.442695, %v1664_v6 }
 0xca9   : > { %3024 = vpow2.f32 %v1665_v15 }
 0xcaf   : > { %v3025_v17 = vpop.eup %3024 }
 0xcb0   : > { %v1667_v59 = vsel %vm1224_vm1, %v3025_v17, 0.0 }
 0xcd1   : > { %v3625_v45 = vpop.xlane.xlu0 %1861 }
 0xcd2   : > { %v1868_v62 = vadd.f32 %v3625_v45, %v3623_v61 }
 0xcd4   : > { %1906 = vperm.xlu2 %2958, %v1868_v62  }
 0xcfd   : > { %1668 = vadd.xlane.f32.xlu2 %v1667_v59 }
 0xd2e   : > { %v1907_v33 = vpop.permute.xlu2 %1906 }
 0xd2f   : > { %v3636_v12 = vadd.f32 %v1907_v33, %v3633_v58 }
 0xd31   : > { %v1910_v20 = vsel %vm1224_vm1, %v3636_v12, -inf }
 0xd32   : > { %v1911_v22 = vrot.slane %v1910_v20, 4 }
 0xd34   : > { %v1912_v16 = vmax.f32 %v1910_v20, %v1911_v22  ;;  %v4203_v22 = vmov 13  }
 0xd35   : > { %2960 = vset.pattern.permute.xlu0 %v4203_v22 }
 0xd36   : > { %v1913_v37 = vrot.slane %v1912_v16, 2 }
 0xd38   : > { %v1914_v11 = vmax.f32 %v1912_v16, %v1913_v37  ;;  %v1933_v16 = vstv %s1928_s28  ;;  %s2278_s28 = scalar_select %p2268_p2, 1, 0 }
 0xd39   : > { %v3667_v37 = vmul.f32 %v1933_v16, %v3402_v40 }
 0xd3a   : > { %v1915_v41 = vrot.slane %v1914_v11, 1 }
 0xd3c   : > { %v3643_v52 = vmax.f32 %v1914_v11, %v1915_v41 }
 0xd3e   : > { %vm1917_vm5 = vcmp.eq.f32.partialorder %v3636_v12, %v3643_v52  ;;  %v1926_v34 = vadd.f32 %v3643_v52, %v3646_v55 }
 0xd40   : > { %v1950_v62 = vperm.slane %v1926_v34, 4 }
 0xd42   : > { %v3657_v6 = vadd.f32 %v1950_v62, %v3654_v36 }
 0xd44   : > { %v1952_v15 = vsel %vm1224_vm1, %v3657_v6, -inf }
 0xd45   : > { %1953 = vmax.xlane.f32.xlu0 %v1952_v15 }
 0xd70   : > { %v1669_v17 = vpop.xlane.xlu2 %1668 }
 0xd71   : > { %3026 = vlog2.f32 %v1669_v17 }
 0xd77   : > { %v3027_v59 = vpop.eup %3026 }
 0xd78   : > { %v1671_v21 = vmul.f32 0.6931472, %v3027_v59 }
 0xd7a   : > { %v1672_v33 = vadd.f32 %v1671_v21, %v1663_v4 }
 0xd7c   : > { %v1673_v20 = vadd.f32 %v1672_v33, %v3533_v48 }
 0xd7e   : > { %1695 = vperm.xlu1 %2959, %v1673_v20  }
 0xd86   : > { %2961 = vset.pattern.permute.xlu1 %v3133_v25 }
 0xdb8   : > { %v3669_v11 = vpop.xlane.xlu0 %1953 }
 0xdb9   : > { %v1960_v38 = vadd.f32 %v3669_v11, %v3667_v37  ;;  %vm1955_vm3 = vcmp.eq.f32.partialorder %v3657_v6, %v3669_v11 }
 0xdbb   : > { %1998 = vperm.xlu0 %2960, %v1960_v38  }
 0xdf0   : > { %v1696_v4 = vpop.permute.xlu1 %1695 }
 0xdf1   : > { %v1698_v48 = vadd.f32 %v1696_v4, %v3543_v46 }
 0xdf3   : > { %v1699_v25 = vsel %vm1224_vm1, %v1698_v48, -inf }
 0xdf4   : > { %v1700_v39 = vrot.slane %v1699_v25, 4 }
 0xdf6   : > { %v1701_v41 = vmax.f32 %v1699_v25, %v1700_v39 }
 0xdf8   : > { %v1702_v34 = vrot.slane %v1701_v41, 2 }
 0xdfa   : > { %v1703_v62 = vmax.f32 %v1701_v41, %v1702_v34 }
 0xdfc   : > { %v1704_v15 = vrot.slane %v1703_v62, 1 }
 0xdfe   : > { %v1705_v17 = vmax.f32 %v1703_v62, %v1704_v15  ;;  %v1964_v62 = vstv %s1963_s29  ;;  %s2296_s29 = scalar_select %p2290_p3, 1, 0 }
 0xdff   : > { %vm1965_vm6 = vcmp.eq.s32.totalorder %v1964_v62, 1 }
 0xe00   : > { %v1706_v59 = vsub.f32 %v1698_v48, %v1705_v17 }
 0xe02   : > { %v1707_v21 = vmul.f32 1.442695, %v1706_v59 }
 0xe04   : > { %3028 = vpow2.f32 %v1707_v21 }
 0xe0a   : > { %v3029_v33 = vpop.eup %3028 }
 0xe0b   : > { %v1709_v20 = vsel %vm1224_vm1, %v3029_v33, 0.0 }
 0xe0c   : > { %v1710_v16 = vrot.slane %v1709_v20, 4 }
 0xe0e   : > { %v1711_v38 = vadd.f32 %v1710_v16, %v1709_v20  ;;  %v1967_v16 = vstv %s1962_s30  ;;  %s2318_s30 = scalar_select %p2308_p4, 1, 0 }
 0xe10   : > { %v1712_v7 = vrot.slane %v1711_v38, 2 }
 0xe12   : > { %v1713_v46 = vadd.f32 %v1712_v7, %v1711_v38  ;;  %v2022_v38 = vstv %s2021_s10 }
 0xe13   : > { %vm2023_vm8 = vcmp.eq.s32.totalorder %v2022_v38, 1 }
 0xe14   : > { %v1714_v4 = vrot.slane %v1713_v46, 1 }
 0xe16   : > { %v1715_v22 = vadd.f32 %v1714_v4, %v1713_v46  ;;  %v3699_v4 = vmul.f32 %v1967_v16, %v3384_v30  ;;  %v349_v30 = vld [vmem:[%s4198_s6 + $0x10] sm:$0xff] }
 0xe18   : > { %3030 = vlog2.f32 %v1715_v22  ;;  %v3684_v22 = vsel %vm1965_vm6, %v3409_v43, %v3365_v57 }
 0xe1e   : > { %v3031_v25 = vpop.eup %3030 }
 0xe1f   : > { %v1717_v39 = vmul.f32 0.6931472, %v3031_v25 }
 0xe21   : > { %v1718_v41 = vadd.f32 %v1717_v39, %v1705_v17  ;;  %v3707_v39 = vsel %vm2023_vm8, %v3375_v24, %v3365_v57  ;;  %vm1863_vm8 = vcmp.eq.f32.partialorder %v3615_v56, %v3625_v45 }
 0xe23   : > { %v1719_v48 = vadd.f32 %v1718_v41, %v3556_v3 }
 0xe25   : > { %v1751_v34 = vperm.slane %v1719_v48, 0 }
 0xe27   : > { %v1752_v15 = vadd.f32 %v1751_v34, %v3564_v5 }
 0xe29   : > { %v1753_v7 = vsel %vm1224_vm1, %v1752_v15, -inf }
 0xe2a   : > { %1754 = vmax.xlane.f32.xlu1 %v1753_v7 }
 0xe2d   : > { %v1999_v59 = vpop.permute.xlu0 %1998 }
 0xe2e   : > { %v3687_v17 = vadd.f32 %v1999_v59, %v3684_v22 }
 0xe30   : > { %v2002_v21 = vsel %vm1224_vm1, %v3687_v17, -inf }
 0xe31   : > { %v2003_v3 = vrot.slane %v2002_v21, 4 }
 0xe33   : > { %v2004_v33 = vmax.f32 %v2002_v21, %v2003_v3  ;;  %v3716_v3 = vcvt.s32.f32 %v3227_v63 }
 0xe35   : > { %v2005_v5 = vrot.slane %v2004_v33, 2 }
 0xe37   : > { %v2006_v20 = vmax.f32 %v2004_v33, %v2005_v5 }
 0xe39   : > { %v2007_v43 = vrot.slane %v2006_v20, 1 }
 0xe3b   : > { %v3696_v46 = vmax.f32 %v2006_v20, %v2007_v43  ;;  %v2025_v20 = vstv %s2020_s14  ;;  %s2358_s14 = scalar_select %p2348_p6, 1, 0 }
 0xe3d   : > { %vm2009_vm9 = vcmp.eq.f32.partialorder %v3687_v17, %v3696_v46  ;;  %v2018_v25 = vadd.f32 %v3696_v46, %v3699_v4 }
 0xe3f   : > { %v2042_v41 = vperm.slane %v2018_v25, 6 }
 0xe41   : > { %v2043_v48 = vadd.f32 %v2042_v41, %v3707_v39 }
 0xe43   : > { %v2044_v34 = vsel %vm1224_vm1, %v2043_v48, -inf }
 0xe44   : > { %2045 = vmax.xlane.f32.xlu2 %v2044_v34 }
 0xe5c   : > { %2054 = vrot.lane.b32.xlu2 %v349_v30, %s3136_s13  ;;  %s2336_s13 = scalar_select %p2330_p5, 1, 0 }
 0xe9d   : > { %v1755_v62 = vpop.xlane.xlu1 %1754 }
 0xe9e   : > { %v1756_v7 = vsub.f32 %v1752_v15, %v1755_v62  ;;  %v3723_v15 = vmul.f32 %v2025_v20, %v3402_v40 }
 0xea0   : > { %v1757_v59 = vmul.f32 1.442695, %v1756_v7 }
 0xea2   : > { %3032 = vpow2.f32 %v1757_v59 }
 0xea8   : > { %v3033_v21 = vpop.eup %3032 }
 0xea9   : > { %v1759_v57 = vsel %vm1224_vm1, %v3033_v21, 0.0  ;;  %v3731_v21 = vcvt.s32.f32 %v3348_v18 }
 0xeaa   : > { %1760 = vadd.xlane.f32.xlu2 %v1759_v57 }
 0xeb7   : > { %v2046_v24 = vpop.xlane.xlu2 %2045 }
 0xeb8   : > { %vm2047_vm11 = vcmp.eq.f32.partialorder %v2043_v48, %v2046_v24  ;;  %v2052_v38 = vadd.f32 %v2046_v24, %v3723_v15 }
 0xeb9   : > { %v2048_v33 = vsel %vm2047_vm11, %v3716_v3, 8.0 }
 0xeba   : > { %v2049_v5 = vsel %vm1224_vm1, %v2048_v33, inf }
 0xebb   : > { %2050 = vmin.xlane.f32.xlu0 %v2049_v5  ;;  %v4204_v5 = vmov 15  }
 0xebc   : > { %2963 = vset.pattern.permute.xlu0 %v4204_v5  ;;  %2964 = vset.pattern.permute.xlu2 %v4204_v5 }
 0xebf   : > { %v3725_v16 = vpop.permute.xlu2 %2054 }
 0xec0   : > { %v2079_v43 = vadd.f32 %v3725_v16, %v2052_v38 }
 0xec2   : > { %v2080_v25 = vsel %vm4207_vm12, %v2079_v43, -inf }
 0xec3   : > { %v2081_v41 = vrot.slane %v2080_v25, 4 }
 0xec5   : > { %v2082_v48 = vmax.f32 %v2080_v25, %v2081_v41 }
 0xec7   : > { %v2083_v34 = vrot.slane %v2082_v48, 2 }
 0xec9   : > { %v2084_v30 = vmax.f32 %v2082_v48, %v2083_v34 }
 0xecb   : > { %v2085_v7 = vrot.slane %v2084_v30, 1 }
 0xecd   : > { %v2086_v59 = vmax.f32 %v2084_v30, %v2085_v7 }
 0xecf   : > { %vm2087_vm14 = vcmp.eq.f32.partialorder %v2079_v43, %v2086_v59 }
 0xed0   : > { %v2088_v40 = vsel %vm2087_vm14, %v3731_v21, 8.0 }
 0xed1   : > { %v2089_v57 = vsel %vm4207_vm12, %v2088_v40, inf }
 0xed2   : > { %v2090_v24 = vrot.slane %v2089_v57, 4 }
 0xed4   : > { %v2091_v33 = vmin.f32 %v2089_v57, %v2090_v24 }
 0xed6   : > { %v2092_v38 = vrot.slane %v2091_v33, 2 }
 0xed8   : > { %v2093_v25 = vmin.f32 %v2091_v33, %v2092_v38 }
 0xeda   : > { %v2094_v48 = vrot.slane %v2093_v25, 1 }
 0xedc   : > { %v3738_v7 = vmin.f32 %v2093_v25, %v2094_v48  ;;  %v1956_v48 = vsel %vm1955_vm3, %v3716_v3, 8.0 }
 0xede   : > { %vm2109_vm15 = vcmp.eq.f32.partialorder %v3731_v21, %v3738_v7 }
 0xf1d   : > { %v1761_v20 = vpop.xlane.xlu2 %1760 }
 0xf1e   : > { %3034 = vlog2.f32 %v1761_v20  ;;  %v2119_v20 = vstv %s2118_s16  ;;  %s3139_s16 = smov 113  }
 0xf1f   : > { %vm3748_vm2 = vcmp.eq.s32.totalorder %v2119_v20, 1 }
 0xf24   : > { %v3035_v43 = vpop.eup %3034 }
 0xf25   : > { %v1763_v41 = vmul.f32 0.6931472, %v3035_v43 }
 0xf27   : > { %v1764_v34 = vadd.f32 %v1763_v41, %v1755_v62 }
 0xf29   : > { %v1765_v30 = vadd.f32 %v1764_v34, %v3576_v27  ;;  %v1957_v34 = vsel %vm1224_vm1, %v1956_v48, inf }
 0xf2b   : > { %1787 = vperm.xlu1 %2961, %v1765_v30   ;;  %v2010_v30 = vsel %vm2009_vm9, %v3731_v21, 8.0 }
 0xf2e   : > { %v2051_v59 = vpop.xlane.xlu0 %2050 }
 0xf2f   : > { %v2110_v40 = vsel %vm2109_vm15, %v2051_v59, 0.0  ;;  %v2011_v59 = vsel %vm1224_vm1, %v2010_v30, inf }
 0xf30   : > { %v2111_v57 = vsel %vm4207_vm12, %v2110_v40, 0.0  ;;  %v2012_v40 = vrot.slane %v2011_v59, 4 }
 0xf31   : > { %v2112_v24 = vrot.slane %v2111_v57, 4 }
 0xf33   : > { %v2113_v33 = vadd.f32 %v2112_v24, %v2111_v57  ;;  %2962 = vset.pattern.permute.xlu1 %v4204_v5 }
 0xf35   : > { %v2114_v27 = vrot.slane %v2113_v33, 2 }
 0xf37   : > { %v2115_v62 = vadd.f32 %v2114_v27, %v2113_v33 }
 0xf39   : > { %v2116_v38 = vrot.slane %v2115_v62, 1 }
 0xf3b   : > { %v2117_v43 = vadd.f32 %v2116_v38, %v2115_v62 }
 0xf3d   : > { %v2121_v41 = vsel %vm3748_vm2, %v2117_v43, %v3738_v7 }
 0xf3e   : > { %2126 = vperm.xlu1 %2962, %v2121_v41  }
 0xf46   : > { %2965 = vset.pattern.permute.xlu1 %v3134_v32  ;;  %v2013_v32 = vmin.f32 %v2011_v59, %v2012_v40 }
 0xf48   : > { %v2014_v27 = vrot.slane %v2013_v32, 2 }
 0xf4a   : > { %v2015_v38 = vmin.f32 %v2013_v32, %v2014_v27 }
 0xf68   : > { %1958 = vmin.xlane.f32.xlu1 %v1957_v34  ;;  %v2016_v34 = vrot.slane %v2015_v38, 1 }
 0xf6a   : > { %v2017_v30 = vmin.f32 %v2015_v38, %v2016_v34 }
 0xf9d   : > { %v1788_v57 = vpop.permute.xlu1 %1787 }
 0xf9e   : > { %v1790_v24 = vadd.f32 %v1788_v57, %v3591_v26 }
 0xfa0   : > { %v1791_v33 = vsel %vm1224_vm1, %v1790_v24, -inf }
 0xfa1   : > { %v1792_v6 = vrot.slane %v1791_v33, 4 }
 0xfa3   : > { %v1793_v11 = vmax.f32 %v1791_v33, %v1792_v6 }
 0xfa5   : > { %v1794_v62 = vrot.slane %v1793_v11, 2 }
 0xfa7   : > { %v1795_v20 = vmax.f32 %v1793_v11, %v1794_v62 }
 0xfa9   : > { %v1796_v43 = vrot.slane %v1795_v20, 1 }
 0xfab   : > { %v1797_v48 = vmax.f32 %v1795_v20, %v1796_v43 }
 0xfad   : > { %v1798_v17 = vsub.f32 %v1790_v24, %v1797_v48 }
 0xfaf   : > { %v1799_v46 = vmul.f32 1.442695, %v1798_v17 }
 0xfb0   : > { %v3767_v5 = vpop.permute.xlu1 %2126 }
 0xfb1   : > { %3036 = vpow2.f32 %v1799_v46  ;;  %vm2131_vm6 = vcmp.eq.f32.partialorder %v3716_v3, %v3767_v5 }
 0xfb2   : > { %v2132_v26 = vsel %vm2131_vm6, %v2017_v30, 0.0  ;;  %v1864_v30 = vsel %vm1863_vm8, %v3716_v3, 8.0  ;;  %vm1771_vm8 = vcmp.eq.f32.partialorder %v3567_v14, %v3578_v29 }
 0xfb3   : > { %v2133_v59 = vsel %vm1224_vm1, %v2132_v26, 0.0  ;;  %v1865_v26 = vsel %vm1224_vm1, %v1864_v30, inf }
 0xfb4   : > { %2134 = vadd.xlane.f32.xlu0 %v2133_v59 }
 0xfb7   : > { %v3037_v40 = vpop.eup %3036 }
 0xfb8   : > { %v1801_v57 = vsel %vm1224_vm1, %v3037_v40, 0.0 }
 0xfb9   : > { %v1802_v32 = vrot.slane %v1801_v57, 4 }
 0xfbb   : > { %v1803_v33 = vadd.f32 %v1802_v32, %v1801_v57 }
 0xfbd   : > { %v1804_v6 = vrot.slane %v1803_v33, 2 }
 0xfbf   : > { %v1805_v11 = vadd.f32 %v1804_v6, %v1803_v33 }
 0xfc1   : > { %v1806_v24 = vrot.slane %v1805_v11, 1 }
 0xfc3   : > { %v1807_v27 = vadd.f32 %v1806_v24, %v1805_v11  ;;  %v2159_v11 = vstv %s2158_s19  ;;  %s2398_s19 = scalar_select %p2388_p8, 1, 0 }
 0xfc4   : > { %vm3793_vm14 = vcmp.eq.s32.totalorder %v2159_v11, 1 }
 0xfc5   : > { %3038 = vlog2.f32 %v1807_v27 }
 0xfcb   : > { %v3039_v62 = vpop.eup %3038 }
 0xfcc   : > { %v1809_v20 = vmul.f32 0.6931472, %v3039_v62 }
 0xfce   : > { %v1810_v38 = vadd.f32 %v1809_v20, %v1797_v48  ;;  %v2137_v48 = vstv %s2136_s22  ;;  %v1918_v20 = vsel %vm1917_vm5, %v3731_v21, 8.0  ;;  %s2376_s22 = scalar_select %p2370_p7, 1, 0 }
 0xfcf   : > { %vm3781_vm9 = vcmp.eq.s32.totalorder %v2137_v48, 1 }
 0xfd0   : > { %v1811_v43 = vadd.f32 %v1810_v38, %v3604_v50  ;;  %v1919_v38 = vsel %vm1224_vm1, %v1918_v20, inf }
 0xfd2   : > { %v1843_v34 = vperm.slane %v1811_v43, 2  ;;  %v1920_v43 = vrot.slane %v1919_v38, 4 }
 0xfd4   : > { %v1844_v17 = vadd.f32 %v1843_v34, %v3612_v54  ;;  %v1921_v34 = vmin.f32 %v1919_v38, %v1920_v43 }
 0xfd6   : > { %v1845_v46 = vsel %vm1224_vm1, %v1844_v17, -inf }
 0xfd7   : > { %1846 = vmax.xlane.f32.xlu2 %v1845_v46  ;;  %v1922_v46 = vrot.slane %v1921_v34, 2 }
 0xfdb   : > { %v1959_v40 = vpop.xlane.xlu1 %1958 }
 0xfdf   : > { %1866 = vmin.xlane.f32.xlu2 %v1865_v26  ;;  %v1923_v26 = vmin.f32 %v1921_v34, %v1922_v46 }
0x1027   : > { %v2135_v54 = vpop.xlane.xlu0 %2134 }
0x1028   : > { %v3787_v59 = vsel %vm3781_vm9, %v2135_v54, %v2121_v41  ;;  %v1924_v54 = vrot.slane %v1923_v26, 1 }
0x1029   : > { %vm2149_vm11 = vcmp.eq.f32.partialorder %v3731_v21, %v3787_v59 }
0x102a   : > { %v2150_v56 = vsel %vm2149_vm11, %v1959_v40, 0.0 }
0x102b   : > { %v2151_v45 = vsel %vm4207_vm12, %v2150_v56, 0.0 }
0x102c   : > { %v2152_v57 = vrot.slane %v2151_v45, 4 }
0x102e   : > { %v2153_v32 = vadd.f32 %v2152_v57, %v2151_v45  ;;  %v1925_v45 = vmin.f32 %v1923_v26, %v1924_v54 }
0x1030   : > { %v2154_v33 = vrot.slane %v2153_v32, 2 }
0x1032   : > { %v2155_v6 = vadd.f32 %v2154_v33, %v2153_v32  ;;  %v2177_v33 = vstv %s2176_s20 }
0x1033   : > { %vm3812_vm5 = vcmp.eq.s32.totalorder %v2177_v33, 1  ;;  %v4226_v33 = vmov 15  }
0x1034   : > { %v2156_v24 = vrot.slane %v2155_v6, 1 }
0x1036   : > { %v2157_v41 = vadd.f32 %v2156_v24, %v2155_v6 }
0x1038   : > { %v2161_v62 = vsel %vm3793_vm14, %v2157_v41, %v3787_v59 }
0x1039   : > { %2166 = vperm.xlu0 %2963, %v2161_v62  }
0x104a   : > { %v1847_v30 = vpop.xlane.xlu2 %1846 }
0x104b   : > { %v1848_v48 = vsub.f32 %v1844_v17, %v1847_v30 }
0x104d   : > { %v1849_v40 = vmul.f32 1.442695, %v1848_v48  ;;  %v2199_v48 = vstv %s2198_s21  ;;  %s333_s21 = scalar_lea.vmem %s4200_s8, %s3204_s17 }
0x104e   : > { %vm3824_vm6 = vcmp.eq.s32.totalorder %v2199_v48, 1 }
0x104f   : > { %3040 = vpow2.f32 %v1849_v40 }
0x1052   : > { %v1867_v17 = vpop.xlane.xlu2 %1866 }
0x1055   : > { %v3041_v57 = vpop.eup %3040 }
0x1056   : > { %v1851_v32 = vsel %vm1224_vm1, %v3041_v57, 0.0 }
0x10ab   : > { %v3805_v56 = vpop.permute.xlu0 %2166 }
0x10ac   : > { %vm2171_vm15 = vcmp.eq.f32.partialorder %v3716_v3, %v3805_v56 }
0x10ad   : > { %v2172_v12 = vsel %vm2171_vm15, %v1925_v45, 0.0 }
0x10ae   : > { %v2173_v52 = vsel %vm1224_vm1, %v2172_v12, 0.0 }
0x10af   : > { %2174 = vadd.xlane.f32.xlu2 %v2173_v52 }
0x10b7   : > { %1852 = vadd.xlane.f32.xlu2 %v1851_v32 }
0x1122   : > { %v2175_v11 = vpop.xlane.xlu2 %2174 }
0x1123   : > { %v3818_v24 = vsel %vm3812_vm5, %v2175_v11, %v2161_v62  ;;  %v1772_v11 = vsel %vm1771_vm8, %v3716_v3, 8.0  ;;  %vm1679_vm8 = vcmp.eq.f32.partialorder %v3523_v19, %v3535_v35  ;;  %v1734_v19 = vsel %vm1733_vm13, %v3731_v21, 8.0 }
0x1124   : > { %vm2189_vm3 = vcmp.eq.f32.partialorder %v3731_v21, %v3818_v24  ;;  %v1735_v35 = vsel %vm1224_vm1, %v1734_v19, inf }
0x1125   : > { %v2190_v41 = vsel %vm2189_vm3, %v1867_v17, 0.0  ;;  %v4225_v17 = vmov 13  }
0x1126   : > { %v2191_v20 = vsel %vm4207_vm12, %v2190_v41, 0.0  ;;  %v1773_v41 = vsel %vm1224_vm1, %v1772_v11, inf }
0x1127   : > { %v2192_v38 = vrot.slane %v2191_v20, 4 }
0x1129   : > { %v2193_v43 = vadd.f32 %v2192_v38, %v2191_v20 }
0x112a   : > { %v1853_v34 = vpop.xlane.xlu2 %1852 }
0x112b   : > { %v2194_v46 = vrot.slane %v2193_v43, 2  ;;  %3042 = vlog2.f32 %v1853_v34 }
0x112d   : > { %v2195_v26 = vadd.f32 %v2194_v46, %v2193_v43 }
0x112f   : > { %v2196_v54 = vrot.slane %v2195_v26, 1 }
0x1131   : > { %v3043_v62 = vpop.eup %3042  ;;  %v2197_v45 = vadd.f32 %v2196_v54, %v2195_v26 }
0x1132   : > { %v1855_v12 = vmul.f32 0.6931472, %v3043_v62 }
0x1133   : > { %v2201_v52 = vsel %vm3824_vm6, %v2197_v45, %v3818_v24 }
0x1134   : > { %v1856_v57 = vadd.f32 %v1855_v12, %v1847_v30  ;;  %2206 = vperm.xlu2 %2964, %v2201_v52   ;;  %v1826_v30 = vsel %vm1825_vm0, %v3731_v21, 8.0 }
0x1136   : > { %v1857_v32 = vadd.f32 %v1856_v57, %v3623_v61  ;;  %v1827_v61 = vsel %vm1224_vm1, %v1826_v30, inf }
0x1137   : > { %v1828_v20 = vrot.slane %v1827_v61, 4 }
0x1138   : > { %1879 = vperm.xlu1 %2965, %v1857_v32  }
0x1139   : > { %v1829_v38 = vmin.f32 %v1827_v61, %v1828_v20 }
0x113b   : > { %v1830_v43 = vrot.slane %v1829_v38, 2 }
0x113c   : > { %2966 = vset.pattern.permute.xlu2 %v4225_v17 }
0x113d   : > { %v1831_v34 = vmin.f32 %v1829_v38, %v1830_v43 }
0x113f   : > { %v1832_v46 = vrot.slane %v1831_v34, 1 }
0x1140   : > { %2968 = vset.pattern.permute.xlu1 %v4226_v33 }
0x1141   : > { %v1833_v14 = vmin.f32 %v1831_v34, %v1832_v46 }
0x115d   : > { %1774 = vmin.xlane.f32.xlu2 %v1773_v41 }
0x118e   : > { %v3843_v26 = vpop.permute.xlu2 %2206 }
0x118f   : > { %vm2211_vm11 = vcmp.eq.f32.partialorder %v3716_v3, %v3843_v26 }
0x1190   : > { %v2212_v29 = vsel %vm2211_vm11, %v1833_v14, 0.0 }
0x1191   : > { %v2213_v48 = vsel %vm1224_vm1, %v2212_v29, 0.0 }
0x1192   : > { %2214 = vadd.xlane.f32.xlu0 %v2213_v48 }
0x11aa   : > { %v1880_v54 = vpop.permute.xlu1 %1879 }
0x11ab   : > { %v1882_v9 = vadd.f32 %v1880_v54, %v3633_v58 }
0x11ad   : > { %v1883_v42 = vsel %vm1224_vm1, %v1882_v9, -inf }
0x11ae   : > { %v1884_v62 = vrot.slane %v1883_v42, 4 }
0x11b0   : > { %v1885_v45 = vmax.f32 %v1883_v42, %v1884_v62 }
0x11b2   : > { %v1886_v12 = vrot.slane %v1885_v45, 2 }
0x11b4   : > { %v1887_v57 = vmax.f32 %v1885_v45, %v1886_v12  ;;  %v2217_v45 = vstv %s2216_s23 }
0x11b5   : > { %vm3855_vm0 = vcmp.eq.s32.totalorder %v2217_v45, 1 }
0x11b6   : > { %v1888_v32 = vrot.slane %v1887_v57, 1 }
0x11b8   : > { %v1889_v17 = vmax.f32 %v1887_v57, %v1888_v32 }
0x11ba   : > { %v1890_v11 = vsub.f32 %v1882_v9, %v1889_v17 }
0x11bc   : > { %v1891_v41 = vmul.f32 1.442695, %v1890_v11 }
0x11be   : > { %3044 = vpow2.f32 %v1891_v41 }
0x11c4   : > { %v3045_v30 = vpop.eup %3044 }
0x11c5   : > { %v1893_v61 = vsel %vm1224_vm1, %v3045_v30, 0.0 }
0x11c6   : > { %v1894_v20 = vrot.slane %v1893_v61, 4 }
0x11c8   : > { %v1895_v38 = vadd.f32 %v1894_v20, %v1893_v61  ;;  %v2239_v20 = vstv %s2238_s24 }
0x11c9   : > { %vm3867_vm3 = vcmp.eq.s32.totalorder %v2239_v20, 1  ;;  %v4231_v20 = vmov 0.0  }
0x11ca   : > { %v1896_v43 = vrot.slane %v1895_v38, 2 }
0x11cc   : > { %v1897_v34 = vadd.f32 %v1896_v43, %v1895_v38 }
0x11ce   : > { %v1898_v58 = vrot.slane %v1897_v34, 1 }
0x11d0   : > { %v1899_v46 = vadd.f32 %v1898_v58, %v1897_v34  ;;  %v3138_v58 = vmov 0  }
0x11d2   : > { %3046 = vlog2.f32 %v1899_v46  ;;  %v1680_v46 = vsel %vm1679_vm8, %v3716_v3, 8.0 }
0x11d8   : > { %v3047_v14 = vpop.eup %3046 }
0x11d9   : > { %v1901_v29 = vmul.f32 0.6931472, %v3047_v14  ;;  %v1681_v14 = vsel %vm1224_vm1, %v1680_v46, inf  ;;  %v4232_v46 = vmov 0 }
0x11db   : > { %v1902_v48 = vadd.f32 %v1901_v29, %v1889_v17  ;;  %v1775_v17 = vpop.xlane.xlu2 %1774  ;;  %v1254_v29 = vld [vmem:[%s3883_s27] sm:$0xff] }
0x11dd   : > { %v1903_v54 = vadd.f32 %v1902_v48, %v3646_v55  ;;  %v1736_v48 = vrot.slane %v1735_v35, 4 }
0x11df   : > { %v1935_v9 = vperm.slane %v1903_v54, 4  ;;  %v1737_v54 = vmin.f32 %v1735_v35, %v1736_v48 }
0x11e1   : > { %v1936_v42 = vadd.f32 %v1935_v9, %v3654_v36  ;;  %v1738_v9 = vrot.slane %v1737_v54, 2 }
0x11e3   : > { %v1937_v62 = vsel %vm1224_vm1, %v1936_v42, -inf  ;;  %v1739_v45 = vmin.f32 %v1737_v54, %v1738_v9 }
0x11e4   : > { %1938 = vmax.xlane.f32.xlu1 %v1937_v62 }
0x1205   : > { %v2215_v57 = vpop.xlane.xlu0 %2214 }
0x1206   : > { %v3861_v32 = vsel %vm3855_vm0, %v2215_v57, %v2201_v52 }
0x1207   : > { %vm2229_vm15 = vcmp.eq.f32.partialorder %v3731_v21, %v3861_v32 }
0x1208   : > { %v2230_v55 = vsel %vm2229_vm15, %v1775_v17, 0.0  ;;  %v1740_v17 = vrot.slane %v1739_v45, 1 }
0x1209   : > { %v2231_v36 = vsel %vm4207_vm12, %v2230_v55, 0.0 }
0x120a   : > { %v2232_v11 = vrot.slane %v2231_v36, 4 }
0x120c   : > { %v2233_v41 = vadd.f32 %v2232_v11, %v2231_v36  ;;  %v1741_v11 = vmin.f32 %v1739_v45, %v1740_v17  ;;  %v2279_v17 = vstv %s2278_s28 }
0x120e   : > { %v2234_v30 = vrot.slane %v2233_v41, 2 }
0x1210   : > { %v2235_v61 = vadd.f32 %v2234_v30, %v2233_v41 }
0x1212   : > { %v2236_v38 = vrot.slane %v2235_v61, 1 }
0x1214   : > { %v2237_v52 = vadd.f32 %v2236_v38, %v2235_v61 }
0x1216   : > { %v2241_v34 = vsel %vm3867_vm3, %v2237_v52, %v3861_v32  ;;  %v2257_v52 = vstv %s2256_s18 }
0x1217   : > { %2246 = vperm.xlu0 %2963, %v2241_v34   ;;  %vm3905_vm15 = vcmp.eq.s32.totalorder %v2257_v52, 1 }
0x1218   : > { %v4233_v46 = vsel %vm3905_vm15, 4294967295, %v4232_v46 }
0x121f   : > { %2967 = vset.pattern.permute.xlu0 %v3138_v58 }
0x1241   : > { %1682 = vmin.xlane.f32.xlu0 %v1681_v14 }
0x1255   : > { %1257 = vperm.xlu0 %2967, %v1254_v29  }
0x1257   : > { %v1939_v62 = vpop.xlane.xlu1 %1938 }
0x1258   : > { %v1940_v57 = vsub.f32 %v1936_v42, %v1939_v62 }
0x125a   : > { %v1941_v55 = vmul.f32 1.442695, %v1940_v57 }
0x125c   : > { %3048 = vpow2.f32 %v1941_v55 }
0x125d   : > { %2971 = vset.pattern.permute.xlu0 %v4226_v33 }
0x1262   : > { %v3049_v41 = vpop.eup %3048 }
0x1263   : > { %v1943_v30 = vsel %vm1224_vm1, %v3049_v41, 0.0 }
0x1289   : > { %v3892_v36 = vpop.permute.xlu0 %2246 }
0x128a   : > { %vm2251_vm11 = vcmp.eq.f32.partialorder %v3716_v3, %v3892_v36 }
0x128b   : > { %v2252_v51 = vsel %vm2251_vm11, %v1741_v11, 0.0  ;;  %vm3917_vm11 = vcmp.eq.s32.totalorder %v2279_v17, 1  ;;  %v4234_v11 = vmov 0 }
0x128c   : > { %v2253_v0 = vsel %vm1224_vm1, %v2252_v51, 0.0  ;;  %v4235_v11 = vsel %vm3917_vm11, 4294967295, %v4234_v11 }
0x128d   : > { %2254 = vadd.xlane.f32.xlu2 %v2253_v0 }
0x1295   : > { %1944 = vadd.xlane.f32.xlu2 %v1943_v30 }
0x12b4   : > { %v1683_v42 = vpop.xlane.xlu0 %1682 }
0x12c7   : > { %v1258_v61 = vpop.permute.xlu0 %1257 }
0x12c8   : > { %vm1262_vm13 = vcmp.eq.s32.totalorder %v3227_v63, %v1258_v61 }
0x12c9   : > { %v3900_v38 = vsel %vm1262_vm13, 1.0, %v4231_v20  ;;  %vm1587_vm13 = vcmp.eq.f32.partialorder %v3477_v13, %v3486_v23 }
0x12ca   : > { %2835 = vmatmul.msk.f32.vlgmr.msra.gmra.mxu2 %vm1224_vm1, %v3900_v38  ;;  %v1588_v61 = vsel %vm1587_vm13, %v3716_v3, 8.0  ;;  %v1315_v44 = vrot.slane %v3900_v38, 1 }
0x12cb   : > { %v1589_v52 = vsel %vm1224_vm1, %v1588_v61, inf }
0x1300   : > { %v2255_v14 = vpop.xlane.xlu2 %2254 }
0x1301   : > { %v3911_v29 = vsel %vm3905_vm15, %v2255_v14, %v2241_v34 }
0x1302   : > { %vm2269_vm8 = vcmp.eq.f32.partialorder %v3731_v21, %v3911_v29 }
0x1303   : > { %v2270_v19 = vsel %vm2269_vm8, %v1683_v42, 0.0 }
0x1304   : > { %v2271_v35 = vsel %vm4207_vm12, %v2270_v19, 0.0 }
0x1305   : > { %v2272_v48 = vrot.slane %v2271_v35, 4 }
0x1307   : > { %v2273_v54 = vadd.f32 %v2272_v48, %v2271_v35 }
0x1308   : > { %v1945_v9 = vpop.xlane.xlu2 %1944 }
0x1309   : > { %v2274_v45 = vrot.slane %v2273_v54, 2  ;;  %3050 = vlog2.f32 %v1945_v9 }
0x130b   : > { %v2275_v57 = vadd.f32 %v2274_v45, %v2273_v54 }
0x130d   : > { %v2276_v55 = vrot.slane %v2275_v57, 1 }
0x130f   : > { %v3051_v34 = vpop.eup %3050  ;;  %v2277_v51 = vadd.f32 %v2276_v55, %v2275_v57 }
0x1310   : > { %v1947_v0 = vmul.f32 0.6931472, %v3051_v34 }
0x1311   : > { %v2281_v41 = vsel %vm3917_vm11, %v2277_v51, %v3911_v29  ;;  %vm2202_vm11 = vcmp.eq.s32.totalorder %v3227_v63, 10 }
0x1312   : > { %v1948_v30 = vadd.f32 %v1947_v0, %v1939_v62  ;;  %2286 = vperm.xlu1 %2968, %v2281_v41   ;;  %v1642_v62 = vsel %vm1641_vm10, %v3731_v21, 8.0 }
0x1314   : > { %v1949_v42 = vadd.f32 %v1948_v30, %v3667_v37  ;;  %v1643_v37 = vsel %vm1224_vm1, %v1642_v62, inf }
0x1315   : > { %v1644_v14 = vrot.slane %v1643_v37, 4 }
0x1316   : > { %1971 = vperm.xlu2 %2966, %v1949_v42  }
0x1317   : > { %v1645_v54 = vmin.f32 %v1643_v37, %v1644_v14 }
0x1319   : > { %v1646_v45 = vrot.slane %v1645_v54, 2 }
0x131a   : > { %2969 = vset.pattern.permute.xlu1 %v3138_v58 }
0x131b   : > { %v1647_v55 = vmin.f32 %v1645_v54, %v1646_v45 }
0x131d   : > { %v1648_v49 = vrot.slane %v1647_v55, 1 }
0x131e   : > { %2970 = vset.pattern.permute.xlu2 %v4226_v33 }
0x131f   : > { %v1649_v30 = vmin.f32 %v1647_v55, %v1648_v49  ;;  %v4236_v49 = vmov 0 }
0x133f   : > { %1590 = vmin.xlane.f32.xlu2 %v1589_v52 }
0x134d   : > { %v1308_v8 = vpop.f32.mrf.mxu2 }
0x1370   : > { %v1972_v19 = vpop.permute.xlu2 %1971 }
0x1371   : > { %v1974_v35 = vadd.f32 %v1972_v19, %v3684_v22 }
0x1373   : > { %v1975_v48 = vsel %vm1224_vm1, %v1974_v35, -inf }
0x1374   : > { %v1976_v13 = vrot.slane %v1975_v48, 4 }
0x1376   : > { %v1977_v23 = vmax.f32 %v1975_v48, %v1976_v13  ;;  %v1255_v13 = vld [vmem:[%s3883_s27 + $0x8] sm:$0xff] }
0x1378   : > { %v1978_v9 = vrot.slane %v1977_v23, 2 }
0x137a   : > { %v1979_v57 = vmax.f32 %v1977_v23, %v1978_v9 }
0x137c   : > { %v1980_v17 = vrot.slane %v1979_v57, 1 }
0x137e   : > { %v1981_v34 = vmax.f32 %v1979_v57, %v1980_v17 }
0x1380   : > { %v1982_v51 = vsub.f32 %v1974_v35, %v1981_v34 }
0x1382   : > { %v1983_v10 = vmul.f32 1.442695, %v1982_v51  ;;  %v2297_v51 = vstv %s2296_s29 }
0x1383   : > { %vm3950_vm8 = vcmp.eq.s32.totalorder %v2297_v51, 1 }
0x1384   : > { %3052 = vpow2.f32 %v1983_v10  ;;  %v3938_v0 = vpop.permute.xlu1 %2286  ;;  %v4237_v49 = vsel %vm3950_vm8, 4294967295, %v4236_v49 }
0x1385   : > { %vm2291_vm10 = vcmp.eq.f32.partialorder %v3716_v3, %v3938_v0 }
0x1386   : > { %v2292_v22 = vsel %vm2291_vm10, %v1649_v30, 0.0 }
0x1387   : > { %v2293_v42 = vsel %vm1224_vm1, %v2292_v22, 0.0 }
0x1388   : > { %2294 = vadd.xlane.f32.xlu1 %v2293_v42 }
0x138a   : > { %v3053_v61 = vpop.eup %3052 }
0x138b   : > { %v1985_v52 = vsel %vm1224_vm1, %v3053_v61, 0.0 }
0x138c   : > { %v1986_v62 = vrot.slane %v1985_v52, 4 }
0x138e   : > { %v1987_v37 = vadd.f32 %v1986_v62, %v1985_v52  ;;  %v2319_v52 = vstv %s2318_s30 }
0x138f   : > { %vm3962_vm10 = vcmp.eq.s32.totalorder %v2319_v52, 1 }
0x1390   : > { %v1988_v14 = vrot.slane %v1987_v37, 2 }
0x1392   : > { %v1989_v19 = vadd.f32 %v1988_v14, %v1987_v37  ;;  %v4238_v37 = vmov 0 }
0x1393   : > { %v4239_v37 = vsel %vm3962_vm10, 4294967295, %v4238_v37 }
0x1394   : > { %v1990_v35 = vrot.slane %v1989_v19, 1 }
0x1396   : > { %v1991_v48 = vadd.f32 %v1990_v35, %v1989_v19 }
0x1398   : > { %3054 = vlog2.f32 %v1991_v48 }
0x139e   : > { %v3055_v54 = vpop.eup %3054 }
0x139f   : > { %v1993_v23 = vmul.f32 0.6931472, %v3055_v54 }
0x13a1   : > { %v1994_v9 = vadd.f32 %v1993_v23, %v1981_v34  ;;  %1260 = vperm.xlu1 %2969, %v1255_v13  }
0x13a3   : > { %v1995_v45 = vadd.f32 %v1994_v9, %v3699_v4 }
0x13a5   : > { %v2027_v57 = vperm.slane %v1995_v45, 6  ;;  %v1496_v45 = vsel %vm1495_vm4, %v3716_v3, 8.0  ;;  %vm4206_vm4 = vcmask 1046528  }
0x13a7   : > { %v2028_v17 = vadd.f32 %v2027_v57, %v3707_v39  ;;  %v1497_v57 = vsel %vm1224_vm1, %v1496_v45, inf }
0x13a9   : > { %v2029_v55 = vsel %vm1224_vm1, %v2028_v17, -inf  ;;  %2972 = vset.pattern.permute.xlu1 %v4226_v33 }
0x13aa   : > { %2030 = vmax.xlane.f32.xlu0 %v2029_v55  ;;  %v1550_v55 = vsel %vm1549_vm7, %v3731_v21, 8.0  ;;  %vm366_vm7 = vcmp.lt.s32.totalorder %v3348_v18, %v3230_v1 }
0x13b2   : > { %v1591_v4 = vpop.xlane.xlu2 %1590 }
0x13fb   : > { %v2295_v34 = vpop.xlane.xlu1 %2294 }
0x13fc   : > { %v3956_v10 = vsel %vm3950_vm8, %v2295_v34, %v2281_v41  ;;  %vm2180_vm8 = vcmp.eq.s32.totalorder %v3227_v63, 11 }
0x13fd   : > { %vm2309_vm13 = vcmp.eq.f32.partialorder %v3731_v21, %v3956_v10 }
0x13fe   : > { %v2310_v39 = vsel %vm2309_vm13, %v1591_v4, 0.0 }
0x13ff   : > { %v2311_v33 = vsel %vm4207_vm12, %v2310_v39, 0.0 }
0x1400   : > { %v2312_v30 = vrot.slane %v2311_v33, 4 }
0x1402   : > { %v2313_v22 = vadd.f32 %v2312_v30, %v2311_v33 }
0x1404   : > { %v2314_v42 = vrot.slane %v2313_v22, 2 }
0x1406   : > { %v2315_v61 = vadd.f32 %v2314_v42, %v2313_v22 }
0x1408   : > { %v2316_v62 = vrot.slane %v2315_v61, 1 }
0x140a   : > { %v2317_v41 = vadd.f32 %v2316_v62, %v2315_v61 }
0x140c   : > { %v3969_v14 = vsel %vm3962_vm10, %v2317_v41, %v3956_v10  ;;  %v3064_v41 = vld [vmem:[%s3363_s12] sm:$0xff] }
0x140d   : > { %2326 = vperm.xlu2 %2970, %v3969_v14  }
0x1413   : > { %v1261_v19 = vpop.permute.xlu1 %1260 }
0x1414   : > { %vm1263_vm13 = vcmp.eq.s32.totalorder %v3227_v63, %v1261_v19  ;;  %v1268_v19 = vmul.f32 %v3064_v41, %v3900_v38 }
0x1415   : > { %v3974_v35 = vsel %vm1263_vm13, 1.0, %v4231_v20 }
0x1416   : > { %2836 = vmatmul.msk.f32.gmra.mxu2 %vm1224_vm1, %v3974_v35  ;;  %v1316_v31 = vrot.slane %v3974_v35, 1 }
0x1418   : > { %v1317_v42 = vsel %vm4206_vm4, %v1315_v44, %v1316_v31 }
0x1419   : > { %v1320_v52 = vmul.f32 %v1317_v42, %v1308_v8 }
0x141b   : > { %v1322_v62 = vsel %vm1224_vm1, %v1320_v52, 0.0 }
0x141d   : > { %v3978_v48 = vpop.xlane.xlu0 %2030 }
0x141e   : > { %v2032_v54 = vsub.f32 %v2028_v17, %v3978_v48  ;;  %v1551_v17 = vsel %vm1224_vm1, %v1550_v55, inf  ;;  %v4014_v55 = vstv %s3741_s15 }
0x141f   : > { %v1552_v51 = vrot.slane %v1551_v17, 4 }
0x1420   : > { %v2033_v13 = vmul.f32 1.442695, %v2032_v54  ;;  %v4005_v54 = vsel %vm366_vm7, 1.0, %v4231_v20  ;;  %vm1355_vm7 = vcmp.eq.s32.totalorder %v3348_v18, %v4014_v55 }
0x1421   : > { %v1553_v34 = vmin.f32 %v1551_v17, %v1552_v51  ;;  %v361_v17 = vadd.s32 8, %v3348_v18  ;;  %v2837_v51 = vsel %vm1355_vm7, 1.0, %v4231_v20  ;;  %v1331_v43 = vrot.slane %v4005_v54, 1 }
0x1422   : > { %3056 = vpow2.f32 %v2033_v13  ;;  %v1270_v13 = vmul.f32 %v4005_v54, %v1268_v19 }
0x1423   : > { %v1554_v4 = vrot.slane %v1553_v34, 2  ;;  %vm1356_vm4 = vcmp.eq.s32.totalorder %v361_v17, %v4014_v55  ;;  %vm367_vm12 = vcmp.lt.s32.totalorder %v361_v17, %v3230_v1 }
0x1425   : > { %v1555_v39 = vmin.f32 %v1553_v34, %v1554_v4  ;;  %v2838_v34 = vsel %vm1356_vm4, 1.0, %v4231_v20  ;;  %v1361_v4 = vmul.f32 %v2837_v51, %v3900_v38  ;;  %vm1403_vm4 = vcmp.eq.f32.partialorder %v3382_v28, %v3395_v47 }
0x1426   : > { %v2337_v28 = vstv %s2336_s13  ;;  %v4240_v47 = vmov 0 }
0x1427   : > { %v1556_v33 = vrot.slane %v1555_v39, 1 }
0x1428   : > { %v3057_v23 = vpop.eup %3056 }
0x1429   : > { %v2035_v9 = vsel %vm1224_vm1, %v3057_v23, 0.0  ;;  %v1557_v22 = vmin.f32 %v1555_v39, %v1556_v33  ;;  %v1272_v23 = vsel %vm1224_vm1, %v1270_v13, 0.0  ;;  %v1362_v39 = vmul.f32 %v2838_v34, %v3974_v35 }
0x142a   : > { %2036 = vadd.xlane.f32.xlu0 %v2035_v9  ;;  %v3065_v9 = vld [vmem:[%s4197_s5 + $0x7] ss:$0 sm:$0xff]  ;;  %v1363_v33 = vsel %vm1224_vm1, %v1361_v4, 0.0 }
0x142b   : > { %v1349_v45 = vmul.f32 %v3065_v9, %v3900_v38  ;;  %v1364_v44 = vsel %vm1224_vm1, %v1362_v39, 0.0  ;;  %v4030_v38 = vsel %vm367_vm12, 1.0, %v4231_v20  ;;  %v346_v20 = vld [vmem:[%s4197_s5 + $0x10] ss:$0 sm:$0xff]  ;;  %vm4045_vm12 = vcmp.eq.s32.totalorder %v2337_v28, 1 }
0x142c   : > { %v4241_v47 = vsel %vm4045_vm12, 4294967295, %v4240_v47 }
0x1436   : > { %1498 = vmin.xlane.f32.xlu2 %v1497_v57 }
0x1467   : > { %v3993_v30 = vpop.permute.xlu2 %2326 }
0x1468   : > { %vm2331_vm13 = vcmp.eq.f32.partialorder %v3716_v3, %v3993_v30 }
0x1469   : > { %v2332_v60 = vsel %vm2331_vm13, %v1557_v22, 0.0  ;;  %vm1350_vm13 = vcmask 57344   ;;  %v1365_v22 = vadd.f32 %v1364_v44, %v1363_v33 }
0x146a   : > { %v2333_v61 = vsel %vm1224_vm1, %v2332_v60, 0.0  ;;  %v1351_v57 = vsel %vm1350_vm13, %v1349_v45, 0.0  ;;  %vm1325_vm13 = vcmask 63488  }
0x146b   : > { %2334 = vadd.xlane.f32.xlu1 %v2333_v61  ;;  %v1366_v60 = vrot.slane %v1365_v22, 4  ;;  %v3066_v61 = vld [vmem:[%s3363_s12 + $0x8] sm:$0xff] }
0x146c   : > { %v1269_v52 = vmul.f32 %v3066_v61, %v3974_v35 }
0x146e   : > { %v1271_v41 = vmul.f32 %v4030_v38, %v1269_v52 }
0x1470   : > { %v1275_v13 = vsel %vm1224_vm1, %v1271_v41, 0.0 }
0x1473   : > { %1323 = vadd.xlane.f32.xlu1 %v1322_v62  ;;  %v1367_v62 = vadd.f32 %v1366_v60, %v1365_v22  ;;  %v2359_v22 = vstv %s2358_s14 }
0x1475   : > { %v1368_v19 = vrot.slane %v1367_v62, 2 }
0x147b   : > { %1273 = vadd.xlane.f32.xlu1 %v1272_v23  ;;  %v1369_v23 = vadd.f32 %v1368_v19, %v1367_v62 }
0x147d   : > { %v1370_v1 = vrot.slane %v1369_v23, 1 }
0x147f   : > { %v1371_v9 = vadd.f32 %v1370_v1, %v1369_v23 }
0x1481   : > { %v1372_v45 = vmul.f32 %v1371_v9, %v346_v20 }
0x1483   : > { %1352 = vadd.xlane.f32.xlu1 %v1351_v57  ;;  %v1373_v57 = vsel %vm1224_vm1, %v1372_v45, 0.0 }
0x1499   : > { %v1311_v8 = vpop.f32.mrf.mxu2 }
0x149a   : > { %v1321_v42 = vmul.f32 %v1316_v31, %v1311_v8  ;;  %v1404_v31 = vsel %vm1403_vm4, %v3716_v3, 8.0  ;;  %vm4055_vm4 = vcmp.eq.s32.totalorder %v2359_v22, 1  ;;  %v4243_v8 = vmov 0 }
0x149b   : > { %v1405_v35 = vsel %vm1224_vm1, %v1404_v31, inf  ;;  %v4244_v8 = vsel %vm4055_vm4, 4294967295, %v4243_v8 }
0x149c   : > { %v1326_v18 = vsel %vm1325_vm13, %v1321_v42, 0.0  ;;  %vm4242_vm13 = vcmask 130168  }
0x149d   : > { %1327 = vadd.xlane.f32.xlu2 %v1326_v18  ;;  %v2037_v18 = vpop.xlane.xlu0 %2036 }
0x149e   : > { %3058 = vlog2.f32 %v2037_v18 }
0x14a4   : > { %v3059_v61 = vpop.eup %3058 }
0x14a5   : > { %1276 = vadd.xlane.f32.xlu2 %v1275_v13  ;;  %v2039_v52 = vmul.f32 0.6931472, %v3059_v61 }
0x14a7   : > { %v2040_v62 = vadd.f32 %v2039_v52, %v3978_v48 }
0x14a9   : > { %v1499_v34 = vpop.xlane.xlu2 %1498  ;;  %v2041_v41 = vadd.f32 %v2040_v62, %v3723_v15 }
0x14ab   : > { %v2057_v19 = vadd.f32 %v3725_v16, %v2041_v41 }
0x14ad   : > { %1406 = vmin.xlane.f32.xlu2 %v1405_v35 }
0x14b5   : > { %1374 = vadd.xlane.f32.xlu2 %v1373_v57 }
0x14cd   : > { %2104 = vperm.xlu2 %2970, %v3738_v7  }
0x14d5   : > { %2304 = vperm.xlu2 %2970, %v3956_v10  }
0x14de   : > { %v2335_v17 = vpop.xlane.xlu1 %2334 }
0x14df   : > { %v2339_v51 = vsel %vm4045_vm12, %v2335_v17, %v3969_v14  ;;  %vm2140_vm12 = vcmp.eq.s32.totalorder %v3227_v63, 13 }
0x14e0   : > { %vm2349_vm7 = vcmp.eq.f32.partialorder %v3731_v21, %v2339_v51 }
0x14e1   : > { %v2350_v4 = vsel %vm2349_vm7, %v1499_v34, 0.0  ;;  %vm4245_vm7 = vmmov %vm4242_vm13 }
0x14e2   : > { %v2351_v7 = vsel %vm4242_vm13, %v2350_v4, 0.0  ;;  %v2059_v13 = vsel %vm4245_vm7, %v2057_v19, -inf  ;;  %vm4246_vm13 = vcmp.eq.f32.partialorder %v3418_v53, %v3427_v2 }
0x14e3   : > { %v2352_v39 = vrot.slane %v2351_v7, 4 }
0x14e5   : > { %v2353_v10 = vadd.f32 %v2352_v39, %v2351_v7 }
0x14e6   : > { %v1324_v12 = vpop.xlane.xlu1 %1323 }
0x14e7   : > { %v2354_v33 = vrot.slane %v2353_v10, 2 }
0x14e9   : > { %v2355_v44 = vadd.f32 %v2354_v33, %v2353_v10 }
0x14eb   : > { %v2356_v60 = vrot.slane %v2355_v44, 1 }
0x14ed   : > { %v2357_v42 = vadd.f32 %v2356_v60, %v2355_v44 }
0x14ef   : > { %v4061_v14 = vsel %vm4055_vm4, %v2357_v42, %v2339_v51  ;;  %vm2122_vm4 = vcmp.eq.s32.totalorder %v3227_v63, 14 }
0x14f0   : > { %2366 = vperm.xlu0 %2971, %v4061_v14   ;;  %vm2123_vm10 = vmand %vm3748_vm2, %vm2122_vm4 }
0x14f1   : > { %vm2181_vm2 = vmand %vm3812_vm5, %vm2180_vm8  ;;  %vm4252_vm8 = vcmask 130168  }
0x14f2   : > { %vm2203_vm4 = vmand %vm3824_vm6, %vm2202_vm11  ;;  %vm4249_vm6 = vcmask 1046528  }
0x14f8   : > { %2144 = vperm.xlu0 %2971, %v3787_v59   ;;  %v2060_v59 = vrot.slane %v2059_v13, 4 }
0x14fa   : > { %v2061_v23 = vmax.f32 %v2059_v13, %v2060_v59  ;;  %v1332_v59 = vrot.slane %v4030_v38, 1 }
0x1500   : > { %2184 = vperm.xlu0 %2971, %v3818_v24   ;;  %v2062_v24 = vrot.slane %v2061_v23, 2 }
0x1502   : > { %v2063_v1 = vmax.f32 %v2061_v23, %v2062_v24  ;;  %v1333_v23 = vsel %vm4249_vm6, %v1331_v43, %v1332_v59  ;;  %vm2340_vm6 = vcmp.eq.s32.totalorder %v3227_v63, 3 }
0x1503   : > { %v1336_v24 = vmul.f32 %v1333_v23, %v1324_v12 }
0x1508   : > { %2224 = vperm.xlu0 %2971, %v3861_v32   ;;  %v2064_v32 = vrot.slane %v2063_v1, 1 }
0x150a   : > { %v2065_v35 = vmax.f32 %v2063_v1, %v2064_v32  ;;  %v1274_v32 = vpop.xlane.xlu1 %1273 }
0x150c   : > { %v2066_v9 = vsub.f32 %v2057_v19, %v2065_v35 }
0x150e   : > { %v2067_v48 = vmul.f32 1.442695, %v2066_v9 }
0x1510   : > { %2344 = vperm.xlu0 %2971, %v2339_v51   ;;  %v4072_v31 = vpop.xlane.xlu2 %1327  ;;  %3060 = vpow2.f32 %v2067_v48 }
0x1511   : > { %v1337_v1 = vmul.f32 %v1332_v59, %v4072_v31 }
0x1512   : > { %v1353_v54 = vpop.xlane.xlu1 %1352 }
0x1516   : > { %v3061_v45 = vpop.eup %3060 }
0x1517   : > { %v2069_v17 = vsel %vm4245_vm7, %v3061_v45, 0.0  ;;  %vm2101_vm7 = vcmp.eq.s32.totalorder %v3227_v63, %v4014_v55 }
0x1518   : > { %2973 = vset.pattern.permute.xlu0 %v3138_v58  ;;  %v1458_v58 = vsel %vm4246_vm13, %v3731_v21, 8.0  ;;  %v4078_v15 = vpop.xlane.xlu2 %1276  ;;  %v2070_v34 = vrot.slane %v2069_v17, 4 }
0x1519   : > { %v1459_v16 = vsel %vm1224_vm1, %v1458_v58, inf  ;;  %v1278_v58 = vadd.f32 %v4078_v15, %v1274_v32 }
0x151a   : > { %v1460_v20 = vrot.slane %v1459_v16, 4  ;;  %v2071_v7 = vadd.f32 %v2070_v34, %v2069_v17 }
0x151c   : > { %v1461_v57 = vmin.f32 %v1459_v16, %v1460_v20  ;;  %v2072_v2 = vrot.slane %v2071_v7, 2  ;;  %v2377_v20 = vstv %s2376_s22 }
0x151e   : > { %v1462_v51 = vrot.slane %v1461_v57, 2  ;;  %v2073_v22 = vadd.f32 %v2072_v2, %v2071_v7 }
0x1520   : > { %v4081_v28 = vpop.xlane.xlu2 %1406  ;;  %v1463_v4 = vmin.f32 %v1461_v57, %v1462_v51  ;;  %v2074_v18 = vrot.slane %v2073_v22, 1 }
0x1522   : > { %v1464_v53 = vrot.slane %v1463_v4, 1 }
0x1524   : > { %v1465_v33 = vmin.f32 %v1463_v4, %v1464_v53 }
0x1528   : > { %v4084_v39 = vpop.xlane.xlu2 %1374 }
0x1530   : > { %v2105_v42 = vpop.permute.xlu2 %2104 }
0x1531   : > { %v2107_v52 = vsel %vm2101_vm7, %v2105_v42, 0.0  ;;  %vm2260_vm7 = vcmp.eq.s32.totalorder %v3227_v63, 7 }
0x1532   : > { %v2129_v55 = vsel %vm2123_vm10, %v3767_v5, %v2107_v52  ;;  %vm2242_vm10 = vcmp.eq.s32.totalorder %v3227_v63, 8 }
0x1533   : > { %vm4117_vm5 = vmand %vm3867_vm3, %vm2242_vm10  ;;  %vm1340_vm3 = vcmask 6144   ;;  %vm4256_vm10 = vnez %v4235_v11 }
0x1538   : > { %v2305_v11 = vpop.permute.xlu2 %2304 }
0x1562   : > { %v4086_v10 = vpop.permute.xlu0 %2366 }
0x1563   : > { %vm2371_vm13 = vcmp.eq.f32.partialorder %v3716_v3, %v4086_v10  ;;  %v2075_v3 = vadd.f32 %v2074_v18, %v2073_v22 }
0x1564   : > { %v2372_v44 = vsel %vm2371_vm13, %v1465_v33, 0.0  ;;  %vm2162_vm13 = vcmp.eq.s32.totalorder %v3227_v63, 12 }
0x1565   : > { %v2373_v60 = vsel %vm1224_vm1, %v2372_v44, 0.0  ;;  %vm2141_vm1 = vmand %vm3781_vm9, %vm2140_vm12  ;;  %3062 = vlog2.f32 %v2075_v3  ;;  %vm2220_vm9 = vcmp.eq.s32.totalorder %v3227_v63, 9 }
0x1566   : > { %2374 = vadd.xlane.f32.xlu1 %v2373_v60  ;;  %vm2163_vm15 = vmand %vm3793_vm14, %vm2162_vm13  ;;  %vm2282_vm13 = vcmp.eq.s32.totalorder %v3227_v63, 6 }
0x1567   : > { %vm2221_vm14 = vmand %vm3855_vm0, %vm2220_vm9  ;;  %vm1338_vm0 = vcmask 7168  }
0x1568   : > { %v1339_v9 = vsel %vm1338_vm0, %v1336_v24, 0.0  ;;  %vm4257_vm0 = vnez %v4237_v49 }
0x156a   : > { %v2145_v61 = vpop.permute.xlu0 %2144 }
0x156b   : > { %v2147_v62 = vsel %vm2141_vm1, %v2145_v61, %v2129_v55  ;;  %v3063_v5 = vpop.eup %3062  ;;  %v2399_v61 = vstv %s2398_s19  ;;  %vm2300_vm1 = vcmp.eq.s32.totalorder %v3227_v63, 5 }
0x156c   : > { %v2169_v50 = vsel %vm2163_vm15, %v3805_v56, %v2147_v62  ;;  %v2077_v6 = vmul.f32 0.6931472, %v3063_v5  ;;  %vm4134_vm15 = vcmp.eq.s32.totalorder %v2377_v20, 1  ;;  %vm4145_vm12 = vcmp.eq.s32.totalorder %v2399_v61, 1 }
0x156e   : > { %v2078_v13 = vadd.f32 %v2077_v6, %v2065_v35  ;;  %v1341_v35 = vsel %vm1340_vm3, %v1337_v1, 0.0  ;;  %vm2301_vm3 = vmand %vm4257_vm0, %vm2300_vm1  ;;  %vm4260_vm1 = vnez %v4244_v8 }
0x156f   : > { %v1342_v48 = vadd.f32 %v1341_v35, %v1339_v9 }
0x1571   : > { %v1343_v16 = vrot.slane %v1342_v48, 4 }
0x1572   : > { %v2185_v25 = vpop.permute.xlu0 %2184 }
0x1573   : > { %v2187_v41 = vsel %vm2181_vm2, %v2185_v25, %v2169_v50  ;;  %v1344_v45 = vadd.f32 %v1343_v16, %v1342_v48  ;;  %vm2322_vm2 = vcmp.eq.s32.totalorder %v3227_v63, 4 }
0x1574   : > { %v2209_v19 = vsel %vm2203_vm4, %v3843_v26, %v2187_v41  ;;  %vm4255_vm4 = vnez %v4233_v46 }
0x1575   : > { %v1345_v51 = vrot.slane %v1344_v45, 2  ;;  %vm2261_vm9 = vmand %vm4255_vm4, %vm2260_vm7  ;;  %vm4259_vm7 = vnez %v4241_v47 }
0x1577   : > { %v1346_v53 = vadd.f32 %v1345_v51, %v1344_v45 }
0x1579   : > { %v1347_v22 = vrot.slane %v1346_v53, 1 }
0x157a   : > { %v2225_v40 = vpop.permute.xlu0 %2224 }
0x157b   : > { %v4121_v56 = vsel %vm2221_vm14, %v2225_v40, %v2209_v19  ;;  %vm2283_vm14 = vmand %vm4256_vm10, %vm2282_vm13 }
0x157c   : > { %v2249_v26 = vsel %vm4117_vm5, %v3892_v36, %v4121_v56  ;;  %vm2341_vm13 = vmand %vm4259_vm7, %vm2340_vm6  ;;  %vm2380_vm5 = vcmp.eq.s32.totalorder %v3227_v63, 1  ;;  %vm2410_vm6 = vcmp.eq.s32.totalorder %v3227_v63, 16 }
0x157f   : > { %2097 = vrot.lane.b32.xlu1 %v2078_v13, %s3139_s16 }
0x1582   : > { %v2345_v5 = vpop.permute.xlu0 %2344 }
0x1587   : > { %2264 = vperm.xlu1 %2972, %v3911_v29   ;;  %v1279_v29 = vrot.slane %v1278_v58, 4 }
0x1589   : > { %v1280_v38 = vadd.f32 %v1279_v29, %v1278_v58 }
0x158b   : > { %v1281_v31 = vrot.slane %v1280_v38, 2 }
0x158d   : > { %v1282_v34 = vadd.f32 %v1281_v31, %v1280_v38 }
0x158f   : > { %v1283_v33 = vrot.slane %v1282_v34, 1 }
0x1591   : > { %v1284_v42 = vadd.f32 %v1283_v33, %v1282_v34 }
0x15d9   : > { %v2375_v17 = vpop.xlane.xlu1 %2374 }
0x15da   : > { %v2379_v15 = vsel %vm4134_vm15, %v2375_v17, %v4061_v14  ;;  %v1348_v14 = vadd.f32 %v1347_v22, %v1346_v53 }
0x15db   : > { %2384 = vperm.xlu1 %2972, %v2379_v15   ;;  %vm2389_vm11 = vcmp.eq.f32.partialorder %v3731_v21, %v2379_v15  ;;  %v4253_v21 = vmov 0 }
0x15dc   : > { %v2390_v4 = vsel %vm2389_vm11, %v4081_v28, 0.0  ;;  %v4254_v21 = vsel %vm4145_vm12, 4294967295, %v4253_v21  ;;  %v1376_v28 = vadd.f32 %v1348_v14, %v1284_v42  ;;  %vm2362_vm11 = vcmp.eq.s32.totalorder %v3227_v63, 2 }
0x15dd   : > { %v2391_v7 = vsel %vm4252_vm8, %v2390_v4, 0.0  ;;  %vm4258_vm8 = vnez %v4239_v37  ;;  %vm2363_vm4 = vmand %vm4260_vm1, %vm2362_vm11  ;;  %vm4261_vm10 = vnez %v4254_v21 }
0x15de   : > { %v2392_v2 = vrot.slane %v2391_v7, 4  ;;  %v1377_v62 = vadd.f32 %v1376_v28, %v1353_v54 }
0x15e0   : > { %v2393_v44 = vadd.f32 %v2392_v2, %v2391_v7  ;;  %v1378_v25 = vadd.f32 %v1377_v62, %v4084_v39 }
0x15e2   : > { %v2394_v60 = vrot.slane %v2393_v44, 2 }
0x15e4   : > { %v2395_v18 = vadd.f32 %v2394_v60, %v2393_v44 }
0x15e6   : > { %v2396_v52 = vrot.slane %v2395_v18, 1 }
0x15e8   : > { %v2397_v3 = vadd.f32 %v2396_v52, %v2395_v18 }
0x15ea   : > { %v2401_v55 = vsel %vm4145_vm12, %v2397_v3, %v2379_v15  ;;  %vm2323_vm12 = vmand %vm4258_vm8, %vm2322_vm2  ;;  %vm2402_vm2 = vcmp.eq.s32.totalorder %v3227_v63, 0 }
0x15eb   : > { %2406 = vperm.xlu2 %2970, %v2401_v55  }
0x15f1   : > { %v2098_v50 = vpop.permute.xlu1 %2097 }
0x15f2   : > { %v2100_v41 = vsub.f32 %v1378_v25, %v2098_v50 }
0x15f4   : > { %2413 = vperm.xlu0 %2973, %v2100_v41  }
0x15f9   : > { %v2265_v39 = vpop.permute.xlu1 %2264 }
0x15fa   : > { %v2267_v46 = vsel %vm2261_vm9, %v2265_v39, %v2249_v26  ;;  %vm2381_vm9 = vmand %vm4134_vm15, %vm2380_vm5 }
0x15fb   : > { %v2289_v19 = vsel %vm2283_vm14, %v3938_v0, %v2267_v46  ;;  %vm2403_vm14 = vmand %vm4261_vm10, %vm2402_vm2 }
0x15fc   : > { %v2307_v49 = vsel %vm2301_vm3, %v2305_v11, %v2289_v19 }
0x15fd   : > { %v2329_v37 = vsel %vm2323_vm12, %v3993_v30, %v2307_v49 }
0x15fe   : > { %v2347_v6 = vsel %vm2341_vm13, %v2345_v5, %v2329_v37 }
0x15ff   : > { %v2369_v27 = vsel %vm2363_vm4, %v4086_v10, %v2347_v6 }
0x1645   : > { %v2407_v0 = vpop.permute.xlu2 %2406 }
0x164d   : > { %v2385_v36 = vpop.permute.xlu1 %2384 }
0x164e   : > { %v2387_v47 = vsel %vm2381_vm9, %v2385_v36, %v2369_v27 }
0x164f   : > { %v2409_v8 = vsel %vm2403_vm14, %v2407_v0, %v2387_v47 }
0x1666   : > { %v2414_v30 = vpop.permute.xlu0 %2413 }
0x1667   : > { %v2416_v10 = vsel %vm2410_vm6, %v2414_v30, %v2409_v8 }
0x1668   : > { %2417 = vst [vmem:[%s333_s21] sm:$0x1] %v2416_v10 }
0x1669 PF: > { %s28_s9 = sadd.s32 1, %s3121_s9  }
0x166a   : > { %p25_p9 = scmp.ge.s32.totalorder %s28_s9, 4  }
0x166c   :  { %27 = sbr.rel (!%p25_p9) target bundleno = 7 (0x7), region = 95 }
0x1671   :  { %2451 = vsyncpa [#allocation5], 1 }
0x1672   :  { %2453 = vsyncpa [#allocation5 + $0x1], 1 }

</bundles_post_ra>
